<compile_context>
chip_gen: v5e
topology: v5e:2x2
jax: 0.10.0
libtpu: 0.0.40
codegen_flags: <defaults>
</compile_context>

<pallas_src>
import math

import jax
import jax.numpy as jnp
import numpy as np
from jax.experimental import pallas as pl
from jax.experimental.pallas import tpu as pltpu

NEG_BIG = -1e10


# ----------------------------------------------------------------------------
# Kernel
# ----------------------------------------------------------------------------
def make_decoder_layer_kernel(Bt, Lq, Ls, H, n_heads, *, has_tbias, return_attention):
    hd = H // n_heads

    def layer_norm(x, g, b):
        mu = jnp.mean(x, axis=-1, keepdims=True)
        var = jnp.mean((x - mu) ** 2, axis=-1, keepdims=True)
        return (x - mu) * jax.lax.rsqrt(var + 1e-5) * g + b

    def split_heads(x, width):
        # (L, n_heads*width) head-major packed -> (n_heads, L, width).
        # One stack of n_heads contiguous lane slices per tensor (the wrapper packs
        # Q|K|V of the same head into adjacent lanes so a single stack suffices).
        return jnp.stack([x[:, h * width:(h + 1) * width] for h in range(n_heads)],
                         axis=0)

    def merge_heads(x):
        # (n_heads, L, hd) -> (L, H)
        return jnp.concatenate([x[h] for h in range(n_heads)], axis=-1)

    def attend(Qh, Kh, Vh, bias):
        # head-batched scores + numerically stable softmax + context
        e = jnp.einsum('hqd,hkd->hqk', Qh, Kh, preferred_element_type=jnp.float32)
        e = e + bias
        e = e - jnp.max(e, axis=-1, keepdims=True)
        p = jnp.exp(e)
        probs = p * (1.0 / jnp.sum(p, axis=-1, keepdims=True))   # exact (tol 1e-4)
        ctx = jnp.einsum('hqk,hkd->hqd', probs, Vh,
                         preferred_element_type=jnp.float32)
        return ctx, probs

    def kernel(*refs):
        trg_ref, enc_ref = refs[0], refs[1]
        i = 2
        if has_tbias:
            tbias_ref = refs[i]; i += 1
        else:
            tbias_ref = None
        sbias_ref = refs[i]; i += 1
        (sa_wqkv, sa_bqkv, sa_wo, ea_wqkv, ea_bqkv, ea_wo,
         ff_w1, ff_b1, ff_w2, vec_h) = refs[i:i + 10]
        i += 10
        out_ref = refs[i]; i += 1
        attn_ref = refs[i] if return_attention else None

        # unpack the stacked (9, H) bias / LayerNorm parameter block (static slices)
        vh = vec_h[...]
        sa_bo = vh[0:1]; ln1_g = vh[1:2]; ln1_b = vh[2:3]
        ea_bo = vh[3:4]; ln2_g = vh[4:5]; ln2_b = vh[5:6]
        ff_b2 = vh[6:7]; ln3_g = vh[7:8]; ln3_b = vh[8:9]

        # flatten Bt batch rows -> the projection / FFN matmuls see M = Bt*Lq rows
        trg2d = trg_ref[...].reshape(Bt * Lq, H)
        enc2d = enc_ref[...].reshape(Bt * Ls, H)

        if has_tbias:
            causal_bias = None
        else:
            # causal target mask generated in-kernel (no (B, Lq, Lq) bias DMA)
            r = jax.lax.broadcasted_iota(jnp.int32, (Lq, Lq), 0)
            c = jax.lax.broadcasted_iota(jnp.int32, (Lq, Lq), 1)
            causal_bias = jnp.where(r >= c, 0.0, NEG_BIG).astype(jnp.float32)

        # ---- 1) self attention (fused head-major QKV projection) ----
        qkv = (jnp.dot(trg2d, sa_wqkv[...], preferred_element_type=jnp.float32)
               + sa_bqkv[...])                                    # (Bt*Lq, 3H)
        sa_rows = []
        for b in range(Bt):
            row = qkv[b * Lq:(b + 1) * Lq]                        # (Lq, nh*3hd)
            qkv_h = split_heads(row, 3 * hd)                      # (nh, Lq, 3hd)
            Qh = qkv_h[:, :, :hd]
            Kh = qkv_h[:, :, hd:2 * hd]
            Vh = qkv_h[:, :, 2 * hd:]
            bias = tbias_ref[b][None] if has_tbias else causal_bias[None]
            ctx, _ = attend(Qh, Kh, Vh, bias)
            sa_rows.append(merge_heads(ctx))
        sa2d = jnp.concatenate(sa_rows, axis=0)                   # (Bt*Lq, H)
        sa2d = jnp.dot(sa2d, sa_wo[...], preferred_element_type=jnp.float32) + sa_bo
        x1 = layer_norm(trg2d + sa2d, ln1_g, ln1_b)

        # ---- 2) encoder (cross) attention ----
        q = (jnp.dot(x1, ea_wqkv[:, :H], preferred_element_type=jnp.float32)
             + ea_bqkv[:, :H])                                    # (Bt*Lq, H)
        kv = (jnp.dot(enc2d, ea_wqkv[:, H:], preferred_element_type=jnp.float32)
              + ea_bqkv[:, H:])                                   # (Bt*Ls, 2H) head-major
        ea_rows = []
        for b in range(Bt):
            qrow = q[b * Lq:(b + 1) * Lq]                         # (Lq, H)
            kvrow = kv[b * Ls:(b + 1) * Ls]                       # (Ls, 2H)
            Qh = split_heads(qrow, hd)                            # (nh, Lq, hd)
            kv_h = split_heads(kvrow, 2 * hd)                     # (nh, Ls, 2hd)
            Kh = kv_h[:, :, :hd]
            Vh = kv_h[:, :, hd:]
            sb = sbias_ref[b]                                     # (1 or Lq, Ls)
            ctx, probs = attend(Qh, Kh, Vh, sb[None])
            if return_attention:
                # PyTorch-native (nh, Lq, Ls) layout, stored directly (no concat /
                # wrapper transpose); lane-dense for realistic Ls.
                attn_ref[b] = probs.astype(attn_ref.dtype)
            ea_rows.append(merge_heads(ctx))
        ea2d = jnp.concatenate(ea_rows, axis=0)                   # (Bt*Lq, H)
        ea2d = jnp.dot(ea2d, ea_wo[...], preferred_element_type=jnp.float32) + ea_bo
        x2 = layer_norm(x1 + ea2d, ln2_g, ln2_b)

        # ---- 3) position-wise feed-forward ----
        # TODO(synk): at realistic pf this needs a pf-tiling grid axis + accumulator.
        hdn = jnp.maximum(
            jnp.dot(x2, ff_w1[...], preferred_element_type=jnp.float32) + ff_b1[...],
            0.0)
        ff = jnp.dot(hdn, ff_w2[...], preferred_element_type=jnp.float32) + ff_b2
        x3 = layer_norm(x2 + ff, ln3_g, ln3_b)
        out_ref[...] = x3.reshape(Bt, Lq, H).astype(out_ref.dtype)

    return kernel


# ----------------------------------------------------------------------------
# Wrapper
# ----------------------------------------------------------------------------
def _pick_batch_tile(B, Lq, requested=None):
    if requested is not None:
        assert B % requested == 0, "batch_tile must divide the batch"
        return requested
    # Fill the matmul M dimension (~256 rows) while dividing the batch evenly.
    # TODO(synk): on v7x prefer keeping >=2 grid steps (one per TensorCore) when B allows.
    bt = min(B, max(1, 256 // max(Lq, 1)))
    while B % bt:
        bt -= 1
    return max(bt, 1)


def decoder_layer(trg, enc_src, trg_mask, src_mask, params, n_heads, *,
                  causal_trg_mask=False, return_attention=True, batch_tile=None):
    """trg: (B, Lq, H); enc_src: (B, Ls, H).

    trg_mask: (B, Lq, Lq) 0/1 mask, or None with causal_trg_mask=True (causal bias is
    then generated in-kernel, no HBM bias traffic).
    src_mask: (B, Ls) / (B, 1, Ls) key-padding mask, or a full (B, Lq, Ls) mask.
    """
    B, Lq, H = trg.shape
    Ls = enc_src.shape[1]
    hd = H // n_heads
    pf = params["ff_w1"].shape[1]
    inv_scale = 1.0 / math.sqrt(float(hd))

    Bt = _pick_batch_tile(B, Lq, batch_tile)

    # ---- parameter packing (wrapper-side, one-time) ----
    # Head-major interleave: Q|K|V columns of the same head are adjacent lanes, so the
    # kernel splits heads with a single stack per tensor.  1/sqrt(hd) folded into Q.
    def head_major(mats):
        cols = []
        for h in range(n_heads):
            s = slice(h * hd, (h + 1) * hd)
            cols += [m[:, s] for m in mats]
        return jnp.concatenate(cols, axis=1)

    sa_wqkv = head_major([params["sa_wq"] * inv_scale, params["sa_wk"], params["sa_wv"]])
    sa_bqkv = head_major([params["sa_bq"] * inv_scale, params["sa_bk"], params["sa_bv"]])
    ea_wqkv = jnp.concatenate(
        [params["ea_wq"] * inv_scale, head_major([params["ea_wk"], params["ea_wv"]])],
        axis=1)
    ea_bqkv = jnp.concatenate(
        [params["ea_bq"] * inv_scale, head_major([params["ea_bk"], params["ea_bv"]])],
        axis=1)
    # stack all (1, H) biases / LN params into one (9, H) block
    vec_h = jnp.concatenate(
        [params["sa_bo"], params["ln1_g"], params["ln1_b"],
         params["ea_bo"], params["ln2_g"], params["ln2_b"],
         params["ff_b2"], params["ln3_g"], params["ln3_b"]], axis=0)

    weights = [sa_wqkv, sa_bqkv, params["sa_wo"],
               ea_wqkv, ea_bqkv, params["ea_wo"],
               params["ff_w1"], params["ff_b1"], params["ff_w2"], vec_h]

    # ---- masks -> compact additive biases (0 attended, -1e10 masked) ----
    sm = src_mask.astype(jnp.float32)
    if sm.ndim == 2:
        sm = sm[:, None, :]
    Sq = sm.shape[1]                       # 1 (key padding) or Lq (full mask)
    sbias = (sm - 1.0) * 1e10
    tbias = None if causal_trg_mask else (trg_mask.astype(jnp.float32) - 1.0) * 1e10

    kernel = make_decoder_layer_kernel(
        Bt, Lq, Ls, H, n_heads,
        has_tbias=tbias is not None, return_attention=return_attention)

    seq_inputs = [trg, enc_src] + ([] if tbias is None else [tbias]) + [sbias]
    seq_specs = [pl.BlockSpec((Bt, Lq, H), lambda i: (i, 0, 0)),
                 pl.BlockSpec((Bt, Ls, H), lambda i: (i, 0, 0))]
    if tbias is not None:
        seq_specs.append(pl.BlockSpec((Bt, Lq, Lq), lambda i: (i, 0, 0)))
    seq_specs.append(pl.BlockSpec((Bt, Sq, Ls), lambda i: (i, 0, 0)))

    out_spec = pl.BlockSpec((Bt, Lq, H), lambda i: (i, 0, 0))
    if return_attention:
        out_shape = (jax.ShapeDtypeStruct((B, Lq, H), jnp.float32),
                     jax.ShapeDtypeStruct((B, n_heads, Lq, Ls), jnp.float32))
        out_specs = (out_spec,
                     pl.BlockSpec((Bt, n_heads, Lq, Ls), lambda i: (i, 0, 0, 0)))
    else:
        out_shape = jax.ShapeDtypeStruct((B, Lq, H), jnp.float32)
        out_specs = out_spec

    # scoped-VMEM budget sized to actual residency with headroom (weights 1x-buffered,
    # activation blocks 2x-buffered + temporaries), clamped to v7x's 64 MiB.
    weight_bytes = sum(int(np.prod(w.shape)) * 4 for w in weights)
    act_elems = 2 * (Bt * Lq * H) + Bt * Ls * H + Bt * Sq * Ls + Bt * Lq * pf
    if tbias is not None:
        act_elems += Bt * Lq * Lq
    if return_attention:
        act_elems += Bt * n_heads * Lq * Ls
    vmem_limit = int(min(64 << 20,
                         max(16 << 20, 2 * weight_bytes + 8 * act_elems * 4 + (4 << 20))))

    def run(single_buffer_weights):
        def weight_spec(shape):
            nd = len(shape)
            index_map = lambda i, _nd=nd: (0,) * _nd
            if single_buffer_weights:
                # grid-invariant weights: no double buffering (halves weight VMEM)
                return pl.BlockSpec(shape, index_map, pipeline_mode=pl.Buffered(1))
            return pl.BlockSpec(shape, index_map)

        call = pl.pallas_call(
            kernel,
            out_shape=out_shape,
            grid_spec=pltpu.PrefetchScalarGridSpec(
                num_scalar_prefetch=0,
                grid=(B // Bt,),
                in_specs=seq_specs + [weight_spec(w.shape) for w in weights],
                out_specs=out_specs,
            ),
            compiler_params=pltpu.CompilerParams(
                dimension_semantics=("parallel",),
                vmem_limit_bytes=vmem_limit),
        )
        return jax.block_until_ready(call(*seq_inputs, *weights))

    try:
        return run(True)
    except Exception:
        # pipeline_mode=pl.Buffered(1) unsupported on this jax version -> fall back to
        # default (double-buffered) weight specs.
        return run(False)


# ----------------------------------------------------------------------------
# Pure-JAX reference (mirrors the PyTorch module, dropout = identity)
# ----------------------------------------------------------------------------
def reference_decoder_layer(trg, enc_src, trg_mask, src_mask, p, n_heads):
    H = trg.shape[-1]
    hd = H // n_heads

    def ln(x, g, b):
        mu = x.mean(-1, keepdims=True)
        var = ((x - mu) ** 2).mean(-1, keepdims=True)
        return (x - mu) / jnp.sqrt(var + 1e-5) * g + b

    def mha(xq, xkv, mask, wq, bq, wk, bk, wv, bv, wo, bo):
        B, Lq, _ = xq.shape
        Lk = xkv.shape[1]
        Q = (xq @ wq + bq).reshape(B, Lq, n_heads, hd).transpose(0, 2, 1, 3)
        K = (xkv @ wk + bk).reshape(B, Lk, n_heads, hd).transpose(0, 2, 1, 3)
        V = (xkv @ wv + bv).reshape(B, Lk, n_heads, hd).transpose(0, 2, 1, 3)
        e = jnp.einsum("bhqd,bhkd->bhqk", Q, K) / math.sqrt(hd)
        e = jnp.where(mask[:, None, :, :] == 0, -1e10, e)
        a = jax.nn.softmax(e, axis=-1)
        x = jnp.einsum("bhqk,bhkd->bhqd", a, V)
        x = x.transpose(0, 2, 1, 3).reshape(B, Lq, H)
        return x @ wo + bo, a

    sa, _ = mha(trg, trg, trg_mask, p["sa_wq"], p["sa_bq"], p["sa_wk"], p["sa_bk"],
                p["sa_wv"], p["sa_bv"], p["sa_wo"], p["sa_bo"])
    x1 = ln(trg + sa, p["ln1_g"], p["ln1_b"])
    ea, attn = mha(x1, enc_src, src_mask, p["ea_wq"], p["ea_bq"], p["ea_wk"],
                   p["ea_bk"], p["ea_wv"], p["ea_bv"], p["ea_wo"], p["ea_bo"])
    x2 = ln(x1 + ea, p["ln2_g"], p["ln2_b"])
    ff = jnp.maximum(x2 @ p["ff_w1"] + p["ff_b1"], 0.0) @ p["ff_w2"] + p["ff_b2"]
    x3 = ln(x2 + ff, p["ln3_g"], p["ln3_b"])
    return x3, attn


# ----------------------------------------------------------------------------
# Main
# ----------------------------------------------------------------------------
if __name__ == "__main__":
    B, Lq, Ls = 2, 8, 8
    H, n_heads, pf = 32, 4, 64

    key = jax.random.PRNGKey(0)
    keys = jax.random.split(key, 32)
    ki = iter(keys)

    def w(shape, k, scale=0.1):
        return (scale * jax.random.normal(k, shape)).astype(jnp.float32)

    # Weights stored as (in, out) so the kernel computes y = x @ W + b
    # (equivalent to PyTorch's y = x @ W.T + b with W of shape (out, in)).
    params = {
        "sa_wq": w((H, H), next(ki)), "sa_bq": w((1, H), next(ki)),
        "sa_wk": w((H, H), next(ki)), "sa_bk": w((1, H), next(ki)),
        "sa_wv": w((H, H), next(ki)), "sa_bv": w((1, H), next(ki)),
        "sa_wo": w((H, H), next(ki)), "sa_bo": w((1, H), next(ki)),
        "ln1_g": jnp.ones((1, H), jnp.float32), "ln1_b": jnp.zeros((1, H), jnp.float32),
        "ea_wq": w((H, H), next(ki)), "ea_bq": w((1, H), next(ki)),
        "ea_wk": w((H, H), next(ki)), "ea_bk": w((1, H), next(ki)),
        "ea_wv": w((H, H), next(ki)), "ea_bv": w((1, H), next(ki)),
        "ea_wo": w((H, H), next(ki)), "ea_bo": w((1, H), next(ki)),
        "ln2_g": jnp.ones((1, H), jnp.float32), "ln2_b": jnp.zeros((1, H), jnp.float32),
        "ff_w1": w((H, pf), next(ki)), "ff_b1": w((1, pf), next(ki)),
        "ff_w2": w((pf, H), next(ki)), "ff_b2": w((1, H), next(ki)),
        "ln3_g": jnp.ones((1, H), jnp.float32), "ln3_b": jnp.zeros((1, H), jnp.float32),
    }

    trg = jax.random.normal(next(ki), (B, Lq, H), jnp.float32)
    enc_src = jax.random.normal(next(ki), (B, Ls, H), jnp.float32)

    # causal target mask (generated in-kernel) + key-padding source mask
    # (last encoder position padded), shipped compactly as (B, 1, Ls).
    src_key_pad = jnp.ones((B, 1, Ls), jnp.float32).at[:, :, -1].set(0.0)

    out, attn = decoder_layer(trg, enc_src, None, src_key_pad, params, n_heads,
                              causal_trg_mask=True, return_attention=True)
    out = jax.block_until_ready(out)
    attn = jax.block_until_ready(attn)

    # reference with the equivalent fully-broadcast masks
    trg_mask_full = jnp.broadcast_to(jnp.tril(jnp.ones((Lq, Lq), jnp.float32)),
                                     (B, Lq, Lq))
    src_mask_full = jnp.broadcast_to(src_key_pad, (B, Lq, Ls))
    ref_out, ref_attn = reference_decoder_layer(trg, enc_src, trg_mask_full,
                                                src_mask_full, params, n_heads)

    assert out.shape == (B, Lq, H)
    assert attn.shape == (B, n_heads, Lq, Ls)
    np.testing.assert_allclose(np.asarray(out), np.asarray(ref_out),
                               rtol=1e-4, atol=1e-4)
    np.testing.assert_allclose(np.asarray(attn), np.asarray(ref_attn),
                               rtol=1e-4, atol=1e-4)
    print("KERNEL_OK")
</pallas_src>

<mosaic_0001>
module attributes {stable_mosaic.version = 11 : i64} {
  func.func @kernel(%arg0: i32, %arg1: memref<2x8x32xf32, #tpu.memory_space<vmem>>, %arg2: memref<2x8x32xf32, #tpu.memory_space<vmem>>, %arg3: memref<2x1x8xf32, #tpu.memory_space<vmem>>, %arg4: memref<32x96xf32, #tpu.memory_space<vmem>>, %arg5: memref<1x96xf32, #tpu.memory_space<vmem>>, %arg6: memref<32x32xf32, #tpu.memory_space<vmem>>, %arg7: memref<32x96xf32, #tpu.memory_space<vmem>>, %arg8: memref<1x96xf32, #tpu.memory_space<vmem>>, %arg9: memref<32x32xf32, #tpu.memory_space<vmem>>, %arg10: memref<32x64xf32, #tpu.memory_space<vmem>>, %arg11: memref<1x64xf32, #tpu.memory_space<vmem>>, %arg12: memref<64x32xf32, #tpu.memory_space<vmem>>, %arg13: memref<9x32xf32, #tpu.memory_space<vmem>>, %arg14: memref<2x8x32xf32, #tpu.memory_space<vmem>>, %arg15: memref<2x4x8x8xf32, #tpu.memory_space<vmem>>) attributes {dimension_semantics = [#tpu.dimension_semantics<parallel>], iteration_bounds = array<i64: 1>, scalar_prefetch = 0 : i64, scratch_operands = 0 : i64, tpu.core_type = #tpu.core_type<tc>, window_params = [{transform_indices = @transform_0, window_bounds = array<i64: 2, 8, 32>}, {transform_indices = @transform_1, window_bounds = array<i64: 2, 8, 32>}, {transform_indices = @transform_2, window_bounds = array<i64: 2, 1, 8>}, {pipeline_mode = #tpu.pipeline_mode<synchronous>, transform_indices = @transform_3, window_bounds = array<i64: 32, 96>}, {pipeline_mode = #tpu.pipeline_mode<synchronous>, transform_indices = @transform_4, window_bounds = array<i64: 1, 96>}, {pipeline_mode = #tpu.pipeline_mode<synchronous>, transform_indices = @transform_5, window_bounds = array<i64: 32, 32>}, {pipeline_mode = #tpu.pipeline_mode<synchronous>, transform_indices = @transform_6, window_bounds = array<i64: 32, 96>}, {pipeline_mode = #tpu.pipeline_mode<synchronous>, transform_indices = @transform_7, window_bounds = array<i64: 1, 96>}, {pipeline_mode = #tpu.pipeline_mode<synchronous>, transform_indices = @transform_8, window_bounds = array<i64: 32, 32>}, {pipeline_mode = #tpu.pipeline_mode<synchronous>, transform_indices = @transform_9, window_bounds = array<i64: 32, 64>}, {pipeline_mode = #tpu.pipeline_mode<synchronous>, transform_indices = @transform_10, window_bounds = array<i64: 1, 64>}, {pipeline_mode = #tpu.pipeline_mode<synchronous>, transform_indices = @transform_11, window_bounds = array<i64: 64, 32>}, {pipeline_mode = #tpu.pipeline_mode<synchronous>, transform_indices = @transform_12, window_bounds = array<i64: 9, 32>}, {transform_indices = @transform_13, window_bounds = array<i64: 2, 8, 32>}, {transform_indices = @transform_14, window_bounds = array<i64: 2, 4, 8, 8>}]} {
    %c0 = arith.constant 0 : index
    %c0_0 = arith.constant 0 : index
    %0 = vector.load %arg13[%c0, %c0_0] : memref<9x32xf32, #tpu.memory_space<vmem>>, vector<9x32xf32>
    %1 = vector.extract_strided_slice %0 {offsets = [0, 0], sizes = [1, 32], strides = [1, 1]} : vector<9x32xf32> to vector<1x32xf32>
    %2 = vector.extract_strided_slice %0 {offsets = [1, 0], sizes = [1, 32], strides = [1, 1]} : vector<9x32xf32> to vector<1x32xf32>
    %3 = vector.extract_strided_slice %0 {offsets = [2, 0], sizes = [1, 32], strides = [1, 1]} : vector<9x32xf32> to vector<1x32xf32>
    %4 = vector.extract_strided_slice %0 {offsets = [3, 0], sizes = [1, 32], strides = [1, 1]} : vector<9x32xf32> to vector<1x32xf32>
    %5 = vector.extract_strided_slice %0 {offsets = [4, 0], sizes = [1, 32], strides = [1, 1]} : vector<9x32xf32> to vector<1x32xf32>
    %6 = vector.extract_strided_slice %0 {offsets = [5, 0], sizes = [1, 32], strides = [1, 1]} : vector<9x32xf32> to vector<1x32xf32>
    %7 = vector.extract_strided_slice %0 {offsets = [6, 0], sizes = [1, 32], strides = [1, 1]} : vector<9x32xf32> to vector<1x32xf32>
    %8 = vector.extract_strided_slice %0 {offsets = [7, 0], sizes = [1, 32], strides = [1, 1]} : vector<9x32xf32> to vector<1x32xf32>
    %9 = vector.extract_strided_slice %0 {offsets = [8, 0], sizes = [1, 32], strides = [1, 1]} : vector<9x32xf32> to vector<1x32xf32>
    %c0_1 = arith.constant 0 : index
    %c0_2 = arith.constant 0 : index
    %c0_3 = arith.constant 0 : index
    %10 = vector.load %arg1[%c0_1, %c0_2, %c0_3] : memref<2x8x32xf32, #tpu.memory_space<vmem>>, vector<2x8x32xf32>
    %11 = vector.shape_cast %10 : vector<2x8x32xf32> to vector<16x32xf32>
    %c0_4 = arith.constant 0 : index
    %c0_5 = arith.constant 0 : index
    %c0_6 = arith.constant 0 : index
    %12 = vector.load %arg2[%c0_4, %c0_5, %c0_6] : memref<2x8x32xf32, #tpu.memory_space<vmem>>, vector<2x8x32xf32>
    %13 = vector.shape_cast %12 : vector<2x8x32xf32> to vector<16x32xf32>
    %14 = tpu.iota {dimensions = array<i32: 0>} : vector<8x8xi32>
    %15 = tpu.iota {dimensions = array<i32: 1>} : vector<8x8xi32>
    %16 = arith.cmpi sge, %14, %15 : vector<8x8xi32>
    %cst = arith.constant 0.000000e+00 : f32
    %cst_7 = arith.constant -1.000000e+10 : f32
    %17 = vector.broadcast %cst : f32 to vector<8x8xf32>
    %18 = vector.broadcast %cst_7 : f32 to vector<8x8xf32>
    %19 = arith.select %16, %17, %18 : vector<8x8xi1>, vector<8x8xf32>
    %c0_8 = arith.constant 0 : index
    %c0_9 = arith.constant 0 : index
    %20 = vector.load %arg4[%c0_8, %c0_9] : memref<32x96xf32, #tpu.memory_space<vmem>>, vector<32x96xf32>
    %cst_10 = arith.constant dense<0.000000e+00> : vector<16x96xf32>
    %21 = tpu.matmul %11, %20, %cst_10 {dimension_numbers = #tpu.dot_dimension_numbers<[1], [0], [0], [1], [0, 0, 1, 1], [], []>} : vector<16x32xf32>, vector<32x96xf32>, vector<16x96xf32> -> vector<16x96xf32>
    %c0_11 = arith.constant 0 : index
    %c0_12 = arith.constant 0 : index
    %22 = vector.load %arg5[%c0_11, %c0_12] : memref<1x96xf32, #tpu.memory_space<vmem>>, vector<1x96xf32>
    %23 = vector.broadcast %22 : vector<1x96xf32> to vector<16x96xf32>
    %24 = arith.addf %21, %23 : vector<16x96xf32>
    %25 = vector.extract_strided_slice %24 {offsets = [0, 0], sizes = [8, 96], strides = [1, 1]} : vector<16x96xf32> to vector<8x96xf32>
    %26 = vector.extract_strided_slice %25 {offsets = [0, 0], sizes = [8, 24], strides = [1, 1]} : vector<8x96xf32> to vector<8x24xf32>
    %27 = vector.extract_strided_slice %25 {offsets = [0, 24], sizes = [8, 24], strides = [1, 1]} : vector<8x96xf32> to vector<8x24xf32>
    %28 = vector.extract_strided_slice %25 {offsets = [0, 48], sizes = [8, 24], strides = [1, 1]} : vector<8x96xf32> to vector<8x24xf32>
    %29 = vector.extract_strided_slice %25 {offsets = [0, 72], sizes = [8, 24], strides = [1, 1]} : vector<8x96xf32> to vector<8x24xf32>
    %30 = vector.shape_cast %26 : vector<8x24xf32> to vector<1x8x24xf32>
    %31 = vector.shape_cast %27 : vector<8x24xf32> to vector<1x8x24xf32>
    %32 = vector.shape_cast %28 : vector<8x24xf32> to vector<1x8x24xf32>
    %33 = vector.shape_cast %29 : vector<8x24xf32> to vector<1x8x24xf32>
    %34 = tpu.concatenate %30, %31, %32, %33 in 0 : vector<1x8x24xf32>, vector<1x8x24xf32>, vector<1x8x24xf32>, vector<1x8x24xf32> -> vector<4x8x24xf32>
    %35 = vector.extract_strided_slice %34 {offsets = [0, 0, 0], sizes = [4, 8, 8], strides = [1, 1, 1]} : vector<4x8x24xf32> to vector<4x8x8xf32>
    %36 = vector.extract_strided_slice %34 {offsets = [0, 0, 8], sizes = [4, 8, 8], strides = [1, 1, 1]} : vector<4x8x24xf32> to vector<4x8x8xf32>
    %37 = vector.extract_strided_slice %34 {offsets = [0, 0, 16], sizes = [4, 8, 8], strides = [1, 1, 1]} : vector<4x8x24xf32> to vector<4x8x8xf32>
    %38 = vector.shape_cast %19 : vector<8x8xf32> to vector<1x8x8xf32>
    "tpu.trace_start"() <{level = 10 : i32, message = "hqd,hkd->hqk"}> : () -> ()
    %cst_13 = arith.constant dense<0.000000e+00> : vector<4x8x8xf32>
    %39 = tpu.matmul %35, %36, %cst_13 {dimension_numbers = #tpu.dot_dimension_numbers<[2], [2], [1], [1], [0, 0, 0, 1, 1, 1], [0], [0]>} : vector<4x8x8xf32>, vector<4x8x8xf32>, vector<4x8x8xf32> -> vector<4x8x8xf32>
    "tpu.trace_stop"() : () -> ()
    %40 = vector.broadcast %38 : vector<1x8x8xf32> to vector<4x8x8xf32>
    %41 = arith.addf %39, %40 : vector<4x8x8xf32>
    %cst_14 = arith.constant dense<0xFF800000> : vector<4x8xf32>
    %42 = vector.multi_reduction <maximumf>, %41, %cst_14 [2] : vector<4x8x8xf32> to vector<4x8xf32>
    %43 = vector.shape_cast %42 : vector<4x8xf32> to vector<4x8x1xf32>
    %44 = vector.broadcast %43 : vector<4x8x1xf32> to vector<4x8x8xf32>
    %45 = arith.subf %41, %44 : vector<4x8x8xf32>
    %46 = math.exp %45 : vector<4x8x8xf32>
    %cst_15 = arith.constant dense<0.000000e+00> : vector<4x8xf32>
    %47 = vector.multi_reduction <add>, %46, %cst_15 [2] : vector<4x8x8xf32> to vector<4x8xf32>
    %48 = vector.shape_cast %47 : vector<4x8xf32> to vector<4x8x1xf32>
    %cst_16 = arith.constant 1.000000e+00 : f32
    %49 = vector.broadcast %cst_16 : f32 to vector<4x8x1xf32>
    %50 = arith.divf %49, %48 : vector<4x8x1xf32>
    %51 = vector.broadcast %50 : vector<4x8x1xf32> to vector<4x8x8xf32>
    %52 = arith.mulf %46, %51 : vector<4x8x8xf32>
    "tpu.trace_start"() <{level = 10 : i32, message = "hqk,hkd->hqd"}> : () -> ()
    %cst_17 = arith.constant dense<0.000000e+00> : vector<4x8x8xf32>
    %53 = tpu.matmul %52, %37, %cst_17 {dimension_numbers = #tpu.dot_dimension_numbers<[2], [1], [1], [2], [0, 0, 0, 1, 1, 2], [0], [0]>} : vector<4x8x8xf32>, vector<4x8x8xf32>, vector<4x8x8xf32> -> vector<4x8x8xf32>
    "tpu.trace_stop"() : () -> ()
    %54 = vector.extract_strided_slice %53 {offsets = [0, 0, 0], sizes = [1, 8, 8], strides = [1, 1, 1]} : vector<4x8x8xf32> to vector<1x8x8xf32>
    %55 = vector.shape_cast %54 : vector<1x8x8xf32> to vector<8x8xf32>
    %56 = vector.extract_strided_slice %53 {offsets = [1, 0, 0], sizes = [1, 8, 8], strides = [1, 1, 1]} : vector<4x8x8xf32> to vector<1x8x8xf32>
    %57 = vector.shape_cast %56 : vector<1x8x8xf32> to vector<8x8xf32>
    %58 = vector.extract_strided_slice %53 {offsets = [2, 0, 0], sizes = [1, 8, 8], strides = [1, 1, 1]} : vector<4x8x8xf32> to vector<1x8x8xf32>
    %59 = vector.shape_cast %58 : vector<1x8x8xf32> to vector<8x8xf32>
    %60 = vector.extract_strided_slice %53 {offsets = [3, 0, 0], sizes = [1, 8, 8], strides = [1, 1, 1]} : vector<4x8x8xf32> to vector<1x8x8xf32>
    %61 = vector.shape_cast %60 : vector<1x8x8xf32> to vector<8x8xf32>
    %62 = tpu.concatenate %55, %57, %59, %61 in 1 : vector<8x8xf32>, vector<8x8xf32>, vector<8x8xf32>, vector<8x8xf32> -> vector<8x32xf32>
    %63 = vector.extract_strided_slice %24 {offsets = [8, 0], sizes = [8, 96], strides = [1, 1]} : vector<16x96xf32> to vector<8x96xf32>
    %64 = vector.extract_strided_slice %63 {offsets = [0, 0], sizes = [8, 24], strides = [1, 1]} : vector<8x96xf32> to vector<8x24xf32>
    %65 = vector.extract_strided_slice %63 {offsets = [0, 24], sizes = [8, 24], strides = [1, 1]} : vector<8x96xf32> to vector<8x24xf32>
    %66 = vector.extract_strided_slice %63 {offsets = [0, 48], sizes = [8, 24], strides = [1, 1]} : vector<8x96xf32> to vector<8x24xf32>
    %67 = vector.extract_strided_slice %63 {offsets = [0, 72], sizes = [8, 24], strides = [1, 1]} : vector<8x96xf32> to vector<8x24xf32>
    %68 = vector.shape_cast %64 : vector<8x24xf32> to vector<1x8x24xf32>
    %69 = vector.shape_cast %65 : vector<8x24xf32> to vector<1x8x24xf32>
    %70 = vector.shape_cast %66 : vector<8x24xf32> to vector<1x8x24xf32>
    %71 = vector.shape_cast %67 : vector<8x24xf32> to vector<1x8x24xf32>
    %72 = tpu.concatenate %68, %69, %70, %71 in 0 : vector<1x8x24xf32>, vector<1x8x24xf32>, vector<1x8x24xf32>, vector<1x8x24xf32> -> vector<4x8x24xf32>
    %73 = vector.extract_strided_slice %72 {offsets = [0, 0, 0], sizes = [4, 8, 8], strides = [1, 1, 1]} : vector<4x8x24xf32> to vector<4x8x8xf32>
    %74 = vector.extract_strided_slice %72 {offsets = [0, 0, 8], sizes = [4, 8, 8], strides = [1, 1, 1]} : vector<4x8x24xf32> to vector<4x8x8xf32>
    %75 = vector.extract_strided_slice %72 {offsets = [0, 0, 16], sizes = [4, 8, 8], strides = [1, 1, 1]} : vector<4x8x24xf32> to vector<4x8x8xf32>
    %76 = vector.shape_cast %19 : vector<8x8xf32> to vector<1x8x8xf32>
    "tpu.trace_start"() <{level = 10 : i32, message = "hqd,hkd->hqk"}> : () -> ()
    %cst_18 = arith.constant dense<0.000000e+00> : vector<4x8x8xf32>
    %77 = tpu.matmul %73, %74, %cst_18 {dimension_numbers = #tpu.dot_dimension_numbers<[2], [2], [1], [1], [0, 0, 0, 1, 1, 1], [0], [0]>} : vector<4x8x8xf32>, vector<4x8x8xf32>, vector<4x8x8xf32> -> vector<4x8x8xf32>
    "tpu.trace_stop"() : () -> ()
    %78 = vector.broadcast %76 : vector<1x8x8xf32> to vector<4x8x8xf32>
    %79 = arith.addf %77, %78 : vector<4x8x8xf32>
    %cst_19 = arith.constant dense<0xFF800000> : vector<4x8xf32>
    %80 = vector.multi_reduction <maximumf>, %79, %cst_19 [2] : vector<4x8x8xf32> to vector<4x8xf32>
    %81 = vector.shape_cast %80 : vector<4x8xf32> to vector<4x8x1xf32>
    %82 = vector.broadcast %81 : vector<4x8x1xf32> to vector<4x8x8xf32>
    %83 = arith.subf %79, %82 : vector<4x8x8xf32>
    %84 = math.exp %83 : vector<4x8x8xf32>
    %cst_20 = arith.constant dense<0.000000e+00> : vector<4x8xf32>
    %85 = vector.multi_reduction <add>, %84, %cst_20 [2] : vector<4x8x8xf32> to vector<4x8xf32>
    %86 = vector.shape_cast %85 : vector<4x8xf32> to vector<4x8x1xf32>
    %cst_21 = arith.constant 1.000000e+00 : f32
    %87 = vector.broadcast %cst_21 : f32 to vector<4x8x1xf32>
    %88 = arith.divf %87, %86 : vector<4x8x1xf32>
    %89 = vector.broadcast %88 : vector<4x8x1xf32> to vector<4x8x8xf32>
    %90 = arith.mulf %84, %89 : vector<4x8x8xf32>
    "tpu.trace_start"() <{level = 10 : i32, message = "hqk,hkd->hqd"}> : () -> ()
    %cst_22 = arith.constant dense<0.000000e+00> : vector<4x8x8xf32>
    %91 = tpu.matmul %90, %75, %cst_22 {dimension_numbers = #tpu.dot_dimension_numbers<[2], [1], [1], [2], [0, 0, 0, 1, 1, 2], [0], [0]>} : vector<4x8x8xf32>, vector<4x8x8xf32>, vector<4x8x8xf32> -> vector<4x8x8xf32>
    "tpu.trace_stop"() : () -> ()
    %92 = vector.extract_strided_slice %91 {offsets = [0, 0, 0], sizes = [1, 8, 8], strides = [1, 1, 1]} : vector<4x8x8xf32> to vector<1x8x8xf32>
    %93 = vector.shape_cast %92 : vector<1x8x8xf32> to vector<8x8xf32>
    %94 = vector.extract_strided_slice %91 {offsets = [1, 0, 0], sizes = [1, 8, 8], strides = [1, 1, 1]} : vector<4x8x8xf32> to vector<1x8x8xf32>
    %95 = vector.shape_cast %94 : vector<1x8x8xf32> to vector<8x8xf32>
    %96 = vector.extract_strided_slice %91 {offsets = [2, 0, 0], sizes = [1, 8, 8], strides = [1, 1, 1]} : vector<4x8x8xf32> to vector<1x8x8xf32>
    %97 = vector.shape_cast %96 : vector<1x8x8xf32> to vector<8x8xf32>
    %98 = vector.extract_strided_slice %91 {offsets = [3, 0, 0], sizes = [1, 8, 8], strides = [1, 1, 1]} : vector<4x8x8xf32> to vector<1x8x8xf32>
    %99 = vector.shape_cast %98 : vector<1x8x8xf32> to vector<8x8xf32>
    %100 = tpu.concatenate %93, %95, %97, %99 in 1 : vector<8x8xf32>, vector<8x8xf32>, vector<8x8xf32>, vector<8x8xf32> -> vector<8x32xf32>
    %101 = tpu.concatenate %62, %100 in 0 : vector<8x32xf32>, vector<8x32xf32> -> vector<16x32xf32>
    %c0_23 = arith.constant 0 : index
    %c0_24 = arith.constant 0 : index
    %102 = vector.load %arg6[%c0_23, %c0_24] : memref<32x32xf32, #tpu.memory_space<vmem>>, vector<32x32xf32>
    %cst_25 = arith.constant dense<0.000000e+00> : vector<16x32xf32>
    %103 = tpu.matmul %101, %102, %cst_25 {dimension_numbers = #tpu.dot_dimension_numbers<[1], [0], [0], [1], [0, 0, 1, 1], [], []>} : vector<16x32xf32>, vector<32x32xf32>, vector<16x32xf32> -> vector<16x32xf32>
    %104 = vector.broadcast %1 : vector<1x32xf32> to vector<16x32xf32>
    %105 = arith.addf %103, %104 : vector<16x32xf32>
    %106 = arith.addf %11, %105 : vector<16x32xf32>
    %cst_26 = arith.constant dense<0.000000e+00> : vector<16xf32>
    %107 = vector.multi_reduction <add>, %106, %cst_26 [1] : vector<16x32xf32> to vector<16xf32>
    %108 = vector.shape_cast %107 : vector<16xf32> to vector<16x1xf32>
    %cst_27 = arith.constant 3.200000e+01 : f32
    %109 = vector.broadcast %cst_27 : f32 to vector<16x1xf32>
    %110 = arith.divf %108, %109 : vector<16x1xf32>
    %111 = vector.broadcast %110 : vector<16x1xf32> to vector<16x32xf32>
    %112 = arith.subf %106, %111 : vector<16x32xf32>
    %113 = arith.mulf %112, %112 : vector<16x32xf32>
    %cst_28 = arith.constant dense<0.000000e+00> : vector<16xf32>
    %114 = vector.multi_reduction <add>, %113, %cst_28 [1] : vector<16x32xf32> to vector<16xf32>
    %115 = vector.shape_cast %114 : vector<16xf32> to vector<16x1xf32>
    %cst_29 = arith.constant 3.200000e+01 : f32
    %116 = vector.broadcast %cst_29 : f32 to vector<16x1xf32>
    %117 = arith.divf %115, %116 : vector<16x1xf32>
    %118 = vector.broadcast %110 : vector<16x1xf32> to vector<16x32xf32>
    %119 = arith.subf %106, %118 : vector<16x32xf32>
    %cst_30 = arith.constant 9.99999974E-6 : f32
    %120 = vector.broadcast %cst_30 : f32 to vector<16x1xf32>
    %121 = arith.addf %117, %120 : vector<16x1xf32>
    %122 = math.rsqrt %121 : vector<16x1xf32>
    %123 = vector.broadcast %122 : vector<16x1xf32> to vector<16x32xf32>
    %124 = arith.mulf %119, %123 : vector<16x32xf32>
    %125 = vector.broadcast %2 : vector<1x32xf32> to vector<16x32xf32>
    %126 = arith.mulf %124, %125 : vector<16x32xf32>
    %127 = vector.broadcast %3 : vector<1x32xf32> to vector<16x32xf32>
    %128 = arith.addf %126, %127 : vector<16x32xf32>
    %c0_31 = arith.constant 0 : index
    %c0_32 = arith.constant 0 : index
    %129 = vector.load %arg7[%c0_31, %c0_32] : memref<32x96xf32, #tpu.memory_space<vmem>>, vector<32x32xf32>
    %cst_33 = arith.constant dense<0.000000e+00> : vector<16x32xf32>
    %130 = tpu.matmul %128, %129, %cst_33 {dimension_numbers = #tpu.dot_dimension_numbers<[1], [0], [0], [1], [0, 0, 1, 1], [], []>} : vector<16x32xf32>, vector<32x32xf32>, vector<16x32xf32> -> vector<16x32xf32>
    %c0_34 = arith.constant 0 : index
    %c0_35 = arith.constant 0 : index
    %131 = vector.load %arg8[%c0_34, %c0_35] : memref<1x96xf32, #tpu.memory_space<vmem>>, vector<1x32xf32>
    %132 = vector.broadcast %131 : vector<1x32xf32> to vector<16x32xf32>
    %133 = arith.addf %130, %132 : vector<16x32xf32>
    %c0_36 = arith.constant 0 : index
    %c32 = arith.constant 32 : index
    %134 = vector.load %arg7[%c0_36, %c32] : memref<32x96xf32, #tpu.memory_space<vmem>>, vector<32x64xf32>
    %cst_37 = arith.constant dense<0.000000e+00> : vector<16x64xf32>
    %135 = tpu.matmul %13, %134, %cst_37 {dimension_numbers = #tpu.dot_dimension_numbers<[1], [0], [0], [1], [0, 0, 1, 1], [], []>} : vector<16x32xf32>, vector<32x64xf32>, vector<16x64xf32> -> vector<16x64xf32>
    %c0_38 = arith.constant 0 : index
    %c32_39 = arith.constant 32 : index
    %136 = vector.load %arg8[%c0_38, %c32_39] : memref<1x96xf32, #tpu.memory_space<vmem>>, vector<1x64xf32>
    %137 = vector.broadcast %136 : vector<1x64xf32> to vector<16x64xf32>
    %138 = arith.addf %135, %137 : vector<16x64xf32>
    %139 = vector.extract_strided_slice %133 {offsets = [0, 0], sizes = [8, 32], strides = [1, 1]} : vector<16x32xf32> to vector<8x32xf32>
    %140 = vector.extract_strided_slice %138 {offsets = [0, 0], sizes = [8, 64], strides = [1, 1]} : vector<16x64xf32> to vector<8x64xf32>
    %141 = vector.extract_strided_slice %139 {offsets = [0, 0], sizes = [8, 8], strides = [1, 1]} : vector<8x32xf32> to vector<8x8xf32>
    %142 = vector.extract_strided_slice %139 {offsets = [0, 8], sizes = [8, 8], strides = [1, 1]} : vector<8x32xf32> to vector<8x8xf32>
    %143 = vector.extract_strided_slice %139 {offsets = [0, 16], sizes = [8, 8], strides = [1, 1]} : vector<8x32xf32> to vector<8x8xf32>
    %144 = vector.extract_strided_slice %139 {offsets = [0, 24], sizes = [8, 8], strides = [1, 1]} : vector<8x32xf32> to vector<8x8xf32>
    %145 = vector.shape_cast %141 : vector<8x8xf32> to vector<1x8x8xf32>
    %146 = vector.shape_cast %142 : vector<8x8xf32> to vector<1x8x8xf32>
    %147 = vector.shape_cast %143 : vector<8x8xf32> to vector<1x8x8xf32>
    %148 = vector.shape_cast %144 : vector<8x8xf32> to vector<1x8x8xf32>
    %149 = tpu.concatenate %145, %146, %147, %148 in 0 : vector<1x8x8xf32>, vector<1x8x8xf32>, vector<1x8x8xf32>, vector<1x8x8xf32> -> vector<4x8x8xf32>
    %150 = vector.extract_strided_slice %140 {offsets = [0, 0], sizes = [8, 16], strides = [1, 1]} : vector<8x64xf32> to vector<8x16xf32>
    %151 = vector.extract_strided_slice %140 {offsets = [0, 16], sizes = [8, 16], strides = [1, 1]} : vector<8x64xf32> to vector<8x16xf32>
    %152 = vector.extract_strided_slice %140 {offsets = [0, 32], sizes = [8, 16], strides = [1, 1]} : vector<8x64xf32> to vector<8x16xf32>
    %153 = vector.extract_strided_slice %140 {offsets = [0, 48], sizes = [8, 16], strides = [1, 1]} : vector<8x64xf32> to vector<8x16xf32>
    %154 = vector.shape_cast %150 : vector<8x16xf32> to vector<1x8x16xf32>
    %155 = vector.shape_cast %151 : vector<8x16xf32> to vector<1x8x16xf32>
    %156 = vector.shape_cast %152 : vector<8x16xf32> to vector<1x8x16xf32>
    %157 = vector.shape_cast %153 : vector<8x16xf32> to vector<1x8x16xf32>
    %158 = tpu.concatenate %154, %155, %156, %157 in 0 : vector<1x8x16xf32>, vector<1x8x16xf32>, vector<1x8x16xf32>, vector<1x8x16xf32> -> vector<4x8x16xf32>
    %159 = vector.extract_strided_slice %158 {offsets = [0, 0, 0], sizes = [4, 8, 8], strides = [1, 1, 1]} : vector<4x8x16xf32> to vector<4x8x8xf32>
    %160 = vector.extract_strided_slice %158 {offsets = [0, 0, 8], sizes = [4, 8, 8], strides = [1, 1, 1]} : vector<4x8x16xf32> to vector<4x8x8xf32>
    %c0_40 = arith.constant 0 : index
    %c0_41 = arith.constant 0 : index
    %c0_42 = arith.constant 0 : index
    %161 = vector.load %arg3[%c0_40, %c0_41, %c0_42] : memref<2x1x8xf32, #tpu.memory_space<vmem>>, vector<1x1x8xf32>
    %162 = vector.shape_cast %161 : vector<1x1x8xf32> to vector<1x8xf32>
    %163 = vector.shape_cast %162 : vector<1x8xf32> to vector<1x1x8xf32>
    "tpu.trace_start"() <{level = 10 : i32, message = "hqd,hkd->hqk"}> : () -> ()
    %cst_43 = arith.constant dense<0.000000e+00> : vector<4x8x8xf32>
    %164 = tpu.matmul %149, %159, %cst_43 {dimension_numbers = #tpu.dot_dimension_numbers<[2], [2], [1], [1], [0, 0, 0, 1, 1, 1], [0], [0]>} : vector<4x8x8xf32>, vector<4x8x8xf32>, vector<4x8x8xf32> -> vector<4x8x8xf32>
    "tpu.trace_stop"() : () -> ()
    %165 = vector.broadcast %163 : vector<1x1x8xf32> to vector<4x8x8xf32>
    %166 = arith.addf %164, %165 : vector<4x8x8xf32>
    %cst_44 = arith.constant dense<0xFF800000> : vector<4x8xf32>
    %167 = vector.multi_reduction <maximumf>, %166, %cst_44 [2] : vector<4x8x8xf32> to vector<4x8xf32>
    %168 = vector.shape_cast %167 : vector<4x8xf32> to vector<4x8x1xf32>
    %169 = vector.broadcast %168 : vector<4x8x1xf32> to vector<4x8x8xf32>
    %170 = arith.subf %166, %169 : vector<4x8x8xf32>
    %171 = math.exp %170 : vector<4x8x8xf32>
    %cst_45 = arith.constant dense<0.000000e+00> : vector<4x8xf32>
    %172 = vector.multi_reduction <add>, %171, %cst_45 [2] : vector<4x8x8xf32> to vector<4x8xf32>
    %173 = vector.shape_cast %172 : vector<4x8xf32> to vector<4x8x1xf32>
    %cst_46 = arith.constant 1.000000e+00 : f32
    %174 = vector.broadcast %cst_46 : f32 to vector<4x8x1xf32>
    %175 = arith.divf %174, %173 : vector<4x8x1xf32>
    %176 = vector.broadcast %175 : vector<4x8x1xf32> to vector<4x8x8xf32>
    %177 = arith.mulf %171, %176 : vector<4x8x8xf32>
    "tpu.trace_start"() <{level = 10 : i32, message = "hqk,hkd->hqd"}> : () -> ()
    %cst_47 = arith.constant dense<0.000000e+00> : vector<4x8x8xf32>
    %178 = tpu.matmul %177, %160, %cst_47 {dimension_numbers = #tpu.dot_dimension_numbers<[2], [1], [1], [2], [0, 0, 0, 1, 1, 2], [0], [0]>} : vector<4x8x8xf32>, vector<4x8x8xf32>, vector<4x8x8xf32> -> vector<4x8x8xf32>
    "tpu.trace_stop"() : () -> ()
    %c0_48 = arith.constant 0 : index
    %c0_49 = arith.constant 0 : index
    %c0_50 = arith.constant 0 : index
    %c0_51 = arith.constant 0 : index
    %179 = vector.load %arg15[%c0_48, %c0_49, %c0_50, %c0_51] : memref<2x4x8x8xf32, #tpu.memory_space<vmem>>, vector<1x4x8x8xf32>
    %180 = vector.shape_cast %179 : vector<1x4x8x8xf32> to vector<4x8x8xf32>
    %181 = vector.shape_cast %177 : vector<4x8x8xf32> to vector<1x4x8x8xf32>
    tpu.vector_store %arg15[%c0_48, %c0_49, %c0_50, %c0_51], %181 {strides = array<i32>} : memref<2x4x8x8xf32, #tpu.memory_space<vmem>>, vector<1x4x8x8xf32>,
    %182 = vector.extract_strided_slice %178 {offsets = [0, 0, 0], sizes = [1, 8, 8], strides = [1, 1, 1]} : vector<4x8x8xf32> to vector<1x8x8xf32>
    %183 = vector.shape_cast %182 : vector<1x8x8xf32> to vector<8x8xf32>
    %184 = vector.extract_strided_slice %178 {offsets = [1, 0, 0], sizes = [1, 8, 8], strides = [1, 1, 1]} : vector<4x8x8xf32> to vector<1x8x8xf32>
    %185 = vector.shape_cast %184 : vector<1x8x8xf32> to vector<8x8xf32>
    %186 = vector.extract_strided_slice %178 {offsets = [2, 0, 0], sizes = [1, 8, 8], strides = [1, 1, 1]} : vector<4x8x8xf32> to vector<1x8x8xf32>
    %187 = vector.shape_cast %186 : vector<1x8x8xf32> to vector<8x8xf32>
    %188 = vector.extract_strided_slice %178 {offsets = [3, 0, 0], sizes = [1, 8, 8], strides = [1, 1, 1]} : vector<4x8x8xf32> to vector<1x8x8xf32>
    %189 = vector.shape_cast %188 : vector<1x8x8xf32> to vector<8x8xf32>
    %190 = tpu.concatenate %183, %185, %187, %189 in 1 : vector<8x8xf32>, vector<8x8xf32>, vector<8x8xf32>, vector<8x8xf32> -> vector<8x32xf32>
    %191 = vector.extract_strided_slice %133 {offsets = [8, 0], sizes = [8, 32], strides = [1, 1]} : vector<16x32xf32> to vector<8x32xf32>
    %192 = vector.extract_strided_slice %138 {offsets = [8, 0], sizes = [8, 64], strides = [1, 1]} : vector<16x64xf32> to vector<8x64xf32>
    %193 = vector.extract_strided_slice %191 {offsets = [0, 0], sizes = [8, 8], strides = [1, 1]} : vector<8x32xf32> to vector<8x8xf32>
    %194 = vector.extract_strided_slice %191 {offsets = [0, 8], sizes = [8, 8], strides = [1, 1]} : vector<8x32xf32> to vector<8x8xf32>
    %195 = vector.extract_strided_slice %191 {offsets = [0, 16], sizes = [8, 8], strides = [1, 1]} : vector<8x32xf32> to vector<8x8xf32>
    %196 = vector.extract_strided_slice %191 {offsets = [0, 24], sizes = [8, 8], strides = [1, 1]} : vector<8x32xf32> to vector<8x8xf32>
    %197 = vector.shape_cast %193 : vector<8x8xf32> to vector<1x8x8xf32>
    %198 = vector.shape_cast %194 : vector<8x8xf32> to vector<1x8x8xf32>
    %199 = vector.shape_cast %195 : vector<8x8xf32> to vector<1x8x8xf32>
    %200 = vector.shape_cast %196 : vector<8x8xf32> to vector<1x8x8xf32>
    %201 = tpu.concatenate %197, %198, %199, %200 in 0 : vector<1x8x8xf32>, vector<1x8x8xf32>, vector<1x8x8xf32>, vector<1x8x8xf32> -> vector<4x8x8xf32>
    %202 = vector.extract_strided_slice %192 {offsets = [0, 0], sizes = [8, 16], strides = [1, 1]} : vector<8x64xf32> to vector<8x16xf32>
    %203 = vector.extract_strided_slice %192 {offsets = [0, 16], sizes = [8, 16], strides = [1, 1]} : vector<8x64xf32> to vector<8x16xf32>
    %204 = vector.extract_strided_slice %192 {offsets = [0, 32], sizes = [8, 16], strides = [1, 1]} : vector<8x64xf32> to vector<8x16xf32>
    %205 = vector.extract_strided_slice %192 {offsets = [0, 48], sizes = [8, 16], strides = [1, 1]} : vector<8x64xf32> to vector<8x16xf32>
    %206 = vector.shape_cast %202 : vector<8x16xf32> to vector<1x8x16xf32>
    %207 = vector.shape_cast %203 : vector<8x16xf32> to vector<1x8x16xf32>
    %208 = vector.shape_cast %204 : vector<8x16xf32> to vector<1x8x16xf32>
    %209 = vector.shape_cast %205 : vector<8x16xf32> to vector<1x8x16xf32>
    %210 = tpu.concatenate %206, %207, %208, %209 in 0 : vector<1x8x16xf32>, vector<1x8x16xf32>, vector<1x8x16xf32>, vector<1x8x16xf32> -> vector<4x8x16xf32>
    %211 = vector.extract_strided_slice %210 {offsets = [0, 0, 0], sizes = [4, 8, 8], strides = [1, 1, 1]} : vector<4x8x16xf32> to vector<4x8x8xf32>
    %212 = vector.extract_strided_slice %210 {offsets = [0, 0, 8], sizes = [4, 8, 8], strides = [1, 1, 1]} : vector<4x8x16xf32> to vector<4x8x8xf32>
    %c1 = arith.constant 1 : index
    %c0_52 = arith.constant 0 : index
    %c0_53 = arith.constant 0 : index
    %213 = vector.load %arg3[%c1, %c0_52, %c0_53] : memref<2x1x8xf32, #tpu.memory_space<vmem>>, vector<1x1x8xf32>
    %214 = vector.shape_cast %213 : vector<1x1x8xf32> to vector<1x8xf32>
    %215 = vector.shape_cast %214 : vector<1x8xf32> to vector<1x1x8xf32>
    "tpu.trace_start"() <{level = 10 : i32, message = "hqd,hkd->hqk"}> : () -> ()
    %cst_54 = arith.constant dense<0.000000e+00> : vector<4x8x8xf32>
    %216 = tpu.matmul %201, %211, %cst_54 {dimension_numbers = #tpu.dot_dimension_numbers<[2], [2], [1], [1], [0, 0, 0, 1, 1, 1], [0], [0]>} : vector<4x8x8xf32>, vector<4x8x8xf32>, vector<4x8x8xf32> -> vector<4x8x8xf32>
    "tpu.trace_stop"() : () -> ()
    %217 = vector.broadcast %215 : vector<1x1x8xf32> to vector<4x8x8xf32>
    %218 = arith.addf %216, %217 : vector<4x8x8xf32>
    %cst_55 = arith.constant dense<0xFF800000> : vector<4x8xf32>
    %219 = vector.multi_reduction <maximumf>, %218, %cst_55 [2] : vector<4x8x8xf32> to vector<4x8xf32>
    %220 = vector.shape_cast %219 : vector<4x8xf32> to vector<4x8x1xf32>
    %221 = vector.broadcast %220 : vector<4x8x1xf32> to vector<4x8x8xf32>
    %222 = arith.subf %218, %221 : vector<4x8x8xf32>
    %223 = math.exp %222 : vector<4x8x8xf32>
    %cst_56 = arith.constant dense<0.000000e+00> : vector<4x8xf32>
    %224 = vector.multi_reduction <add>, %223, %cst_56 [2] : vector<4x8x8xf32> to vector<4x8xf32>
    %225 = vector.shape_cast %224 : vector<4x8xf32> to vector<4x8x1xf32>
    %cst_57 = arith.constant 1.000000e+00 : f32
    %226 = vector.broadcast %cst_57 : f32 to vector<4x8x1xf32>
    %227 = arith.divf %226, %225 : vector<4x8x1xf32>
    %228 = vector.broadcast %227 : vector<4x8x1xf32> to vector<4x8x8xf32>
    %229 = arith.mulf %223, %228 : vector<4x8x8xf32>
    "tpu.trace_start"() <{level = 10 : i32, message = "hqk,hkd->hqd"}> : () -> ()
    %cst_58 = arith.constant dense<0.000000e+00> : vector<4x8x8xf32>
    %230 = tpu.matmul %229, %212, %cst_58 {dimension_numbers = #tpu.dot_dimension_numbers<[2], [1], [1], [2], [0, 0, 0, 1, 1, 2], [0], [0]>} : vector<4x8x8xf32>, vector<4x8x8xf32>, vector<4x8x8xf32> -> vector<4x8x8xf32>
    "tpu.trace_stop"() : () -> ()
    %c1_59 = arith.constant 1 : index
    %c0_60 = arith.constant 0 : index
    %c0_61 = arith.constant 0 : index
    %c0_62 = arith.constant 0 : index
    %231 = vector.load %arg15[%c1_59, %c0_60, %c0_61, %c0_62] : memref<2x4x8x8xf32, #tpu.memory_space<vmem>>, vector<1x4x8x8xf32>
    %232 = vector.shape_cast %231 : vector<1x4x8x8xf32> to vector<4x8x8xf32>
    %233 = vector.shape_cast %229 : vector<4x8x8xf32> to vector<1x4x8x8xf32>
    tpu.vector_store %arg15[%c1_59, %c0_60, %c0_61, %c0_62], %233 {strides = array<i32>} : memref<2x4x8x8xf32, #tpu.memory_space<vmem>>, vector<1x4x8x8xf32>,
    %234 = vector.extract_strided_slice %230 {offsets = [0, 0, 0], sizes = [1, 8, 8], strides = [1, 1, 1]} : vector<4x8x8xf32> to vector<1x8x8xf32>
    %235 = vector.shape_cast %234 : vector<1x8x8xf32> to vector<8x8xf32>
    %236 = vector.extract_strided_slice %230 {offsets = [1, 0, 0], sizes = [1, 8, 8], strides = [1, 1, 1]} : vector<4x8x8xf32> to vector<1x8x8xf32>
    %237 = vector.shape_cast %236 : vector<1x8x8xf32> to vector<8x8xf32>
    %238 = vector.extract_strided_slice %230 {offsets = [2, 0, 0], sizes = [1, 8, 8], strides = [1, 1, 1]} : vector<4x8x8xf32> to vector<1x8x8xf32>
    %239 = vector.shape_cast %238 : vector<1x8x8xf32> to vector<8x8xf32>
    %240 = vector.extract_strided_slice %230 {offsets = [3, 0, 0], sizes = [1, 8, 8], strides = [1, 1, 1]} : vector<4x8x8xf32> to vector<1x8x8xf32>
    %241 = vector.shape_cast %240 : vector<1x8x8xf32> to vector<8x8xf32>
    %242 = tpu.concatenate %235, %237, %239, %241 in 1 : vector<8x8xf32>, vector<8x8xf32>, vector<8x8xf32>, vector<8x8xf32> -> vector<8x32xf32>
    %243 = tpu.concatenate %190, %242 in 0 : vector<8x32xf32>, vector<8x32xf32> -> vector<16x32xf32>
    %c0_63 = arith.constant 0 : index
    %c0_64 = arith.constant 0 : index
    %244 = vector.load %arg9[%c0_63, %c0_64] : memref<32x32xf32, #tpu.memory_space<vmem>>, vector<32x32xf32>
    %cst_65 = arith.constant dense<0.000000e+00> : vector<16x32xf32>
    %245 = tpu.matmul %243, %244, %cst_65 {dimension_numbers = #tpu.dot_dimension_numbers<[1], [0], [0], [1], [0, 0, 1, 1], [], []>} : vector<16x32xf32>, vector<32x32xf32>, vector<16x32xf32> -> vector<16x32xf32>
    %246 = vector.broadcast %4 : vector<1x32xf32> to vector<16x32xf32>
    %247 = arith.addf %245, %246 : vector<16x32xf32>
    %248 = arith.addf %128, %247 : vector<16x32xf32>
    %cst_66 = arith.constant dense<0.000000e+00> : vector<16xf32>
    %249 = vector.multi_reduction <add>, %248, %cst_66 [1] : vector<16x32xf32> to vector<16xf32>
    %250 = vector.shape_cast %249 : vector<16xf32> to vector<16x1xf32>
    %cst_67 = arith.constant 3.200000e+01 : f32
    %251 = vector.broadcast %cst_67 : f32 to vector<16x1xf32>
    %252 = arith.divf %250, %251 : vector<16x1xf32>
    %253 = vector.broadcast %252 : vector<16x1xf32> to vector<16x32xf32>
    %254 = arith.subf %248, %253 : vector<16x32xf32>
    %255 = arith.mulf %254, %254 : vector<16x32xf32>
    %cst_68 = arith.constant dense<0.000000e+00> : vector<16xf32>
    %256 = vector.multi_reduction <add>, %255, %cst_68 [1] : vector<16x32xf32> to vector<16xf32>
    %257 = vector.shape_cast %256 : vector<16xf32> to vector<16x1xf32>
    %cst_69 = arith.constant 3.200000e+01 : f32
    %258 = vector.broadcast %cst_69 : f32 to vector<16x1xf32>
    %259 = arith.divf %257, %258 : vector<16x1xf32>
    %260 = vector.broadcast %252 : vector<16x1xf32> to vector<16x32xf32>
    %261 = arith.subf %248, %260 : vector<16x32xf32>
    %cst_70 = arith.constant 9.99999974E-6 : f32
    %262 = vector.broadcast %cst_70 : f32 to vector<16x1xf32>
    %263 = arith.addf %259, %262 : vector<16x1xf32>
    %264 = math.rsqrt %263 : vector<16x1xf32>
    %265 = vector.broadcast %264 : vector<16x1xf32> to vector<16x32xf32>
    %266 = arith.mulf %261, %265 : vector<16x32xf32>
    %267 = vector.broadcast %5 : vector<1x32xf32> to vector<16x32xf32>
    %268 = arith.mulf %266, %267 : vector<16x32xf32>
    %269 = vector.broadcast %6 : vector<1x32xf32> to vector<16x32xf32>
    %270 = arith.addf %268, %269 : vector<16x32xf32>
    %c0_71 = arith.constant 0 : index
    %c0_72 = arith.constant 0 : index
    %271 = vector.load %arg10[%c0_71, %c0_72] : memref<32x64xf32, #tpu.memory_space<vmem>>, vector<32x64xf32>
    %cst_73 = arith.constant dense<0.000000e+00> : vector<16x64xf32>
    %272 = tpu.matmul %270, %271, %cst_73 {dimension_numbers = #tpu.dot_dimension_numbers<[1], [0], [0], [1], [0, 0, 1, 1], [], []>} : vector<16x32xf32>, vector<32x64xf32>, vector<16x64xf32> -> vector<16x64xf32>
    %c0_74 = arith.constant 0 : index
    %c0_75 = arith.constant 0 : index
    %273 = vector.load %arg11[%c0_74, %c0_75] : memref<1x64xf32, #tpu.memory_space<vmem>>, vector<1x64xf32>
    %274 = vector.broadcast %273 : vector<1x64xf32> to vector<16x64xf32>
    %275 = arith.addf %272, %274 : vector<16x64xf32>
    %cst_76 = arith.constant 0.000000e+00 : f32
    %276 = vector.broadcast %cst_76 : f32 to vector<16x64xf32>
    %277 = arith.maximumf %275, %276 : vector<16x64xf32>
    %c0_77 = arith.constant 0 : index
    %c0_78 = arith.constant 0 : index
    %278 = vector.load %arg12[%c0_77, %c0_78] : memref<64x32xf32, #tpu.memory_space<vmem>>, vector<64x32xf32>
    %cst_79 = arith.constant dense<0.000000e+00> : vector<16x32xf32>
    %279 = tpu.matmul %277, %278, %cst_79 {dimension_numbers = #tpu.dot_dimension_numbers<[1], [0], [0], [1], [0, 0, 1, 1], [], []>} : vector<16x64xf32>, vector<64x32xf32>, vector<16x32xf32> -> vector<16x32xf32>
    %280 = vector.broadcast %7 : vector<1x32xf32> to vector<16x32xf32>
    %281 = arith.addf %279, %280 : vector<16x32xf32>
    %282 = arith.addf %270, %281 : vector<16x32xf32>
    %cst_80 = arith.constant dense<0.000000e+00> : vector<16xf32>
    %283 = vector.multi_reduction <add>, %282, %cst_80 [1] : vector<16x32xf32> to vector<16xf32>
    %284 = vector.shape_cast %283 : vector<16xf32> to vector<16x1xf32>
    %cst_81 = arith.constant 3.200000e+01 : f32
    %285 = vector.broadcast %cst_81 : f32 to vector<16x1xf32>
    %286 = arith.divf %284, %285 : vector<16x1xf32>
    %287 = vector.broadcast %286 : vector<16x1xf32> to vector<16x32xf32>
    %288 = arith.subf %282, %287 : vector<16x32xf32>
    %289 = arith.mulf %288, %288 : vector<16x32xf32>
    %cst_82 = arith.constant dense<0.000000e+00> : vector<16xf32>
    %290 = vector.multi_reduction <add>, %289, %cst_82 [1] : vector<16x32xf32> to vector<16xf32>
    %291 = vector.shape_cast %290 : vector<16xf32> to vector<16x1xf32>
    %cst_83 = arith.constant 3.200000e+01 : f32
    %292 = vector.broadcast %cst_83 : f32 to vector<16x1xf32>
    %293 = arith.divf %291, %292 : vector<16x1xf32>
    %294 = vector.broadcast %286 : vector<16x1xf32> to vector<16x32xf32>
    %295 = arith.subf %282, %294 : vector<16x32xf32>
    %cst_84 = arith.constant 9.99999974E-6 : f32
    %296 = vector.broadcast %cst_84 : f32 to vector<16x1xf32>
    %297 = arith.addf %293, %296 : vector<16x1xf32>
    %298 = math.rsqrt %297 : vector<16x1xf32>
    %299 = vector.broadcast %298 : vector<16x1xf32> to vector<16x32xf32>
    %300 = arith.mulf %295, %299 : vector<16x32xf32>
    %301 = vector.broadcast %8 : vector<1x32xf32> to vector<16x32xf32>
    %302 = arith.mulf %300, %301 : vector<16x32xf32>
    %303 = vector.broadcast %9 : vector<1x32xf32> to vector<16x32xf32>
    %304 = arith.addf %302, %303 : vector<16x32xf32>
    %305 = vector.shape_cast %304 : vector<16x32xf32> to vector<2x8x32xf32>
    %c0_85 = arith.constant 0 : index
    %c0_86 = arith.constant 0 : index
    %c0_87 = arith.constant 0 : index
    %306 = vector.load %arg14[%c0_85, %c0_86, %c0_87] : memref<2x8x32xf32, #tpu.memory_space<vmem>>, vector<2x8x32xf32>
    tpu.vector_store %arg14[%c0_85, %c0_86, %c0_87], %305 {strides = array<i32>} : memref<2x8x32xf32, #tpu.memory_space<vmem>>, vector<2x8x32xf32>,
    return
  }
  func.func @transform_0(%arg0: i32) -> (i32, i32, i32) {
    %c0_i32 = arith.constant 0 : i32
    %c0_i32_0 = arith.constant 0 : i32
    %c0_i32_1 = arith.constant 0 : i32
    return %arg0, %c0_i32, %c0_i32_0 : i32, i32, i32
  }
  func.func @transform_1(%arg0: i32) -> (i32, i32, i32) {
    %c0_i32 = arith.constant 0 : i32
    %c0_i32_0 = arith.constant 0 : i32
    %c0_i32_1 = arith.constant 0 : i32
    return %arg0, %c0_i32, %c0_i32_0 : i32, i32, i32
  }
  func.func @transform_2(%arg0: i32) -> (i32, i32, i32) {
    %c0_i32 = arith.constant 0 : i32
    %c0_i32_0 = arith.constant 0 : i32
    %c0_i32_1 = arith.constant 0 : i32
    return %arg0, %c0_i32, %c0_i32_0 : i32, i32, i32
  }
  func.func @transform_3(%arg0: i32) -> (i32, i32) {
    %c0_i32 = arith.constant 0 : i32
    %c0_i32_0 = arith.constant 0 : i32
    %c0_i32_1 = arith.constant 0 : i32
    return %c0_i32, %c0_i32_0 : i32, i32
  }
  func.func @transform_4(%arg0: i32) -> (i32, i32) {
    %c0_i32 = arith.constant 0 : i32
    %c0_i32_0 = arith.constant 0 : i32
    %c0_i32_1 = arith.constant 0 : i32
    return %c0_i32, %c0_i32_0 : i32, i32
  }
  func.func @transform_5(%arg0: i32) -> (i32, i32) {
    %c0_i32 = arith.constant 0 : i32
    %c0_i32_0 = arith.constant 0 : i32
    %c0_i32_1 = arith.constant 0 : i32
    return %c0_i32, %c0_i32_0 : i32, i32
  }
  func.func @transform_6(%arg0: i32) -> (i32, i32) {
    %c0_i32 = arith.constant 0 : i32
    %c0_i32_0 = arith.constant 0 : i32
    %c0_i32_1 = arith.constant 0 : i32
    return %c0_i32, %c0_i32_0 : i32, i32
  }
  func.func @transform_7(%arg0: i32) -> (i32, i32) {
    %c0_i32 = arith.constant 0 : i32
    %c0_i32_0 = arith.constant 0 : i32
    %c0_i32_1 = arith.constant 0 : i32
    return %c0_i32, %c0_i32_0 : i32, i32
  }
  func.func @transform_8(%arg0: i32) -> (i32, i32) {
    %c0_i32 = arith.constant 0 : i32
    %c0_i32_0 = arith.constant 0 : i32
    %c0_i32_1 = arith.constant 0 : i32
    return %c0_i32, %c0_i32_0 : i32, i32
  }
  func.func @transform_9(%arg0: i32) -> (i32, i32) {
    %c0_i32 = arith.constant 0 : i32
    %c0_i32_0 = arith.constant 0 : i32
    %c0_i32_1 = arith.constant 0 : i32
    return %c0_i32, %c0_i32_0 : i32, i32
  }
  func.func @transform_10(%arg0: i32) -> (i32, i32) {
    %c0_i32 = arith.constant 0 : i32
    %c0_i32_0 = arith.constant 0 : i32
    %c0_i32_1 = arith.constant 0 : i32
    return %c0_i32, %c0_i32_0 : i32, i32
  }
  func.func @transform_11(%arg0: i32) -> (i32, i32) {
    %c0_i32 = arith.constant 0 : i32
    %c0_i32_0 = arith.constant 0 : i32
    %c0_i32_1 = arith.constant 0 : i32
    return %c0_i32, %c0_i32_0 : i32, i32
  }
  func.func @transform_12(%arg0: i32) -> (i32, i32) {
    %c0_i32 = arith.constant 0 : i32
    %c0_i32_0 = arith.constant 0 : i32
    %c0_i32_1 = arith.constant 0 : i32
    return %c0_i32, %c0_i32_0 : i32, i32
  }
  func.func @transform_13(%arg0: i32) -> (i32, i32, i32) {
    %c0_i32 = arith.constant 0 : i32
    %c0_i32_0 = arith.constant 0 : i32
    %c0_i32_1 = arith.constant 0 : i32
    return %arg0, %c0_i32, %c0_i32_0 : i32, i32, i32
  }
  func.func @transform_14(%arg0: i32) -> (i32, i32, i32, i32) {
    %c0_i32 = arith.constant 0 : i32
    %c0_i32_0 = arith.constant 0 : i32
    %c0_i32_1 = arith.constant 0 : i32
    %c0_i32_2 = arith.constant 0 : i32
    return %arg0, %c0_i32, %c0_i32_0, %c0_i32_1 : i32, i32, i32, i32
  }
}

module attributes {stable_mosaic.version = 11 : i64} {
  func.func @kernel(%arg0: i32, %arg1: memref<2x8x32xf32, #tpu.memory_space<vmem>>, %arg2: memref<2x8x32xf32, #tpu.memory_space<vmem>>, %arg3: memref<2x1x8xf32, #tpu.memory_space<vmem>>, %arg4: memref<32x96xf32, #tpu.memory_space<vmem>>, %arg5: memref<1x96xf32, #tpu.memory_space<vmem>>, %arg6: memref<32x32xf32, #tpu.memory_space<vmem>>, %arg7: memref<32x96xf32, #tpu.memory_space<vmem>>, %arg8: memref<1x96xf32, #tpu.memory_space<vmem>>, %arg9: memref<32x32xf32, #tpu.memory_space<vmem>>, %arg10: memref<32x64xf32, #tpu.memory_space<vmem>>, %arg11: memref<1x64xf32, #tpu.memory_space<vmem>>, %arg12: memref<64x32xf32, #tpu.memory_space<vmem>>, %arg13: memref<9x32xf32, #tpu.memory_space<vmem>>, %arg14: memref<2x8x32xf32, #tpu.memory_space<vmem>>, %arg15: memref<2x4x8x8xf32, #tpu.memory_space<vmem>>) attributes {dimension_semantics = [#tpu.dimension_semantics<parallel>], iteration_bounds = array<i64: 1>, scalar_prefetch = 0 : i64, scratch_operands = 0 : i64, tpu.core_type = #tpu.core_type<tc>, window_params = [{transform_indices = @transform_0, window_bounds = array<i64: 2, 8, 32>}, {transform_indices = @transform_1, window_bounds = array<i64: 2, 8, 32>}, {transform_indices = @transform_2, window_bounds = array<i64: 2, 1, 8>}, {pipeline_mode = #tpu.pipeline_mode<synchronous>, transform_indices = @transform_3, window_bounds = array<i64: 32, 96>}, {pipeline_mode = #tpu.pipeline_mode<synchronous>, transform_indices = @transform_4, window_bounds = array<i64: 1, 96>}, {pipeline_mode = #tpu.pipeline_mode<synchronous>, transform_indices = @transform_5, window_bounds = array<i64: 32, 32>}, {pipeline_mode = #tpu.pipeline_mode<synchronous>, transform_indices = @transform_6, window_bounds = array<i64: 32, 96>}, {pipeline_mode = #tpu.pipeline_mode<synchronous>, transform_indices = @transform_7, window_bounds = array<i64: 1, 96>}, {pipeline_mode = #tpu.pipeline_mode<synchronous>, transform_indices = @transform_8, window_bounds = array<i64: 32, 32>}, {pipeline_mode = #tpu.pipeline_mode<synchronous>, transform_indices = @transform_9, window_bounds = array<i64: 32, 64>}, {pipeline_mode = #tpu.pipeline_mode<synchronous>, transform_indices = @transform_10, window_bounds = array<i64: 1, 64>}, {pipeline_mode = #tpu.pipeline_mode<synchronous>, transform_indices = @transform_11, window_bounds = array<i64: 64, 32>}, {pipeline_mode = #tpu.pipeline_mode<synchronous>, transform_indices = @transform_12, window_bounds = array<i64: 9, 32>}, {transform_indices = @transform_13, window_bounds = array<i64: 2, 8, 32>}, {transform_indices = @transform_14, window_bounds = array<i64: 2, 4, 8, 8>}]} {
    %c0 = arith.constant 0 : index
    %c0_0 = arith.constant 0 : index
    %0 = vector.load %arg13[%c0, %c0_0] : memref<9x32xf32, #tpu.memory_space<vmem>>, vector<9x32xf32>
    %1 = vector.extract_strided_slice %0 {offsets = [0, 0], sizes = [1, 32], strides = [1, 1]} : vector<9x32xf32> to vector<1x32xf32>
    %2 = vector.extract_strided_slice %0 {offsets = [1, 0], sizes = [1, 32], strides = [1, 1]} : vector<9x32xf32> to vector<1x32xf32>
    %3 = vector.extract_strided_slice %0 {offsets = [2, 0], sizes = [1, 32], strides = [1, 1]} : vector<9x32xf32> to vector<1x32xf32>
    %4 = vector.extract_strided_slice %0 {offsets = [3, 0], sizes = [1, 32], strides = [1, 1]} : vector<9x32xf32> to vector<1x32xf32>
    %5 = vector.extract_strided_slice %0 {offsets = [4, 0], sizes = [1, 32], strides = [1, 1]} : vector<9x32xf32> to vector<1x32xf32>
    %6 = vector.extract_strided_slice %0 {offsets = [5, 0], sizes = [1, 32], strides = [1, 1]} : vector<9x32xf32> to vector<1x32xf32>
    %7 = vector.extract_strided_slice %0 {offsets = [6, 0], sizes = [1, 32], strides = [1, 1]} : vector<9x32xf32> to vector<1x32xf32>
    %8 = vector.extract_strided_slice %0 {offsets = [7, 0], sizes = [1, 32], strides = [1, 1]} : vector<9x32xf32> to vector<1x32xf32>
    %9 = vector.extract_strided_slice %0 {offsets = [8, 0], sizes = [1, 32], strides = [1, 1]} : vector<9x32xf32> to vector<1x32xf32>
    %c0_1 = arith.constant 0 : index
    %c0_2 = arith.constant 0 : index
    %c0_3 = arith.constant 0 : index
    %10 = vector.load %arg1[%c0_1, %c0_2, %c0_3] : memref<2x8x32xf32, #tpu.memory_space<vmem>>, vector<2x8x32xf32>
    %11 = vector.shape_cast %10 : vector<2x8x32xf32> to vector<16x32xf32>
    %c0_4 = arith.constant 0 : index
    %c0_5 = arith.constant 0 : index
    %c0_6 = arith.constant 0 : index
    %12 = vector.load %arg2[%c0_4, %c0_5, %c0_6] : memref<2x8x32xf32, #tpu.memory_space<vmem>>, vector<2x8x32xf32>
    %13 = vector.shape_cast %12 : vector<2x8x32xf32> to vector<16x32xf32>
    %14 = tpu.iota {dimensions = array<i32: 0>} : vector<8x8xi32>
    %15 = tpu.iota {dimensions = array<i32: 1>} : vector<8x8xi32>
    %16 = arith.cmpi sge, %14, %15 : vector<8x8xi32>
    %cst = arith.constant 0.000000e+00 : f32
    %cst_7 = arith.constant -1.000000e+10 : f32
    %17 = vector.broadcast %cst : f32 to vector<8x8xf32>
    %18 = vector.broadcast %cst_7 : f32 to vector<8x8xf32>
    %19 = arith.select %16, %17, %18 : vector<8x8xi1>, vector<8x8xf32>
    %c0_8 = arith.constant 0 : index
    %c0_9 = arith.constant 0 : index
    %20 = vector.load %arg4[%c0_8, %c0_9] : memref<32x96xf32, #tpu.memory_space<vmem>>, vector<32x96xf32>
    %cst_10 = arith.constant dense<0.000000e+00> : vector<16x96xf32>
    %21 = tpu.matmul %11, %20, %cst_10 {dimension_numbers = #tpu.dot_dimension_numbers<[1], [0], [0], [1], [0, 0, 1, 1], [], []>} : vector<16x32xf32>, vector<32x96xf32>, vector<16x96xf32> -> vector<16x96xf32>
    %c0_11 = arith.constant 0 : index
    %c0_12 = arith.constant 0 : index
    %22 = vector.load %arg5[%c0_11, %c0_12] : memref<1x96xf32, #tpu.memory_space<vmem>>, vector<1x96xf32>
    %23 = vector.broadcast %22 : vector<1x96xf32> to vector<16x96xf32>
    %24 = arith.addf %21, %23 : vector<16x96xf32>
    %25 = vector.extract_strided_slice %24 {offsets = [0, 0], sizes = [8, 96], strides = [1, 1]} : vector<16x96xf32> to vector<8x96xf32>
    %26 = vector.extract_strided_slice %25 {offsets = [0, 0], sizes = [8, 24], strides = [1, 1]} : vector<8x96xf32> to vector<8x24xf32>
    %27 = vector.extract_strided_slice %25 {offsets = [0, 24], sizes = [8, 24], strides = [1, 1]} : vector<8x96xf32> to vector<8x24xf32>
    %28 = vector.extract_strided_slice %25 {offsets = [0, 48], sizes = [8, 24], strides = [1, 1]} : vector<8x96xf32> to vector<8x24xf32>
    %29 = vector.extract_strided_slice %25 {offsets = [0, 72], sizes = [8, 24], strides = [1, 1]} : vector<8x96xf32> to vector<8x24xf32>
    %30 = vector.shape_cast %26 : vector<8x24xf32> to vector<1x8x24xf32>
    %31 = vector.shape_cast %27 : vector<8x24xf32> to vector<1x8x24xf32>
    %32 = vector.shape_cast %28 : vector<8x24xf32> to vector<1x8x24xf32>
    %33 = vector.shape_cast %29 : vector<8x24xf32> to vector<1x8x24xf32>
    %34 = tpu.concatenate %30, %31, %32, %33 in 0 : vector<1x8x24xf32>, vector<1x8x24xf32>, vector<1x8x24xf32>, vector<1x8x24xf32> -> vector<4x8x24xf32>
    %35 = vector.extract_strided_slice %34 {offsets = [0, 0, 0], sizes = [4, 8, 8], strides = [1, 1, 1]} : vector<4x8x24xf32> to vector<4x8x8xf32>
    %36 = vector.extract_strided_slice %34 {offsets = [0, 0, 8], sizes = [4, 8, 8], strides = [1, 1, 1]} : vector<4x8x24xf32> to vector<4x8x8xf32>
    %37 = vector.extract_strided_slice %34 {offsets = [0, 0, 16], sizes = [4, 8, 8], strides = [1, 1, 1]} : vector<4x8x24xf32> to vector<4x8x8xf32>
    %38 = vector.shape_cast %19 : vector<8x8xf32> to vector<1x8x8xf32>
    "tpu.trace_start"() <{level = 10 : i32, message = "hqd,hkd->hqk"}> : () -> ()
    %cst_13 = arith.constant dense<0.000000e+00> : vector<4x8x8xf32>
    %39 = tpu.matmul %35, %36, %cst_13 {dimension_numbers = #tpu.dot_dimension_numbers<[2], [2], [1], [1], [0, 0, 0, 1, 1, 1], [0], [0]>} : vector<4x8x8xf32>, vector<4x8x8xf32>, vector<4x8x8xf32> -> vector<4x8x8xf32>
    "tpu.trace_stop"() : () -> ()
    %40 = vector.broadcast %38 : vector<1x8x8xf32> to vector<4x8x8xf32>
    %41 = arith.addf %39, %40 : vector<4x8x8xf32>
    %cst_14 = arith.constant dense<0xFF800000> : vector<4x8xf32>
    %42 = vector.multi_reduction <maximumf>, %41, %cst_14 [2] : vector<4x8x8xf32> to vector<4x8xf32>
    %43 = vector.shape_cast %42 : vector<4x8xf32> to vector<4x8x1xf32>
    %44 = vector.broadcast %43 : vector<4x8x1xf32> to vector<4x8x8xf32>
    %45 = arith.subf %41, %44 : vector<4x8x8xf32>
    %46 = math.exp %45 : vector<4x8x8xf32>
    %cst_15 = arith.constant dense<0.000000e+00> : vector<4x8xf32>
    %47 = vector.multi_reduction <add>, %46, %cst_15 [2] : vector<4x8x8xf32> to vector<4x8xf32>
    %48 = vector.shape_cast %47 : vector<4x8xf32> to vector<4x8x1xf32>
    %cst_16 = arith.constant 1.000000e+00 : f32
    %49 = vector.broadcast %cst_16 : f32 to vector<4x8x1xf32>
    %50 = arith.divf %49, %48 : vector<4x8x1xf32>
    %51 = vector.broadcast %50 : vector<4x8x1xf32> to vector<4x8x8xf32>
    %52 = arith.mulf %46, %51 : vector<4x8x8xf32>
    "tpu.trace_start"() <{level = 10 : i32, message = "hqk,hkd->hqd"}> : () -> ()
    %cst_17 = arith.constant dense<0.000000e+00> : vector<4x8x8xf32>
    %53 = tpu.matmul %52, %37, %cst_17 {dimension_numbers = #tpu.dot_dimension_numbers<[2], [1], [1], [2], [0, 0, 0, 1, 1, 2], [0], [0]>} : vector<4x8x8xf32>, vector<4x8x8xf32>, vector<4x8x8xf32> -> vector<4x8x8xf32>
    "tpu.trace_stop"() : () -> ()
    %54 = vector.extract_strided_slice %53 {offsets = [0, 0, 0], sizes = [1, 8, 8], strides = [1, 1, 1]} : vector<4x8x8xf32> to vector<1x8x8xf32>
    %55 = vector.shape_cast %54 : vector<1x8x8xf32> to vector<8x8xf32>
    %56 = vector.extract_strided_slice %53 {offsets = [1, 0, 0], sizes = [1, 8, 8], strides = [1, 1, 1]} : vector<4x8x8xf32> to vector<1x8x8xf32>
    %57 = vector.shape_cast %56 : vector<1x8x8xf32> to vector<8x8xf32>
    %58 = vector.extract_strided_slice %53 {offsets = [2, 0, 0], sizes = [1, 8, 8], strides = [1, 1, 1]} : vector<4x8x8xf32> to vector<1x8x8xf32>
    %59 = vector.shape_cast %58 : vector<1x8x8xf32> to vector<8x8xf32>
    %60 = vector.extract_strided_slice %53 {offsets = [3, 0, 0], sizes = [1, 8, 8], strides = [1, 1, 1]} : vector<4x8x8xf32> to vector<1x8x8xf32>
    %61 = vector.shape_cast %60 : vector<1x8x8xf32> to vector<8x8xf32>
    %62 = tpu.concatenate %55, %57, %59, %61 in 1 : vector<8x8xf32>, vector<8x8xf32>, vector<8x8xf32>, vector<8x8xf32> -> vector<8x32xf32>
    %63 = vector.extract_strided_slice %24 {offsets = [8, 0], sizes = [8, 96], strides = [1, 1]} : vector<16x96xf32> to vector<8x96xf32>
    %64 = vector.extract_strided_slice %63 {offsets = [0, 0], sizes = [8, 24], strides = [1, 1]} : vector<8x96xf32> to vector<8x24xf32>
    %65 = vector.extract_strided_slice %63 {offsets = [0, 24], sizes = [8, 24], strides = [1, 1]} : vector<8x96xf32> to vector<8x24xf32>
    %66 = vector.extract_strided_slice %63 {offsets = [0, 48], sizes = [8, 24], strides = [1, 1]} : vector<8x96xf32> to vector<8x24xf32>
    %67 = vector.extract_strided_slice %63 {offsets = [0, 72], sizes = [8, 24], strides = [1, 1]} : vector<8x96xf32> to vector<8x24xf32>
    %68 = vector.shape_cast %64 : vector<8x24xf32> to vector<1x8x24xf32>
    %69 = vector.shape_cast %65 : vector<8x24xf32> to vector<1x8x24xf32>
    %70 = vector.shape_cast %66 : vector<8x24xf32> to vector<1x8x24xf32>
    %71 = vector.shape_cast %67 : vector<8x24xf32> to vector<1x8x24xf32>
    %72 = tpu.concatenate %68, %69, %70, %71 in 0 : vector<1x8x24xf32>, vector<1x8x24xf32>, vector<1x8x24xf32>, vector<1x8x24xf32> -> vector<4x8x24xf32>
    %73 = vector.extract_strided_slice %72 {offsets = [0, 0, 0], sizes = [4, 8, 8], strides = [1, 1, 1]} : vector<4x8x24xf32> to vector<4x8x8xf32>
    %74 = vector.extract_strided_slice %72 {offsets = [0, 0, 8], sizes = [4, 8, 8], strides = [1, 1, 1]} : vector<4x8x24xf32> to vector<4x8x8xf32>
    %75 = vector.extract_strided_slice %72 {offsets = [0, 0, 16], sizes = [4, 8, 8], strides = [1, 1, 1]} : vector<4x8x24xf32> to vector<4x8x8xf32>
    %76 = vector.shape_cast %19 : vector<8x8xf32> to vector<1x8x8xf32>
    "tpu.trace_start"() <{level = 10 : i32, message = "hqd,hkd->hqk"}> : () -> ()
    %cst_18 = arith.constant dense<0.000000e+00> : vector<4x8x8xf32>
    %77 = tpu.matmul %73, %74, %cst_18 {dimension_numbers = #tpu.dot_dimension_numbers<[2], [2], [1], [1], [0, 0, 0, 1, 1, 1], [0], [0]>} : vector<4x8x8xf32>, vector<4x8x8xf32>, vector<4x8x8xf32> -> vector<4x8x8xf32>
    "tpu.trace_stop"() : () -> ()
    %78 = vector.broadcast %76 : vector<1x8x8xf32> to vector<4x8x8xf32>
    %79 = arith.addf %77, %78 : vector<4x8x8xf32>
    %cst_19 = arith.constant dense<0xFF800000> : vector<4x8xf32>
    %80 = vector.multi_reduction <maximumf>, %79, %cst_19 [2] : vector<4x8x8xf32> to vector<4x8xf32>
    %81 = vector.shape_cast %80 : vector<4x8xf32> to vector<4x8x1xf32>
    %82 = vector.broadcast %81 : vector<4x8x1xf32> to vector<4x8x8xf32>
    %83 = arith.subf %79, %82 : vector<4x8x8xf32>
    %84 = math.exp %83 : vector<4x8x8xf32>
    %cst_20 = arith.constant dense<0.000000e+00> : vector<4x8xf32>
    %85 = vector.multi_reduction <add>, %84, %cst_20 [2] : vector<4x8x8xf32> to vector<4x8xf32>
    %86 = vector.shape_cast %85 : vector<4x8xf32> to vector<4x8x1xf32>
    %cst_21 = arith.constant 1.000000e+00 : f32
    %87 = vector.broadcast %cst_21 : f32 to vector<4x8x1xf32>
    %88 = arith.divf %87, %86 : vector<4x8x1xf32>
    %89 = vector.broadcast %88 : vector<4x8x1xf32> to vector<4x8x8xf32>
    %90 = arith.mulf %84, %89 : vector<4x8x8xf32>
    "tpu.trace_start"() <{level = 10 : i32, message = "hqk,hkd->hqd"}> : () -> ()
    %cst_22 = arith.constant dense<0.000000e+00> : vector<4x8x8xf32>
    %91 = tpu.matmul %90, %75, %cst_22 {dimension_numbers = #tpu.dot_dimension_numbers<[2], [1], [1], [2], [0, 0, 0, 1, 1, 2], [0], [0]>} : vector<4x8x8xf32>, vector<4x8x8xf32>, vector<4x8x8xf32> -> vector<4x8x8xf32>
    "tpu.trace_stop"() : () -> ()
    %92 = vector.extract_strided_slice %91 {offsets = [0, 0, 0], sizes = [1, 8, 8], strides = [1, 1, 1]} : vector<4x8x8xf32> to vector<1x8x8xf32>
    %93 = vector.shape_cast %92 : vector<1x8x8xf32> to vector<8x8xf32>
    %94 = vector.extract_strided_slice %91 {offsets = [1, 0, 0], sizes = [1, 8, 8], strides = [1, 1, 1]} : vector<4x8x8xf32> to vector<1x8x8xf32>
    %95 = vector.shape_cast %94 : vector<1x8x8xf32> to vector<8x8xf32>
    %96 = vector.extract_strided_slice %91 {offsets = [2, 0, 0], sizes = [1, 8, 8], strides = [1, 1, 1]} : vector<4x8x8xf32> to vector<1x8x8xf32>
    %97 = vector.shape_cast %96 : vector<1x8x8xf32> to vector<8x8xf32>
    %98 = vector.extract_strided_slice %91 {offsets = [3, 0, 0], sizes = [1, 8, 8], strides = [1, 1, 1]} : vector<4x8x8xf32> to vector<1x8x8xf32>
    %99 = vector.shape_cast %98 : vector<1x8x8xf32> to vector<8x8xf32>
    %100 = tpu.concatenate %93, %95, %97, %99 in 1 : vector<8x8xf32>, vector<8x8xf32>, vector<8x8xf32>, vector<8x8xf32> -> vector<8x32xf32>
    %101 = tpu.concatenate %62, %100 in 0 : vector<8x32xf32>, vector<8x32xf32> -> vector<16x32xf32>
    %c0_23 = arith.constant 0 : index
    %c0_24 = arith.constant 0 : index
    %102 = vector.load %arg6[%c0_23, %c0_24] : memref<32x32xf32, #tpu.memory_space<vmem>>, vector<32x32xf32>
    %cst_25 = arith.constant dense<0.000000e+00> : vector<16x32xf32>
    %103 = tpu.matmul %101, %102, %cst_25 {dimension_numbers = #tpu.dot_dimension_numbers<[1], [0], [0], [1], [0, 0, 1, 1], [], []>} : vector<16x32xf32>, vector<32x32xf32>, vector<16x32xf32> -> vector<16x32xf32>
    %104 = vector.broadcast %1 : vector<1x32xf32> to vector<16x32xf32>
    %105 = arith.addf %103, %104 : vector<16x32xf32>
    %106 = arith.addf %11, %105 : vector<16x32xf32>
    %cst_26 = arith.constant dense<0.000000e+00> : vector<16xf32>
    %107 = vector.multi_reduction <add>, %106, %cst_26 [1] : vector<16x32xf32> to vector<16xf32>
    %108 = vector.shape_cast %107 : vector<16xf32> to vector<16x1xf32>
    %cst_27 = arith.constant 3.200000e+01 : f32
    %109 = vector.broadcast %cst_27 : f32 to vector<16x1xf32>
    %110 = arith.divf %108, %109 : vector<16x1xf32>
    %111 = vector.broadcast %110 : vector<16x1xf32> to vector<16x32xf32>
    %112 = arith.subf %106, %111 : vector<16x32xf32>
    %113 = arith.mulf %112, %112 : vector<16x32xf32>
    %cst_28 = arith.constant dense<0.000000e+00> : vector<16xf32>
    %114 = vector.multi_reduction <add>, %113, %cst_28 [1] : vector<16x32xf32> to vector<16xf32>
    %115 = vector.shape_cast %114 : vector<16xf32> to vector<16x1xf32>
    %cst_29 = arith.constant 3.200000e+01 : f32
    %116 = vector.broadcast %cst_29 : f32 to vector<16x1xf32>
    %117 = arith.divf %115, %116 : vector<16x1xf32>
    %118 = vector.broadcast %110 : vector<16x1xf32> to vector<16x32xf32>
    %119 = arith.subf %106, %118 : vector<16x32xf32>
    %cst_30 = arith.constant 9.99999974E-6 : f32
    %120 = vector.broadcast %cst_30 : f32 to vector<16x1xf32>
    %121 = arith.addf %117, %120 : vector<16x1xf32>
    %122 = math.rsqrt %121 : vector<16x1xf32>
    %123 = vector.broadcast %122 : vector<16x1xf32> to vector<16x32xf32>
    %124 = arith.mulf %119, %123 : vector<16x32xf32>
    %125 = vector.broadcast %2 : vector<1x32xf32> to vector<16x32xf32>
    %126 = arith.mulf %124, %125 : vector<16x32xf32>
    %127 = vector.broadcast %3 : vector<1x32xf32> to vector<16x32xf32>
    %128 = arith.addf %126, %127 : vector<16x32xf32>
    %c0_31 = arith.constant 0 : index
    %c0_32 = arith.constant 0 : index
    %129 = vector.load %arg7[%c0_31, %c0_32] : memref<32x96xf32, #tpu.memory_space<vmem>>, vector<32x32xf32>
    %cst_33 = arith.constant dense<0.000000e+00> : vector<16x32xf32>
    %130 = tpu.matmul %128, %129, %cst_33 {dimension_numbers = #tpu.dot_dimension_numbers<[1], [0], [0], [1], [0, 0, 1, 1], [], []>} : vector<16x32xf32>, vector<32x32xf32>, vector<16x32xf32> -> vector<16x32xf32>
    %c0_34 = arith.constant 0 : index
    %c0_35 = arith.constant 0 : index
    %131 = vector.load %arg8[%c0_34, %c0_35] : memref<1x96xf32, #tpu.memory_space<vmem>>, vector<1x32xf32>
    %132 = vector.broadcast %131 : vector<1x32xf32> to vector<16x32xf32>
    %133 = arith.addf %130, %132 : vector<16x32xf32>
    %c0_36 = arith.constant 0 : index
    %c32 = arith.constant 32 : index
    %134 = vector.load %arg7[%c0_36, %c32] : memref<32x96xf32, #tpu.memory_space<vmem>>, vector<32x64xf32>
    %cst_37 = arith.constant dense<0.000000e+00> : vector<16x64xf32>
    %135 = tpu.matmul %13, %134, %cst_37 {dimension_numbers = #tpu.dot_dimension_numbers<[1], [0], [0], [1], [0, 0, 1, 1], [], []>} : vector<16x32xf32>, vector<32x64xf32>, vector<16x64xf32> -> vector<16x64xf32>
    %c0_38 = arith.constant 0 : index
    %c32_39 = arith.constant 32 : index
    %136 = vector.load %arg8[%c0_38, %c32_39] : memref<1x96xf32, #tpu.memory_space<vmem>>, vector<1x64xf32>
    %137 = vector.broadcast %136 : vector<1x64xf32> to vector<16x64xf32>
    %138 = arith.addf %135, %137 : vector<16x64xf32>
    %139 = vector.extract_strided_slice %133 {offsets = [0, 0], sizes = [8, 32], strides = [1, 1]} : vector<16x32xf32> to vector<8x32xf32>
    %140 = vector.extract_strided_slice %138 {offsets = [0, 0], sizes = [8, 64], strides = [1, 1]} : vector<16x64xf32> to vector<8x64xf32>
    %141 = vector.extract_strided_slice %139 {offsets = [0, 0], sizes = [8, 8], strides = [1, 1]} : vector<8x32xf32> to vector<8x8xf32>
    %142 = vector.extract_strided_slice %139 {offsets = [0, 8], sizes = [8, 8], strides = [1, 1]} : vector<8x32xf32> to vector<8x8xf32>
    %143 = vector.extract_strided_slice %139 {offsets = [0, 16], sizes = [8, 8], strides = [1, 1]} : vector<8x32xf32> to vector<8x8xf32>
    %144 = vector.extract_strided_slice %139 {offsets = [0, 24], sizes = [8, 8], strides = [1, 1]} : vector<8x32xf32> to vector<8x8xf32>
    %145 = vector.shape_cast %141 : vector<8x8xf32> to vector<1x8x8xf32>
    %146 = vector.shape_cast %142 : vector<8x8xf32> to vector<1x8x8xf32>
    %147 = vector.shape_cast %143 : vector<8x8xf32> to vector<1x8x8xf32>
    %148 = vector.shape_cast %144 : vector<8x8xf32> to vector<1x8x8xf32>
    %149 = tpu.concatenate %145, %146, %147, %148 in 0 : vector<1x8x8xf32>, vector<1x8x8xf32>, vector<1x8x8xf32>, vector<1x8x8xf32> -> vector<4x8x8xf32>
    %150 = vector.extract_strided_slice %140 {offsets = [0, 0], sizes = [8, 16], strides = [1, 1]} : vector<8x64xf32> to vector<8x16xf32>
    %151 = vector.extract_strided_slice %140 {offsets = [0, 16], sizes = [8, 16], strides = [1, 1]} : vector<8x64xf32> to vector<8x16xf32>
    %152 = vector.extract_strided_slice %140 {offsets = [0, 32], sizes = [8, 16], strides = [1, 1]} : vector<8x64xf32> to vector<8x16xf32>
    %153 = vector.extract_strided_slice %140 {offsets = [0, 48], sizes = [8, 16], strides = [1, 1]} : vector<8x64xf32> to vector<8x16xf32>
    %154 = vector.shape_cast %150 : vector<8x16xf32> to vector<1x8x16xf32>
    %155 = vector.shape_cast %151 : vector<8x16xf32> to vector<1x8x16xf32>
    %156 = vector.shape_cast %152 : vector<8x16xf32> to vector<1x8x16xf32>
    %157 = vector.shape_cast %153 : vector<8x16xf32> to vector<1x8x16xf32>
    %158 = tpu.concatenate %154, %155, %156, %157 in 0 : vector<1x8x16xf32>, vector<1x8x16xf32>, vector<1x8x16xf32>, vector<1x8x16xf32> -> vector<4x8x16xf32>
    %159 = vector.extract_strided_slice %158 {offsets = [0, 0, 0], sizes = [4, 8, 8], strides = [1, 1, 1]} : vector<4x8x16xf32> to vector<4x8x8xf32>
    %160 = vector.extract_strided_slice %158 {offsets = [0, 0, 8], sizes = [4, 8, 8], strides = [1, 1, 1]} : vector<4x8x16xf32> to vector<4x8x8xf32>
    %c0_40 = arith.constant 0 : index
    %c0_41 = arith.constant 0 : index
    %c0_42 = arith.constant 0 : index
    %161 = vector.load %arg3[%c0_40, %c0_41, %c0_42] : memref<2x1x8xf32, #tpu.memory_space<vmem>>, vector<1x1x8xf32>
    %162 = vector.shape_cast %161 : vector<1x1x8xf32> to vector<1x8xf32>
    %163 = vector.shape_cast %162 : vector<1x8xf32> to vector<1x1x8xf32>
    "tpu.trace_start"() <{level = 10 : i32, message = "hqd,hkd->hqk"}> : () -> ()
    %cst_43 = arith.constant dense<0.000000e+00> : vector<4x8x8xf32>
    %164 = tpu.matmul %149, %159, %cst_43 {dimension_numbers = #tpu.dot_dimension_numbers<[2], [2], [1], [1], [0, 0, 0, 1, 1, 1], [0], [0]>} : vector<4x8x8xf32>, vector<4x8x8xf32>, vector<4x8x8xf32> -> vector<4x8x8xf32>
    "tpu.trace_stop"() : () -> ()
    %165 = vector.broadcast %163 : vector<1x1x8xf32> to vector<4x8x8xf32>
    %166 = arith.addf %164, %165 : vector<4x8x8xf32>
    %cst_44 = arith.constant dense<0xFF800000> : vector<4x8xf32>
    %167 = vector.multi_reduction <maximumf>, %166, %cst_44 [2] : vector<4x8x8xf32> to vector<4x8xf32>
    %168 = vector.shape_cast %167 : vector<4x8xf32> to vector<4x8x1xf32>
    %169 = vector.broadcast %168 : vector<4x8x1xf32> to vector<4x8x8xf32>
    %170 = arith.subf %166, %169 : vector<4x8x8xf32>
    %171 = math.exp %170 : vector<4x8x8xf32>
    %cst_45 = arith.constant dense<0.000000e+00> : vector<4x8xf32>
    %172 = vector.multi_reduction <add>, %171, %cst_45 [2] : vector<4x8x8xf32> to vector<4x8xf32>
    %173 = vector.shape_cast %172 : vector<4x8xf32> to vector<4x8x1xf32>
    %cst_46 = arith.constant 1.000000e+00 : f32
    %174 = vector.broadcast %cst_46 : f32 to vector<4x8x1xf32>
    %175 = arith.divf %174, %173 : vector<4x8x1xf32>
    %176 = vector.broadcast %175 : vector<4x8x1xf32> to vector<4x8x8xf32>
    %177 = arith.mulf %171, %176 : vector<4x8x8xf32>
    "tpu.trace_start"() <{level = 10 : i32, message = "hqk,hkd->hqd"}> : () -> ()
    %cst_47 = arith.constant dense<0.000000e+00> : vector<4x8x8xf32>
    %178 = tpu.matmul %177, %160, %cst_47 {dimension_numbers = #tpu.dot_dimension_numbers<[2], [1], [1], [2], [0, 0, 0, 1, 1, 2], [0], [0]>} : vector<4x8x8xf32>, vector<4x8x8xf32>, vector<4x8x8xf32> -> vector<4x8x8xf32>
    "tpu.trace_stop"() : () -> ()
    %c0_48 = arith.constant 0 : index
    %c0_49 = arith.constant 0 : index
    %c0_50 = arith.constant 0 : index
    %c0_51 = arith.constant 0 : index
    %179 = vector.load %arg15[%c0_48, %c0_49, %c0_50, %c0_51] : memref<2x4x8x8xf32, #tpu.memory_space<vmem>>, vector<1x4x8x8xf32>
    %180 = vector.shape_cast %179 : vector<1x4x8x8xf32> to vector<4x8x8xf32>
    %181 = vector.shape_cast %177 : vector<4x8x8xf32> to vector<1x4x8x8xf32>
    tpu.vector_store %arg15[%c0_48, %c0_49, %c0_50, %c0_51], %181 {strides = array<i32>} : memref<2x4x8x8xf32, #tpu.memory_space<vmem>>, vector<1x4x8x8xf32>,
    %182 = vector.extract_strided_slice %178 {offsets = [0, 0, 0], sizes = [1, 8, 8], strides = [1, 1, 1]} : vector<4x8x8xf32> to vector<1x8x8xf32>
    %183 = vector.shape_cast %182 : vector<1x8x8xf32> to vector<8x8xf32>
    %184 = vector.extract_strided_slice %178 {offsets = [1, 0, 0], sizes = [1, 8, 8], strides = [1, 1, 1]} : vector<4x8x8xf32> to vector<1x8x8xf32>
    %185 = vector.shape_cast %184 : vector<1x8x8xf32> to vector<8x8xf32>
    %186 = vector.extract_strided_slice %178 {offsets = [2, 0, 0], sizes = [1, 8, 8], strides = [1, 1, 1]} : vector<4x8x8xf32> to vector<1x8x8xf32>
    %187 = vector.shape_cast %186 : vector<1x8x8xf32> to vector<8x8xf32>
    %188 = vector.extract_strided_slice %178 {offsets = [3, 0, 0], sizes = [1, 8, 8], strides = [1, 1, 1]} : vector<4x8x8xf32> to vector<1x8x8xf32>
    %189 = vector.shape_cast %188 : vector<1x8x8xf32> to vector<8x8xf32>
    %190 = tpu.concatenate %183, %185, %187, %189 in 1 : vector<8x8xf32>, vector<8x8xf32>, vector<8x8xf32>, vector<8x8xf32> -> vector<8x32xf32>
    %191 = vector.extract_strided_slice %133 {offsets = [8, 0], sizes = [8, 32], strides = [1, 1]} : vector<16x32xf32> to vector<8x32xf32>
    %192 = vector.extract_strided_slice %138 {offsets = [8, 0], sizes = [8, 64], strides = [1, 1]} : vector<16x64xf32> to vector<8x64xf32>
    %193 = vector.extract_strided_slice %191 {offsets = [0, 0], sizes = [8, 8], strides = [1, 1]} : vector<8x32xf32> to vector<8x8xf32>
    %194 = vector.extract_strided_slice %191 {offsets = [0, 8], sizes = [8, 8], strides = [1, 1]} : vector<8x32xf32> to vector<8x8xf32>
    %195 = vector.extract_strided_slice %191 {offsets = [0, 16], sizes = [8, 8], strides = [1, 1]} : vector<8x32xf32> to vector<8x8xf32>
    %196 = vector.extract_strided_slice %191 {offsets = [0, 24], sizes = [8, 8], strides = [1, 1]} : vector<8x32xf32> to vector<8x8xf32>
    %197 = vector.shape_cast %193 : vector<8x8xf32> to vector<1x8x8xf32>
    %198 = vector.shape_cast %194 : vector<8x8xf32> to vector<1x8x8xf32>
    %199 = vector.shape_cast %195 : vector<8x8xf32> to vector<1x8x8xf32>
    %200 = vector.shape_cast %196 : vector<8x8xf32> to vector<1x8x8xf32>
    %201 = tpu.concatenate %197, %198, %199, %200 in 0 : vector<1x8x8xf32>, vector<1x8x8xf32>, vector<1x8x8xf32>, vector<1x8x8xf32> -> vector<4x8x8xf32>
    %202 = vector.extract_strided_slice %192 {offsets = [0, 0], sizes = [8, 16], strides = [1, 1]} : vector<8x64xf32> to vector<8x16xf32>
    %203 = vector.extract_strided_slice %192 {offsets = [0, 16], sizes = [8, 16], strides = [1, 1]} : vector<8x64xf32> to vector<8x16xf32>
    %204 = vector.extract_strided_slice %192 {offsets = [0, 32], sizes = [8, 16], strides = [1, 1]} : vector<8x64xf32> to vector<8x16xf32>
    %205 = vector.extract_strided_slice %192 {offsets = [0, 48], sizes = [8, 16], strides = [1, 1]} : vector<8x64xf32> to vector<8x16xf32>
    %206 = vector.shape_cast %202 : vector<8x16xf32> to vector<1x8x16xf32>
    %207 = vector.shape_cast %203 : vector<8x16xf32> to vector<1x8x16xf32>
    %208 = vector.shape_cast %204 : vector<8x16xf32> to vector<1x8x16xf32>
    %209 = vector.shape_cast %205 : vector<8x16xf32> to vector<1x8x16xf32>
    %210 = tpu.concatenate %206, %207, %208, %209 in 0 : vector<1x8x16xf32>, vector<1x8x16xf32>, vector<1x8x16xf32>, vector<1x8x16xf32> -> vector<4x8x16xf32>
    %211 = vector.extract_strided_slice %210 {offsets = [0, 0, 0], sizes = [4, 8, 8], strides = [1, 1, 1]} : vector<4x8x16xf32> to vector<4x8x8xf32>
    %212 = vector.extract_strided_slice %210 {offsets = [0, 0, 8], sizes = [4, 8, 8], strides = [1, 1, 1]} : vector<4x8x16xf32> to vector<4x8x8xf32>
    %c1 = arith.constant 1 : index
    %c0_52 = arith.constant 0 : index
    %c0_53 = arith.constant 0 : index
    %213 = vector.load %arg3[%c1, %c0_52, %c0_53] : memref<2x1x8xf32, #tpu.memory_space<vmem>>, vector<1x1x8xf32>
    %214 = vector.shape_cast %213 : vector<1x1x8xf32> to vector<1x8xf32>
    %215 = vector.shape_cast %214 : vector<1x8xf32> to vector<1x1x8xf32>
    "tpu.trace_start"() <{level = 10 : i32, message = "hqd,hkd->hqk"}> : () -> ()
    %cst_54 = arith.constant dense<0.000000e+00> : vector<4x8x8xf32>
    %216 = tpu.matmul %201, %211, %cst_54 {dimension_numbers = #tpu.dot_dimension_numbers<[2], [2], [1], [1], [0, 0, 0, 1, 1, 1], [0], [0]>} : vector<4x8x8xf32>, vector<4x8x8xf32>, vector<4x8x8xf32> -> vector<4x8x8xf32>
    "tpu.trace_stop"() : () -> ()
    %217 = vector.broadcast %215 : vector<1x1x8xf32> to vector<4x8x8xf32>
    %218 = arith.addf %216, %217 : vector<4x8x8xf32>
    %cst_55 = arith.constant dense<0xFF800000> : vector<4x8xf32>
    %219 = vector.multi_reduction <maximumf>, %218, %cst_55 [2] : vector<4x8x8xf32> to vector<4x8xf32>
    %220 = vector.shape_cast %219 : vector<4x8xf32> to vector<4x8x1xf32>
    %221 = vector.broadcast %220 : vector<4x8x1xf32> to vector<4x8x8xf32>
    %222 = arith.subf %218, %221 : vector<4x8x8xf32>
    %223 = math.exp %222 : vector<4x8x8xf32>
    %cst_56 = arith.constant dense<0.000000e+00> : vector<4x8xf32>
    %224 = vector.multi_reduction <add>, %223, %cst_56 [2] : vector<4x8x8xf32> to vector<4x8xf32>
    %225 = vector.shape_cast %224 : vector<4x8xf32> to vector<4x8x1xf32>
    %cst_57 = arith.constant 1.000000e+00 : f32
    %226 = vector.broadcast %cst_57 : f32 to vector<4x8x1xf32>
    %227 = arith.divf %226, %225 : vector<4x8x1xf32>
    %228 = vector.broadcast %227 : vector<4x8x1xf32> to vector<4x8x8xf32>
    %229 = arith.mulf %223, %228 : vector<4x8x8xf32>
    "tpu.trace_start"() <{level = 10 : i32, message = "hqk,hkd->hqd"}> : () -> ()
    %cst_58 = arith.constant dense<0.000000e+00> : vector<4x8x8xf32>
    %230 = tpu.matmul %229, %212, %cst_58 {dimension_numbers = #tpu.dot_dimension_numbers<[2], [1], [1], [2], [0, 0, 0, 1, 1, 2], [0], [0]>} : vector<4x8x8xf32>, vector<4x8x8xf32>, vector<4x8x8xf32> -> vector<4x8x8xf32>
    "tpu.trace_stop"() : () -> ()
    %c1_59 = arith.constant 1 : index
    %c0_60 = arith.constant 0 : index
    %c0_61 = arith.constant 0 : index
    %c0_62 = arith.constant 0 : index
    %231 = vector.load %arg15[%c1_59, %c0_60, %c0_61, %c0_62] : memref<2x4x8x8xf32, #tpu.memory_space<vmem>>, vector<1x4x8x8xf32>
    %232 = vector.shape_cast %231 : vector<1x4x8x8xf32> to vector<4x8x8xf32>
    %233 = vector.shape_cast %229 : vector<4x8x8xf32> to vector<1x4x8x8xf32>
    tpu.vector_store %arg15[%c1_59, %c0_60, %c0_61, %c0_62], %233 {strides = array<i32>} : memref<2x4x8x8xf32, #tpu.memory_space<vmem>>, vector<1x4x8x8xf32>,
    %234 = vector.extract_strided_slice %230 {offsets = [0, 0, 0], sizes = [1, 8, 8], strides = [1, 1, 1]} : vector<4x8x8xf32> to vector<1x8x8xf32>
    %235 = vector.shape_cast %234 : vector<1x8x8xf32> to vector<8x8xf32>
    %236 = vector.extract_strided_slice %230 {offsets = [1, 0, 0], sizes = [1, 8, 8], strides = [1, 1, 1]} : vector<4x8x8xf32> to vector<1x8x8xf32>
    %237 = vector.shape_cast %236 : vector<1x8x8xf32> to vector<8x8xf32>
    %238 = vector.extract_strided_slice %230 {offsets = [2, 0, 0], sizes = [1, 8, 8], strides = [1, 1, 1]} : vector<4x8x8xf32> to vector<1x8x8xf32>
    %239 = vector.shape_cast %238 : vector<1x8x8xf32> to vector<8x8xf32>
    %240 = vector.extract_strided_slice %230 {offsets = [3, 0, 0], sizes = [1, 8, 8], strides = [1, 1, 1]} : vector<4x8x8xf32> to vector<1x8x8xf32>
    %241 = vector.shape_cast %240 : vector<1x8x8xf32> to vector<8x8xf32>
    %242 = tpu.concatenate %235, %237, %239, %241 in 1 : vector<8x8xf32>, vector<8x8xf32>, vector<8x8xf32>, vector<8x8xf32> -> vector<8x32xf32>
    %243 = tpu.concatenate %190, %242 in 0 : vector<8x32xf32>, vector<8x32xf32> -> vector<16x32xf32>
    %c0_63 = arith.constant 0 : index
    %c0_64 = arith.constant 0 : index
    %244 = vector.load %arg9[%c0_63, %c0_64] : memref<32x32xf32, #tpu.memory_space<vmem>>, vector<32x32xf32>
    %cst_65 = arith.constant dense<0.000000e+00> : vector<16x32xf32>
    %245 = tpu.matmul %243, %244, %cst_65 {dimension_numbers = #tpu.dot_dimension_numbers<[1], [0], [0], [1], [0, 0, 1, 1], [], []>} : vector<16x32xf32>, vector<32x32xf32>, vector<16x32xf32> -> vector<16x32xf32>
    %246 = vector.broadcast %4 : vector<1x32xf32> to vector<16x32xf32>
    %247 = arith.addf %245, %246 : vector<16x32xf32>
    %248 = arith.addf %128, %247 : vector<16x32xf32>
    %cst_66 = arith.constant dense<0.000000e+00> : vector<16xf32>
    %249 = vector.multi_reduction <add>, %248, %cst_66 [1] : vector<16x32xf32> to vector<16xf32>
    %250 = vector.shape_cast %249 : vector<16xf32> to vector<16x1xf32>
    %cst_67 = arith.constant 3.200000e+01 : f32
    %251 = vector.broadcast %cst_67 : f32 to vector<16x1xf32>
    %252 = arith.divf %250, %251 : vector<16x1xf32>
    %253 = vector.broadcast %252 : vector<16x1xf32> to vector<16x32xf32>
    %254 = arith.subf %248, %253 : vector<16x32xf32>
    %255 = arith.mulf %254, %254 : vector<16x32xf32>
    %cst_68 = arith.constant dense<0.000000e+00> : vector<16xf32>
    %256 = vector.multi_reduction <add>, %255, %cst_68 [1] : vector<16x32xf32> to vector<16xf32>
    %257 = vector.shape_cast %256 : vector<16xf32> to vector<16x1xf32>
    %cst_69 = arith.constant 3.200000e+01 : f32
    %258 = vector.broadcast %cst_69 : f32 to vector<16x1xf32>
    %259 = arith.divf %257, %258 : vector<16x1xf32>
    %260 = vector.broadcast %252 : vector<16x1xf32> to vector<16x32xf32>
    %261 = arith.subf %248, %260 : vector<16x32xf32>
    %cst_70 = arith.constant 9.99999974E-6 : f32
    %262 = vector.broadcast %cst_70 : f32 to vector<16x1xf32>
    %263 = arith.addf %259, %262 : vector<16x1xf32>
    %264 = math.rsqrt %263 : vector<16x1xf32>
    %265 = vector.broadcast %264 : vector<16x1xf32> to vector<16x32xf32>
    %266 = arith.mulf %261, %265 : vector<16x32xf32>
    %267 = vector.broadcast %5 : vector<1x32xf32> to vector<16x32xf32>
    %268 = arith.mulf %266, %267 : vector<16x32xf32>
    %269 = vector.broadcast %6 : vector<1x32xf32> to vector<16x32xf32>
    %270 = arith.addf %268, %269 : vector<16x32xf32>
    %c0_71 = arith.constant 0 : index
    %c0_72 = arith.constant 0 : index
    %271 = vector.load %arg10[%c0_71, %c0_72] : memref<32x64xf32, #tpu.memory_space<vmem>>, vector<32x64xf32>
    %cst_73 = arith.constant dense<0.000000e+00> : vector<16x64xf32>
    %272 = tpu.matmul %270, %271, %cst_73 {dimension_numbers = #tpu.dot_dimension_numbers<[1], [0], [0], [1], [0, 0, 1, 1], [], []>} : vector<16x32xf32>, vector<32x64xf32>, vector<16x64xf32> -> vector<16x64xf32>
    %c0_74 = arith.constant 0 : index
    %c0_75 = arith.constant 0 : index
    %273 = vector.load %arg11[%c0_74, %c0_75] : memref<1x64xf32, #tpu.memory_space<vmem>>, vector<1x64xf32>
    %274 = vector.broadcast %273 : vector<1x64xf32> to vector<16x64xf32>
    %275 = arith.addf %272, %274 : vector<16x64xf32>
    %cst_76 = arith.constant 0.000000e+00 : f32
    %276 = vector.broadcast %cst_76 : f32 to vector<16x64xf32>
    %277 = arith.maximumf %275, %276 : vector<16x64xf32>
    %c0_77 = arith.constant 0 : index
    %c0_78 = arith.constant 0 : index
    %278 = vector.load %arg12[%c0_77, %c0_78] : memref<64x32xf32, #tpu.memory_space<vmem>>, vector<64x32xf32>
    %cst_79 = arith.constant dense<0.000000e+00> : vector<16x32xf32>
    %279 = tpu.matmul %277, %278, %cst_79 {dimension_numbers = #tpu.dot_dimension_numbers<[1], [0], [0], [1], [0, 0, 1, 1], [], []>} : vector<16x64xf32>, vector<64x32xf32>, vector<16x32xf32> -> vector<16x32xf32>
    %280 = vector.broadcast %7 : vector<1x32xf32> to vector<16x32xf32>
    %281 = arith.addf %279, %280 : vector<16x32xf32>
    %282 = arith.addf %270, %281 : vector<16x32xf32>
    %cst_80 = arith.constant dense<0.000000e+00> : vector<16xf32>
    %283 = vector.multi_reduction <add>, %282, %cst_80 [1] : vector<16x32xf32> to vector<16xf32>
    %284 = vector.shape_cast %283 : vector<16xf32> to vector<16x1xf32>
    %cst_81 = arith.constant 3.200000e+01 : f32
    %285 = vector.broadcast %cst_81 : f32 to vector<16x1xf32>
    %286 = arith.divf %284, %285 : vector<16x1xf32>
    %287 = vector.broadcast %286 : vector<16x1xf32> to vector<16x32xf32>
    %288 = arith.subf %282, %287 : vector<16x32xf32>
    %289 = arith.mulf %288, %288 : vector<16x32xf32>
    %cst_82 = arith.constant dense<0.000000e+00> : vector<16xf32>
    %290 = vector.multi_reduction <add>, %289, %cst_82 [1] : vector<16x32xf32> to vector<16xf32>
    %291 = vector.shape_cast %290 : vector<16xf32> to vector<16x1xf32>
    %cst_83 = arith.constant 3.200000e+01 : f32
    %292 = vector.broadcast %cst_83 : f32 to vector<16x1xf32>
    %293 = arith.divf %291, %292 : vector<16x1xf32>
    %294 = vector.broadcast %286 : vector<16x1xf32> to vector<16x32xf32>
    %295 = arith.subf %282, %294 : vector<16x32xf32>
    %cst_84 = arith.constant 9.99999974E-6 : f32
    %296 = vector.broadcast %cst_84 : f32 to vector<16x1xf32>
    %297 = arith.addf %293, %296 : vector<16x1xf32>
    %298 = math.rsqrt %297 : vector<16x1xf32>
    %299 = vector.broadcast %298 : vector<16x1xf32> to vector<16x32xf32>
    %300 = arith.mulf %295, %299 : vector<16x32xf32>
    %301 = vector.broadcast %8 : vector<1x32xf32> to vector<16x32xf32>
    %302 = arith.mulf %300, %301 : vector<16x32xf32>
    %303 = vector.broadcast %9 : vector<1x32xf32> to vector<16x32xf32>
    %304 = arith.addf %302, %303 : vector<16x32xf32>
    %305 = vector.shape_cast %304 : vector<16x32xf32> to vector<2x8x32xf32>
    %c0_85 = arith.constant 0 : index
    %c0_86 = arith.constant 0 : index
    %c0_87 = arith.constant 0 : index
    %306 = vector.load %arg14[%c0_85, %c0_86, %c0_87] : memref<2x8x32xf32, #tpu.memory_space<vmem>>, vector<2x8x32xf32>
    tpu.vector_store %arg14[%c0_85, %c0_86, %c0_87], %305 {strides = array<i32>} : memref<2x8x32xf32, #tpu.memory_space<vmem>>, vector<2x8x32xf32>,
    return
  }
  func.func @transform_0(%arg0: i32) -> (i32, i32, i32) {
    %c0_i32 = arith.constant 0 : i32
    %c0_i32_0 = arith.constant 0 : i32
    %c0_i32_1 = arith.constant 0 : i32
    return %arg0, %c0_i32, %c0_i32_0 : i32, i32, i32
  }
  func.func @transform_1(%arg0: i32) -> (i32, i32, i32) {
    %c0_i32 = arith.constant 0 : i32
    %c0_i32_0 = arith.constant 0 : i32
    %c0_i32_1 = arith.constant 0 : i32
    return %arg0, %c0_i32, %c0_i32_0 : i32, i32, i32
  }
  func.func @transform_2(%arg0: i32) -> (i32, i32, i32) {
    %c0_i32 = arith.constant 0 : i32
    %c0_i32_0 = arith.constant 0 : i32
    %c0_i32_1 = arith.constant 0 : i32
    return %arg0, %c0_i32, %c0_i32_0 : i32, i32, i32
  }
  func.func @transform_3(%arg0: i32) -> (i32, i32) {
    %c0_i32 = arith.constant 0 : i32
    %c0_i32_0 = arith.constant 0 : i32
    %c0_i32_1 = arith.constant 0 : i32
    return %c0_i32, %c0_i32_0 : i32, i32
  }
  func.func @transform_4(%arg0: i32) -> (i32, i32) {
    %c0_i32 = arith.constant 0 : i32
    %c0_i32_0 = arith.constant 0 : i32
    %c0_i32_1 = arith.constant 0 : i32
    return %c0_i32, %c0_i32_0 : i32, i32
  }
  func.func @transform_5(%arg0: i32) -> (i32, i32) {
    %c0_i32 = arith.constant 0 : i32
    %c0_i32_0 = arith.constant 0 : i32
    %c0_i32_1 = arith.constant 0 : i32
    return %c0_i32, %c0_i32_0 : i32, i32
  }
  func.func @transform_6(%arg0: i32) -> (i32, i32) {
    %c0_i32 = arith.constant 0 : i32
    %c0_i32_0 = arith.constant 0 : i32
    %c0_i32_1 = arith.constant 0 : i32
    return %c0_i32, %c0_i32_0 : i32, i32
  }
  func.func @transform_7(%arg0: i32) -> (i32, i32) {
    %c0_i32 = arith.constant 0 : i32
    %c0_i32_0 = arith.constant 0 : i32
    %c0_i32_1 = arith.constant 0 : i32
    return %c0_i32, %c0_i32_0 : i32, i32
  }
  func.func @transform_8(%arg0: i32) -> (i32, i32) {
    %c0_i32 = arith.constant 0 : i32
    %c0_i32_0 = arith.constant 0 : i32
    %c0_i32_1 = arith.constant 0 : i32
    return %c0_i32, %c0_i32_0 : i32, i32
  }
  func.func @transform_9(%arg0: i32) -> (i32, i32) {
    %c0_i32 = arith.constant 0 : i32
    %c0_i32_0 = arith.constant 0 : i32
    %c0_i32_1 = arith.constant 0 : i32
    return %c0_i32, %c0_i32_0 : i32, i32
  }
  func.func @transform_10(%arg0: i32) -> (i32, i32) {
    %c0_i32 = arith.constant 0 : i32
    %c0_i32_0 = arith.constant 0 : i32
    %c0_i32_1 = arith.constant 0 : i32
    return %c0_i32, %c0_i32_0 : i32, i32
  }
  func.func @transform_11(%arg0: i32) -> (i32, i32) {
    %c0_i32 = arith.constant 0 : i32
    %c0_i32_0 = arith.constant 0 : i32
    %c0_i32_1 = arith.constant 0 : i32
    return %c0_i32, %c0_i32_0 : i32, i32
  }
  func.func @transform_12(%arg0: i32) -> (i32, i32) {
    %c0_i32 = arith.constant 0 : i32
    %c0_i32_0 = arith.constant 0 : i32
    %c0_i32_1 = arith.constant 0 : i32
    return %c0_i32, %c0_i32_0 : i32, i32
  }
  func.func @transform_13(%arg0: i32) -> (i32, i32, i32) {
    %c0_i32 = arith.constant 0 : i32
    %c0_i32_0 = arith.constant 0 : i32
    %c0_i32_1 = arith.constant 0 : i32
    return %arg0, %c0_i32, %c0_i32_0 : i32, i32, i32
  }
  func.func @transform_14(%arg0: i32) -> (i32, i32, i32, i32) {
    %c0_i32 = arith.constant 0 : i32
    %c0_i32_0 = arith.constant 0 : i32
    %c0_i32_1 = arith.constant 0 : i32
    %c0_i32_2 = arith.constant 0 : i32
    return %arg0, %c0_i32, %c0_i32_0, %c0_i32_1 : i32, i32, i32, i32
  }
}

</mosaic_0001>

<bundles_post_ra>
// kernel: tpu_custom_call.1
= control target key start
LH: loop header
LB: loop body
LE: loop exit
PB: predicated region body
PF: predicated region fallthrough
CT: control target
= control target key end

     0   :  { %20 = vsyncpa [#allocation3], 0  ;;  %s2961_s0 = inlined_call_operand.hbm [shape: f32[2,8,32], index: 0, kind: input, shape index: {}]   ;;  %s2962_s1 = inlined_call_operand.hbm [shape: f32[2,8,32], index: 1, kind: input, shape index: {}]   ;;  %s2963_s2 = inlined_call_operand.hbm [shape: f32[2,1,8], index: 2, kind: input, shape index: {}]   ;;  %s2964_s3 = inlined_call_operand.vmem [shape: f32[32,96], index: 3, kind: input, shape index: {}]   ;;  %s2965_s4 = inlined_call_operand.vmem [shape: f32[1,96], index: 4, kind: input, shape index: {}]   ;;  %s2966_s5 = inlined_call_operand.vmem [shape: f32[32,32], index: 5, kind: input, shape index: {}]   ;;  %s2967_s6 = inlined_call_operand.vmem [shape: f32[32,96], index: 6, kind: input, shape index: {}]   ;;  %s2968_s7 = inlined_call_operand.vmem [shape: f32[1,96], index: 7, kind: input, shape index: {}]   ;;  %s2969_s8 = inlined_call_operand.hbm [shape: f32[32,32], index: 8, kind: input, shape index: {}]   ;;  %s2970_s9 = inlined_call_operand.hbm [shape: f32[32,64], index: 9, kind: input, shape index: {}]   ;;  %s2971_s10 = inlined_call_operand.vmem [shape: f32[1,64], index: 10, kind: input, shape index: {}]   ;;  %s2972_s11 = inlined_call_operand.vmem [shape: f32[64,32], index: 11, kind: input, shape index: {}]   ;;  %s2973_s12 = inlined_call_operand.hbm [shape: f32[9,32], index: 12, kind: input, shape index: {}]   ;;  %s2974_s13 = inlined_call_operand.hbm [shape: f32[2,8,32], index: 13, kind: output, shape index: {0}]   ;;  %s2975_s14 = inlined_call_operand.hbm [shape: f32[2,4,8,8], index: 14, kind: output, shape index: {1}]  }
   0x1   :  { %21 = vsyncpa [#allocation6], 0 }
   0x2   :  { %22 = vsyncpa [#allocation9], 0 }
   0x3   :  { %23 = vsyncpa [#allocation12], 0 }
   0x4   :  { %24 = vsyncpa [#allocation4], 0 }
   0x5   :  { %25 = vsyncpa [#allocation15], 0  ;;  %s43_s15 = sshll.u32 %s2962_s1, 4  ;;  %s2364_s16 = smov [#allocation5]   ;;  %s44_s15 = int_to_ptr.hbm [resolvable:$true] %s43_s15 }
   0x6   :  { %s45_s17 = sshll.u32 %s2364_s16, 4  ;;  %s79_s20 = sshll.u32 %s2969_s8, 4  ;;  %s46_s17 = int_to_ptr.vmem [resolvable:$true] %s45_s17  ;;  %s80_s20 = int_to_ptr.hbm [resolvable:$true] %s79_s20 }
   0x7   :  { %s2365_s21 = smov 128   ;;  %s2366_s22 = smov 8  }
   0x8   :  { %51 = dma.hbm_to_vmem [thread:$0]  %s44_s15, 256, %s46_s17, [#allocation6], %s2365_s21, %s2365_s21, %s2366_s22  }
   0x9   :  { %s2367_s23 = smov [#allocation8]   ;;  %s30_s1 = sshll.u32 %s2961_s0, 4  ;;  %s31_s1 = int_to_ptr.hbm [resolvable:$true] %s30_s1 }
   0xa   :  { %s81_s24 = sshll.u32 %s2367_s23, 4  ;;  %s56_s28 = sshll.u32 %s2963_s2, 4  ;;  %s82_s24 = int_to_ptr.vmem [resolvable:$true] %s81_s24  ;;  %s57_s28 = int_to_ptr.hbm [resolvable:$true] %s56_s28 }
   0xb   :  { %87 = dma.hbm_to_vmem [thread:$0]  %s80_s20, 512, %s82_s24, [#allocation9], %s2365_s21, %s2365_s21, %s2366_s22  }
   0xc   :  { %s2368_s29 = smov [#allocation2]   ;;  %s2369_s15 = smov [#allocation7]  }
   0xd   :  { %s32_s30 = sshll.u32 %s2368_s29, 4  ;;  %s58_s0 = sshll.u32 %s2369_s15, 4  ;;  %s33_s30 = int_to_ptr.vmem [resolvable:$true] %s32_s30  ;;  %s59_s0 = int_to_ptr.vmem [resolvable:$true] %s58_s0 }
   0xe   :  { %38 = dma.hbm_to_vmem [thread:$0]  %s31_s1, 256, %s33_s30, [#allocation3], %s2365_s21, %s2365_s21, %s2366_s22  }
   0xf   :  { %s2370_s16 = smov 16   ;;  %s2371_s17 = smov 1  }
  0x10   :  { %64 = dma.hbm_to_vmem [thread:$0]  %s57_s28, 32, %s59_s0, [#allocation6], %s2370_s16, %s2370_s16, %s2371_s17  }
  0x11   :  { %s92_s2 = sshll.u32 %s2970_s9, 4  ;;  %s2372_s20 = smov [#allocation10]   ;;  %s93_s2 = int_to_ptr.hbm [resolvable:$true] %s92_s2 }
  0x12   :  { %s94_s23 = sshll.u32 %s2372_s20, 4  ;;  %s109_s26 = sshll.u32 %s2973_s12, 4  ;;  %s95_s23 = int_to_ptr.vmem [resolvable:$true] %s94_s23  ;;  %s110_s26 = int_to_ptr.hbm [resolvable:$true] %s109_s26 }
  0x13   :  { %100 = dma.hbm_to_vmem [thread:$0]  %s93_s2, 512, %s95_s23, [#allocation9], %s2365_s21, %s2365_s21, %s2366_s22  }
  0x14   :  { %s2373_s1 = smov [#allocation11]  }
  0x15   :  { %s111_s8 = sshll.u32 %s2373_s1, 4  ;;  %s112_s8 = int_to_ptr.vmem [resolvable:$true] %s111_s8 }
  0x16   :  { %117 = dma.hbm_to_vmem [thread:$0]  %s110_s26, 256, %s112_s8, [#allocation12], %s2365_s21, %s2365_s21, %s2366_s22  }
  0x17   :  { %2352 = dma.done.wait [#allocation3], 256  }
  0x18   :  { %2353 = vsyncadd [#allocation3], 4294967040 }
  0x19   :  { %2354 = dma.done.wait [#allocation6], 288  }
  0x1a   :  { %2355 = vsyncadd [#allocation6], 4294967008 }
  0x1b   :  { %2356 = dma.done.wait [#allocation9], 1024  }
  0x1c   :  { %2357 = vsyncadd [#allocation9], 4294966272 }
  0x1d   :  { %2358 = dma.done.wait [#allocation12], 256  }
  0x1e   :  { %2359 = vsyncadd [#allocation12], 4294967040  ;;  %v157_v0 = vld [vmem:[%s2964_s3 + $0x18] sm:$0xff]  ;;  %v156_v1 = vld [vmem:[%s2964_s3 + $0x10] sm:$0xff]  ;;  %vm162_vm0 = vcmask 261120   ;;  %s2374_s19 = smov 120   ;;  %v148_v13 = vlaneseq }
  0x1f   :  { %181 = vmatpush.msra.mxu0 %v157_v0  ;;  %v155_v2 = vld [vmem:[%s2964_s3 + $0x8] sm:$0xff]  ;;  %v154_v3 = vld [vmem:[%s2964_s3] sm:$0xff]  ;;  %s2375_s3 = smov 80   ;;  %s2376_s2 = smov 104   ;;  %vm201_vm1 = vcmask 64512  }
  0x20   :  { %v2507_v4 = vld [vmem:[#allocation2] sm:$0xff]  ;;  %s2377_s20 = smov 56   ;;  %v2536_v12 = vld [vmem:[#allocation2 + $0x8] sm:$0xff]  ;;  %v149_v14 = vshrl.u32 %v148_v13, 7  ;;  %v151_v15 = vand.u32 127, %v148_v13  ;;  %s2380_s23 = smov 24  }
  0x21   :  { %182 = vmatpush.msra.mxu0 %v156_v1  ;;  %v2075_v5 = vld [vmem:[%s2965_s4] ss:$0 sm:$0xff]  ;;  %v2378_v17 = vmov -1e+10   ;;  %s2379_s4 = smov 112   ;;  %s2381_s15 = smov 96  }
  0x22   :  { %vm152_vm2 = vcmp.ge.s32.totalorder %v149_v14, %v151_v15  ;;  %s1946_s17 = sshll.u32 %s2975_s14, 4  ;;  %s2384_s14 = smov [#allocation13]   ;;  %s1947_s17 = int_to_ptr.hbm [resolvable:$true] %s1946_s17 }
  0x23   :  { %183 = vmatpush.msra.mxu0 %v155_v2  ;;  %v2541_v18 = vsel %vm152_vm2, 0.0, %v2378_v17  ;;  %s1931_s18 = sshll.u32 %s2384_s14, 4  ;;  %s1933_s24 = sshll.u32 %s2974_s13, 4  ;;  %s1932_s18 = int_to_ptr.vmem [resolvable:$true] %s1931_s18  ;;  %s1934_s24 = int_to_ptr.hbm [resolvable:$true] %s1933_s24 }
  0x25   :  { %184 = vmatpush.msra.mxu0 %v154_v3 }
  0x26   :  { %1967 = vmatmul.msk.f32.vlgmr.msra.gmra.mxu0 %vm162_vm0, %v2507_v4 }
  0x2e   :  { %1968 = vmatmul.msk.f32.gmra.mxu0 %vm162_vm0, %v2536_v12 }
  0xa3   :  { %v186_v6 = vpop.f32.mrf.mxu0 }
  0xa4   :  { %v2514_v7 = vadd.f32 %v2075_v5, %v186_v6 }
  0xa6   :  { %199 = vrot.lane.b32.xlu2 %v2514_v7, %s2374_s19  ;;  %195 = vrot.lane.b32.xlu1 %v2514_v7, %s2375_s3 }
  0xa7   :  { %193 = vrot.lane.b32.xlu0 %v2514_v7, %s2376_s2 }
  0xab   :  { %v189_v27 = vpop.f32.mrf.mxu0 }
  0xac   :  { %v2559_v31 = vadd.f32 %v2075_v5, %v189_v27 }
  0xaf   :  { %197 = vrot.lane.b32.xlu0 %v2514_v7, %s2377_s20 }
 0x100   :  { %v200_v8 = vpop.permute.xlu2 %199 }
 0x101   :  { %1969 = vmatpush.xpose.msk.msra.mxu1 %vm201_vm1, %v200_v8 }
 0x104   :  { %1970 = vmatmul.msk.f32.vlgmr.msra.gmra.mxu1 %vm201_vm1, %v2514_v7 }
 0x118   :  { %v2527_v9 = vpop.permute.xlu1 %195 }
 0x119   :  { %v2529_v10 = vpop.permute.xlu0 %193  ;;  %252 = vrot.lane.b32.xlu0 %v2527_v9, %s2374_s19 }
 0x11a   :  { %226 = vrot.lane.b32.xlu1 %v2529_v10, %s2374_s19 }
 0x121   :  { %v198_v11 = vpop.permute.xlu0 %197 }
 0x122   :  { %278 = vrot.lane.b32.xlu2 %v198_v11, %s2374_s19 }
 0x17c   :  { %v279_v16 = vpop.permute.xlu2 %278 }
 0x17d   :  { %1975 = vmatpush.xpose.msk.msrb.mxu1 %vm201_vm1, %v279_v16 }
 0x180   :  { %1976 = vmatmul.msk.f32.vlgmr.msrb.gmra.mxu1 %vm201_vm1, %v198_v11 }
 0x181   :  { %v223_v19 = vpop.f32.mrf.mxu1 }
 0x182   :  { %v224_v20 = vadd.f32 %v223_v19, %v2541_v18 }
 0x184   :  { %v304_v21 = vsel %vm201_vm1, %v224_v20, -inf }
 0x185   :  { %305 = vmax.xlane.f32.xlu2 %v304_v21 }
 0x18b   :  { %v253_v22 = vpop.permute.xlu0 %252 }
 0x18c   :  { %v227_v23 = vpop.permute.xlu1 %226  ;;  %1973 = vmatpush.xpose.msk.msrb.mxu0 %vm201_vm1, %v253_v22 }
 0x18d   :  { %1971 = vmatpush.xpose.msk.msra.mxu2 %vm201_vm1, %v227_v23 }
 0x18f   :  { %1974 = vmatmul.msk.f32.vlgmr.msrb.gmra.mxu0 %vm201_vm1, %v2527_v9 }
 0x190   :  { %1972 = vmatmul.msk.f32.vlgmr.msra.gmra.mxu2 %vm201_vm1, %v2529_v10 }
 0x1f8   :  { %v306_v35 = vpop.xlane.xlu2 %305 }
 0x1f9   :  { %v316_v36 = vsub.f32 %v224_v20, %v306_v35 }
 0x1fb   :  { %v320_v37 = vmul.f32 1.442695, %v316_v36 }
 0x1fd   :  { %v301_v24 = vpop.f32.mrf.mxu1  ;;  %2081 = vpow2.f32 %v320_v37 }
 0x1fe   :  { %v302_v25 = vadd.f32 %v301_v24, %v2541_v18 }
 0x200   :  { %v313_v26 = vsel %vm201_vm1, %v302_v25, -inf }
 0x201   :  { %314 = vmax.xlane.f32.xlu0 %v313_v26 }
 0x203   :  { %v2082_v38 = vpop.eup %2081 }
 0x204   :  { %v328_v39 = vsel %vm201_vm1, %v2082_v38, 0.0 }
 0x20c   :  { %v275_v28 = vpop.f32.mrf.mxu0 }
 0x20d   :  { %v2555_v29 = vadd.f32 %v275_v28, %v2541_v18 }
 0x20f   :  { %v310_v30 = vsel %vm201_vm1, %v2555_v29, -inf }
 0x210   :  { %311 = vmax.xlane.f32.xlu2 %v310_v30 }
 0x213   :  { %v249_v32 = vpop.f32.mrf.mxu2 }
 0x214   :  { %v250_v33 = vadd.f32 %v249_v32, %v2541_v18 }
 0x215   :  { %528 = vrot.lane.b32.xlu0 %v2559_v31, %s2375_s3 }
 0x216   :  { %v307_v34 = vsel %vm201_vm1, %v250_v33, -inf }
 0x217   :  { %308 = vmax.xlane.f32.xlu1 %v307_v34 }
 0x228   :  { %530 = vrot.lane.b32.xlu2 %v2559_v31, %s2377_s20 }
 0x230   :  { %526 = vrot.lane.b32.xlu1 %v2559_v31, %s2376_s2 }
 0x23f   :  { %329 = vadd.xlane.f32.xlu0 %v328_v39 }
 0x253   :  { %532 = vrot.lane.b32.xlu0 %v2559_v31, %s2374_s19 }
 0x25b   :  { %404 = vrot.lane.b32.xlu0 %v2514_v7, %s2379_s4 }
 0x263   :  { %482 = vrot.lane.b32.xlu0 %v198_v11, %s2379_s4 }
 0x274   :  { %v315_v40 = vpop.xlane.xlu0 %314 }
 0x275   :  { %v319_v41 = vsub.f32 %v302_v25, %v315_v40 }
 0x277   :  { %v326_v42 = vmul.f32 1.442695, %v319_v41 }
 0x279   :  { %2083 = vpow2.f32 %v326_v42 }
 0x27f   :  { %v2575_v43 = vpop.eup %2083 }
 0x280   :  { %v337_v44 = vsel %vm201_vm1, %v2575_v43, 0.0 }
 0x281   :  { %338 = vadd.xlane.f32.xlu2 %v337_v44 }
 0x283   :  { %v312_v45 = vpop.xlane.xlu2 %311 }
 0x284   :  { %v318_v0 = vsub.f32 %v2555_v29, %v312_v45 }
 0x286   :  { %v324_v3 = vmul.f32 1.442695, %v318_v0 }
 0x287   :  { %v2589_v52 = vpop.permute.xlu0 %528 }
 0x28a   :  { %v309_v46 = vpop.xlane.xlu1 %308 }
 0x28b   :  { %v317_v47 = vsub.f32 %v250_v33, %v309_v46  ;;  %v2579_v48 = vpop.permute.xlu2 %530 }
 0x28c   :  { %610 = vrot.lane.b32.xlu0 %v2579_v48, %s2374_s19 }
 0x28d   :  { %v322_v49 = vmul.f32 1.442695, %v317_v47 }
 0x28f   :  { %2085 = vpow2.f32 %v322_v49 }
 0x294   :  { %456 = vrot.lane.b32.xlu0 %v2527_v9, %s2379_s4 }
 0x295   :  { %v2585_v50 = vpop.eup %2085 }
 0x296   :  { %v331_v51 = vsel %vm201_vm1, %v2585_v50, 0.0 }
 0x297   :  { %332 = vadd.xlane.f32.xlu1 %v331_v51 }
 0x29c   :  { %584 = vrot.lane.b32.xlu0 %v2589_v52, %s2374_s19 }
 0x2a2   :  { %v2593_v53 = vpop.permute.xlu1 %526 }
 0x2a3   :  { %558 = vrot.lane.b32.xlu2 %v2593_v53, %s2374_s19 }
 0x2b0   :  { %430 = vrot.lane.b32.xlu1 %v2529_v10, %s2379_s4 }
 0x2b2   :  { %v330_v54 = vpop.xlane.xlu0 %329 }
 0x2b3   :  { %2087 = vrcp.f32 %v330_v54  ;;  %v351_v60 = vand.u32 2147483648, %v330_v54  ;;  %vm345_vm4 = vweird.f32 %v330_v54  ;;  %v349_v61 = vand.u32 2147483647, %v330_v54 }
 0x2b4   :  { %2089 = vpow2.f32 %v324_v3 }
 0x2b5   :  { %v352_v1 = vor.u32 1.1754944e-38, %v351_v60  ;;  %vm350_vm6 = vcmp.eq.f32.partialorder %v349_v61, 8.507059e+37 }
 0x2b9   :  { %v2088_v55 = vpop.eup %2087 }
 0x2ba   :  { %v341_v56 = vmul.f32 %v2088_v55, %v330_v54  ;;  %vm346_vm3 = vweird.f32 %v2088_v55  ;;  %v2603_v8 = vpop.eup %2089 }
 0x2bb   :  { %vm347_vm5 = vmor %vm345_vm4, %vm346_vm3  ;;  %v334_v9 = vsel %vm201_vm1, %v2603_v8, 0.0 }
 0x2bc   :  { %v342_v57 = vsub.f32 1.0, %v341_v56 }
 0x2be   :  { %v343_v58 = vmul.f32 %v2088_v55, %v342_v57 }
 0x2c0   :  { %v344_v59 = vadd.f32 %v2088_v55, %v343_v58 }
 0x2c2   :  { %v348_v63 = vsel %vm347_vm5, %v2088_v55, %v344_v59 }
 0x2c3   :  { %v353_v2 = vsel %vm350_vm6, %v352_v1, %v348_v63 }
 0x2c4   :  { %v400_v6 = vmul.f32 %v2082_v38, %v353_v2 }
 0x2c5   :  { %v2599_v62 = vpop.permute.xlu0 %532 }
 0x2cd   :  { %v405_v5 = vpop.permute.xlu0 %404 }
 0x2ce   :  { %425 = vmatpush.msrb.mxu2 %v405_v5 }
 0x2cf   :  { %1977 = vmatmul.msk.f32.vlgmr.msrb.gmra.mxu2 %vm201_vm1, %v400_v6 }
 0x2d5   :  { %v483_v7 = vpop.permute.xlu0 %482 }
 0x2d6   :  { %503 = vmatpush.msra.mxu2 %v483_v7 }
 0x2da   :  { %335 = vadd.xlane.f32.xlu1 %v334_v9 }
 0x2f4   :  { %v339_v10 = vpop.xlane.xlu2 %338 }
 0x2f5   :  { %2091 = vrcp.f32 %v339_v10  ;;  %v396_v17 = vand.u32 2147483648, %v339_v10  ;;  %v394_v20 = vand.u32 2147483647, %v339_v10  ;;  %vm390_vm8 = vweird.f32 %v339_v10 }
 0x2f7   :  { %v397_v22 = vor.u32 1.1754944e-38, %v396_v17  ;;  %vm395_vm10 = vcmp.eq.f32.partialorder %v394_v20, 8.507059e+37 }
 0x2fb   :  { %v2092_v11 = vpop.eup %2091 }
 0x2fc   :  { %v386_v13 = vmul.f32 %v2092_v11, %v339_v10  ;;  %vm391_vm7 = vweird.f32 %v2092_v11 }
 0x2fd   :  { %v559_v14 = vpop.permute.xlu2 %558  ;;  %vm392_vm9 = vmor %vm390_vm8, %vm391_vm7 }
 0x2fe   :  { %v387_v15 = vsub.f32 1.0, %v386_v13  ;;  %1983 = vmatpush.xpose.msk.msra.mxu0 %vm201_vm1, %v559_v14  ;;  %v611_v16 = vpop.permute.xlu0 %610 }
 0x2ff   :  { %1987 = vmatpush.xpose.msk.msrb.mxu2 %vm201_vm1, %v611_v16 }
 0x300   :  { %v388_v19 = vmul.f32 %v2092_v11, %v387_v15 }
 0x301   :  { %1984 = vmatmul.msk.f32.vlgmr.msra.gmra.mxu0 %vm201_vm1, %v2593_v53 }
 0x302   :  { %v389_v21 = vadd.f32 %v2092_v11, %v388_v19 }
 0x304   :  { %v393_v23 = vsel %vm392_vm9, %v2092_v11, %v389_v21 }
 0x305   :  { %v398_v24 = vsel %vm395_vm10, %v397_v22, %v393_v23 }
 0x306   :  { %v457_v25 = vpop.permute.xlu0 %456  ;;  %v403_v26 = vmul.f32 %v2575_v43, %v398_v24 }
 0x307   :  { %477 = vmatpush.msra.mxu1 %v457_v25 }
 0x308   :  { %1980 = vmatmul.msk.f32.vlgmr.msra.gmra.mxu2 %vm201_vm1, %v403_v26 }
 0x30a   :  { %v333_v27 = vpop.xlane.xlu1 %332 }
 0x30b   :  { %2093 = vrcp.f32 %v333_v27  ;;  %v366_v35 = vand.u32 2147483648, %v333_v27  ;;  %vm360_vm12 = vweird.f32 %v333_v27  ;;  %v364_v36 = vand.u32 2147483647, %v333_v27 }
 0x30d   :  { %v367_v38 = vor.u32 1.1754944e-38, %v366_v35  ;;  %vm365_vm14 = vcmp.eq.f32.partialorder %v364_v36, 8.507059e+37 }
 0x30e   :  { %v585_v28 = vpop.permute.xlu0 %584 }
 0x30f   :  { %1985 = vmatpush.xpose.msk.msrb.mxu1 %vm201_vm1, %v585_v28 }
 0x310   :  { %1988 = vmatmul.msk.f32.vlgmr.msrb.gmra.mxu2 %vm201_vm1, %v2579_v48 }
 0x311   :  { %v2094_v29 = vpop.eup %2093 }
 0x312   :  { %v356_v30 = vmul.f32 %v2094_v29, %v333_v27  ;;  %vm361_vm11 = vweird.f32 %v2094_v29 }
 0x313   :  { %vm362_vm13 = vmor %vm360_vm12, %vm361_vm11 }
 0x314   :  { %v357_v32 = vsub.f32 1.0, %v356_v30 }
 0x316   :  { %v358_v33 = vmul.f32 %v2094_v29, %v357_v32 }
 0x318   :  { %v359_v34 = vadd.f32 %v2094_v29, %v358_v33 }
 0x31a   :  { %v363_v37 = vsel %vm362_vm13, %v2094_v29, %v359_v34 }
 0x31b   :  { %v368_v39 = vsel %vm365_vm14, %v367_v38, %v363_v37 }
 0x31c   :  { %v401_v41 = vmul.f32 %v2585_v50, %v368_v39 }
 0x322   :  { %v431_v40 = vpop.permute.xlu1 %430 }
 0x323   :  { %451 = vmatpush.msra.mxu3 %v431_v40 }
 0x324   :  { %1978 = vmatmul.msk.f32.vlgmr.msra.gmra.mxu3 %vm201_vm1, %v401_v41 }
 0x325   :  { %1981 = vmatpush.xpose.msk.msrb.mxu3 %vm201_vm1, %v2599_v62 }
 0x32c   :  { %1982 = vmatmul.msk.f32.vlgmr.msrb.gmra.mxu3 %vm201_vm1, %v2559_v31 }
 0x34d   :  { %v336_v42 = vpop.xlane.xlu1 %335 }
 0x34e   :  { %2095 = vrcp.f32 %v336_v42  ;;  %v381_v46 = vand.u32 2147483648, %v336_v42  ;;  %v379_v49 = vand.u32 2147483647, %v336_v42  ;;  %vm375_vm2 = vweird.f32 %v336_v42 }
 0x350   :  { %v382_v50 = vor.u32 1.1754944e-38, %v381_v46  ;;  %vm380_vm4 = vcmp.eq.f32.partialorder %v379_v49, 8.507059e+37 }
 0x352   :  { %v2628_v60 = vpop.f32.mrf.mxu2 }
 0x354   :  { %v2096_v43 = vpop.eup %2095 }
 0x355   :  { %v371_v44 = vmul.f32 %v2096_v43, %v336_v42  ;;  %vm376_vm15 = vweird.f32 %v2096_v43 }
 0x356   :  { %vm377_vm3 = vmor %vm375_vm2, %vm376_vm15 }
 0x357   :  { %v372_v45 = vsub.f32 1.0, %v371_v44 }
 0x359   :  { %v373_v47 = vmul.f32 %v2096_v43, %v372_v45 }
 0x35b   :  { %v374_v51 = vadd.f32 %v2096_v43, %v373_v47 }
 0x35d   :  { %v378_v54 = vsel %vm377_vm3, %v2096_v43, %v374_v51 }
 0x35e   :  { %v383_v55 = vsel %vm380_vm4, %v382_v50, %v378_v54 }
 0x35f   :  { %v402_v56 = vmul.f32 %v2603_v8, %v383_v55 }
 0x361   :  { %1979 = vmatmul.msk.f32.vlgmr.msra.gmra.mxu1 %vm201_vm1, %v402_v56 }
 0x369   :  { %1986 = vmatmul.msk.f32.vlgmr.msrb.gmra.mxu1 %vm201_vm1, %v2589_v52 }
 0x37e   :  { %v581_v57 = vpop.f32.mrf.mxu0 }
 0x37f   :  { %v582_v58 = vadd.f32 %v581_v57, %v2541_v18 }
 0x381   :  { %v639_v59 = vsel %vm201_vm1, %v582_v58, -inf }
 0x382   :  { %640 = vmax.xlane.f32.xlu1 %v639_v59 }
 0x38b   :  { %v505_v61 = vpop.f32.mrf.mxu2 }
 0x393   :  { %v633_v62 = vpop.f32.mrf.mxu2 }
 0x394   :  { %v634_v63 = vadd.f32 %v633_v62, %v2541_v18 }
 0x396   :  { %v645_v0 = vsel %vm201_vm1, %v634_v63, -inf }
 0x397   :  { %646 = vmax.xlane.f32.xlu0 %v645_v0  ;;  %v858_v0 = vld [vmem:[%s2966_s5 + $0x18] sm:$0xff] }
 0x3a7   :  { %v453_v1 = vpop.f32.mrf.mxu3 }
 0x3ab   :  { %509 = vrot.lane.b32.xlu0 %v453_v1, %s2366_s22  ;;  %v857_v1 = vld [vmem:[%s2966_s5 + $0x10] sm:$0xff] }
 0x3af   :  { %v555_v13 = vpop.f32.mrf.mxu3 }
 0x3b0   :  { %v556_v14 = vadd.f32 %v555_v13, %v2541_v18 }
 0x3b2   :  { %v636_v15 = vsel %vm201_vm1, %v556_v14, -inf }
 0x3de   :  { %v479_v2 = vpop.f32.mrf.mxu1 }
 0x3e6   :  { %v607_v3 = vpop.f32.mrf.mxu1 }
 0x3e7   :  { %v608_v5 = vadd.f32 %v607_v3, %v2541_v18  ;;  %v2050_v18 = vpack.i.bf16 %v2593_v53, %v2579_v48  ;;  %v855_v3 = vld [vmem:[%s2966_s5] sm:$0xff] }
 0x3e9   :  { %v642_v6 = vsel %vm201_vm1, %v608_v5, -inf }
 0x3ea   :  { %643 = vmax.xlane.f32.xlu2 %v642_v6 }
 0x3f5   :  { %v641_v7 = vpop.xlane.xlu1 %640 }
 0x3f6   :  { %v649_v8 = vsub.f32 %v582_v58, %v641_v7 }
 0x3f8   :  { %v654_v9 = vmul.f32 1.442695, %v649_v8 }
 0x3fa   :  { %2097 = vpow2.f32 %v654_v9 }
 0x400   :  { %v2098_v10 = vpop.eup %2097 }
 0x401   :  { %v663_v11 = vsel %vm201_vm1, %v2098_v10, 0.0 }
 0x402   :  { %513 = vrot.lane.b32.xlu2 %v479_v2, %s2370_s16  ;;  %664 = vadd.xlane.f32.xlu1 %v663_v11  ;;  %v856_v2 = vld [vmem:[%s2966_s5 + $0x8] sm:$0xff] }
 0x41b   :  { %736 = vrot.lane.b32.xlu1 %v2559_v31, %s2379_s4  ;;  %v647_v31 = vpop.xlane.xlu0 %646 }
 0x41c   :  { %v651_v22 = vsub.f32 %v634_v63, %v647_v31 }
 0x41e   :  { %v658_v23 = vmul.f32 1.442695, %v651_v22 }
 0x423   :  { %v2656_v34 = vpop.permute.xlu0 %509 }
 0x445   :  { %637 = vmax.xlane.f32.xlu1 %v636_v15 }
 0x45d   :  { %v644_v16 = vpop.xlane.xlu2 %643 }
 0x45e   :  { %v650_v17 = vsub.f32 %v608_v5, %v644_v16  ;;  %517 = vrot.lane.b32.xlu1 %v505_v61, %s2380_s23 }
 0x460   :  { %v656_v19 = vmul.f32 1.442695, %v650_v17 }
 0x462   :  { %2099 = vpow2.f32 %v656_v19 }
 0x463   :  { %2101 = vpow2.f32 %v658_v23 }
 0x468   :  { %v2642_v20 = vpop.eup %2099 }
 0x469   :  { %v666_v21 = vsel %vm201_vm1, %v2642_v20, 0.0  ;;  %v2102_v24 = vpop.eup %2101 }
 0x46a   :  { %667 = vadd.xlane.f32.xlu0 %v666_v21  ;;  %v669_v26 = vsel %vm201_vm1, %v2102_v24, 0.0 }
 0x475   :  { %v665_v25 = vpop.xlane.xlu1 %664 }
 0x476   :  { %v698_v39 = vand.u32 2147483648, %v665_v25  ;;  %vm692_vm6 = vweird.f32 %v665_v25  ;;  %v696_v40 = vand.u32 2147483647, %v665_v25 }
 0x478   :  { %v699_v42 = vor.u32 1.1754944e-38, %v698_v39  ;;  %vm697_vm8 = vcmp.eq.f32.partialorder %v696_v40, 8.507059e+37  ;;  %v948_v39 = vld [vmem:[%s2967_s6] sm:$0xff]  ;;  %v949_v40 = vld [vmem:[%s2967_s6 + $0x8] sm:$0xff] }
 0x47e   :  { %2051 = vrot.lane.b32.xlu0 %v2050_v18, %s2379_s4 }
 0x488   :  { %670 = vadd.xlane.f32.xlu1 %v669_v26 }
 0x48d   :  { %v737_v27 = vpop.permute.xlu1 %736 }
 0x48e   :  { %757 = vmatpush.msra.mxu3 %v737_v27 }
 0x490   :  { %878 = vmatpush.msrb.mxu3 %v858_v0 }
 0x492   :  { %879 = vmatpush.msrb.mxu3 %v857_v1  ;;  %v146_v1 = vld [vmem:[#allocation5] sm:$0xff] }
 0x494   :  { %880 = vmatpush.msrb.mxu3 %v856_v2 }
 0x496   :  { %881 = vmatpush.msrb.mxu3 %v855_v3 }
 0x4b8   :  { %v638_v28 = vpop.xlane.xlu1 %637 }
 0x4b9   :  { %v648_v29 = vsub.f32 %v556_v14, %v638_v28  ;;  %v514_v28 = vpop.permute.xlu2 %513 }
 0x4bb   :  { %v652_v30 = vmul.f32 1.442695, %v648_v29 }
 0x4bd   :  { %2103 = vpow2.f32 %v652_v30 }
 0x4be   :  { %2105 = vrcp.f32 %v665_v25 }
 0x4c3   :  { %v2650_v32 = vpop.eup %2103 }
 0x4c4   :  { %v660_v33 = vsel %vm201_vm1, %v2650_v32, 0.0  ;;  %v2106_v48 = vpop.eup %2105 }
 0x4c5   :  { %661 = vadd.xlane.f32.xlu1 %v660_v33  ;;  %v688_v53 = vmul.f32 %v2106_v48, %v665_v25  ;;  %vm693_vm5 = vweird.f32 %v2106_v48  ;;  %v520_v33 = vsel %vm201_vm1, %v2628_v60, %v2656_v34  ;;  %v950_v60 = vld [vmem:[%s2967_s6 + $0x10] sm:$0xff] }
 0x4c6   :  { %vm694_vm7 = vmor %vm692_vm6, %vm693_vm5 }
 0x4c7   :  { %v689_v35 = vsub.f32 1.0, %v688_v53 }
 0x4c9   :  { %v690_v36 = vmul.f32 %v2106_v48, %v689_v35 }
 0x4cb   :  { %v691_v37 = vadd.f32 %v2106_v48, %v690_v36 }
 0x4cd   :  { %v695_v41 = vsel %vm694_vm7, %v2106_v48, %v691_v37  ;;  %vm521_vm7 = vcmask 130048  }
 0x4ce   :  { %v700_v43 = vsel %vm697_vm8, %v699_v42, %v695_v41  ;;  %vm523_vm8 = vcmask 195584   ;;  %v522_v48 = vsel %vm521_vm7, %v520_v33, %v514_v28  ;;  %v2060_v42 = vpack.i.bf16 %v948_v39, %v949_v40 }
 0x4d0   :  { %v2660_v47 = vpop.permute.xlu1 %517 }
 0x4dd   :  { %v2658_v38 = vpop.xlane.xlu0 %667 }
 0x4de   :  { %788 = vrot.lane.b32.xlu1 %v2589_v52, %s2379_s4  ;;  %v733_v52 = vmul.f32 %v2098_v10, %v700_v43  ;;  %v713_v21 = vand.u32 2147483648, %v2658_v38  ;;  %vm707_vm3 = vweird.f32 %v2658_v38  ;;  %v711_v22 = vand.u32 2147483647, %v2658_v38 }
 0x4e0   :  { %v714_v26 = vor.u32 1.1754944e-38, %v713_v21  ;;  %vm712_vm6 = vcmp.eq.f32.partialorder %v711_v22, 8.507059e+37 }
 0x4f0   :  { %v2052_v44 = vpop.permute.xlu0 %2051 }
 0x4f1   :  { %v2054_v45 = vunpack.i.h.bf16 %v2052_v44  ;;  %v2053_v46 = vunpack.i.l.bf16 %v2052_v44 }
 0x4f3   :  { %783 = vmatpush.msrb.mxu0 %v2054_v45  ;;  %835 = vmatpush.msra.mxu2 %v2053_v46 }
 0x4f4   :  { %1990 = vmatmul.msk.f32.vlgmr.msrb.gmra.mxu0 %vm201_vm1, %v733_v52 }
 0x4fb   :  { %v671_v49 = vpop.xlane.xlu1 %670 }
 0x4fc   :  { %2107 = vrcp.f32 %v671_v49  ;;  %v728_v55 = vand.u32 2147483648, %v671_v49  ;;  %v726_v57 = vand.u32 2147483647, %v671_v49  ;;  %vm722_vm10 = vweird.f32 %v671_v49 }
 0x4fd   :  { %2109 = vrcp.f32 %v2658_v38 }
 0x4fe   :  { %v729_v59 = vor.u32 1.1754944e-38, %v728_v55  ;;  %vm727_vm12 = vcmp.eq.f32.partialorder %v726_v57, 8.507059e+37 }
 0x502   :  { %v2108_v51 = vpop.eup %2107 }
 0x503   :  { %v718_v50 = vmul.f32 %v2108_v51, %v671_v49  ;;  %vm723_vm9 = vweird.f32 %v2108_v51  ;;  %v2110_v5 = vpop.eup %2109  ;;  %v2382_v49 = vmov 32.0  }
 0x504   :  { %vm724_vm11 = vmor %vm722_vm10, %vm723_vm9  ;;  %v703_v7 = vmul.f32 %v2110_v5, %v2658_v38  ;;  %vm708_vm14 = vweird.f32 %v2110_v5  ;;  %v2702_v38 = vld [vmem:[#allocation11] sm:$0xff] }
 0x505   :  { %v719_v54 = vsub.f32 1.0, %v718_v50  ;;  %vm709_vm5 = vmor %vm707_vm3, %vm708_vm14  ;;  %v859_v41 = vperm.slane %v2702_v38, 0  ;;  %v2717_v50 = vld [vmem:[%s2968_s7] ss:$0 sm:$0xff] }
 0x506   :  { %v704_v8 = vsub.f32 1.0, %v703_v7 }
 0x507   :  { %v720_v56 = vmul.f32 %v2108_v51, %v719_v54 }
 0x508   :  { %v705_v11 = vmul.f32 %v2110_v5, %v704_v8 }
 0x509   :  { %v721_v58 = vadd.f32 %v2108_v51, %v720_v56 }
 0x50a   :  { %v706_v17 = vadd.f32 %v2110_v5, %v705_v11 }
 0x50b   :  { %v725_v61 = vsel %vm724_vm11, %v2108_v51, %v721_v58 }
 0x50c   :  { %v730_v62 = vsel %vm727_vm12, %v729_v59, %v725_v61 }
 0x50d   :  { %v735_v63 = vmul.f32 %v2102_v24, %v730_v62  ;;  %v710_v24 = vsel %vm709_vm5, %v2110_v5, %v706_v17 }
 0x50e   :  { %v715_v27 = vsel %vm712_vm6, %v714_v26, %v710_v24 }
 0x50f   :  { %1992 = vmatmul.msk.f32.vlgmr.msra.gmra.mxu2 %vm201_vm1, %v735_v63  ;;  %v734_v30 = vmul.f32 %v2642_v20, %v715_v27  ;;  %v951_v20 = vld [vmem:[%s2967_s6 + $0x18] sm:$0xff] }
 0x510   :  { %v2055_v34 = vpack.i.bf16 %v950_v60, %v951_v20  ;;  %974 = vmatpush.msra.mxu0 %v951_v20 }
 0x512   :  { %975 = vmatpush.msra.mxu0 %v950_v60 }
 0x514   :  { %976 = vmatpush.msra.mxu0 %v949_v40 }
 0x516   :  { %977 = vmatpush.msra.mxu0 %v948_v39 }
 0x538   :  { %v662_v6 = vpop.xlane.xlu1 %661 }
 0x539   :  { %2111 = vrcp.f32 %v662_v6  ;;  %v683_v14 = vand.u32 2147483648, %v662_v6  ;;  %v681_v16 = vand.u32 2147483647, %v662_v6  ;;  %vm677_vm15 = vweird.f32 %v662_v6 }
 0x53a   :  { %2113 = vrcp.f32 %v2382_v49 }
 0x53b   :  { %v684_v31 = vor.u32 1.1754944e-38, %v683_v14  ;;  %vm682_vm4 = vcmp.eq.f32.partialorder %v681_v16, 8.507059e+37 }
 0x53f   :  { %v2112_v9 = vpop.eup %2111 }
 0x540   :  { %v673_v10 = vmul.f32 %v2112_v9, %v662_v6  ;;  %vm678_vm13 = vweird.f32 %v2112_v9  ;;  %v2114_v56 = vpop.eup %2113  ;;  %v147_v6 = vld [vmem:[#allocation5 + $0x8] sm:$0xff] }
 0x541   :  { %vm679_vm2 = vmor %vm677_vm15, %vm678_vm13  ;;  %vm902_vm9 = vweird.f32 %v2114_v56 }
 0x542   :  { %v674_v13 = vsub.f32 1.0, %v673_v10 }
 0x544   :  { %v675_v15 = vmul.f32 %v2112_v9, %v674_v13 }
 0x546   :  { %v676_v19 = vadd.f32 %v2112_v9, %v675_v15 }
 0x548   :  { %v680_v23 = vsel %vm679_vm2, %v2112_v9, %v676_v19 }
 0x549   :  { %v685_v18 = vsel %vm682_vm4, %v684_v31, %v680_v23 }
 0x54a   :  { %v732_v25 = vmul.f32 %v2650_v32, %v685_v18  ;;  %v524_v32 = vsel %vm523_vm8, %v522_v48, %v2660_v47  ;;  %v945_v48 = vperm.slane %v2702_v38, 2 }
 0x54c   :  { %1989 = vmatmul.msk.f32.vlgmr.msra.gmra.mxu3 %vm201_vm1, %v732_v25 }
 0x550   :  { %v789_v29 = vpop.permute.xlu1 %788 }
 0x551   :  { %809 = vmatpush.msra.mxu1 %v789_v29  ;;  %v942_v29 = vperm.slane %v2702_v38, 1 }
 0x552   :  { %1991 = vmatmul.msk.f32.vlgmr.msra.gmra.mxu1 %vm201_vm1, %v734_v30 }
 0x554   :  { %1993 = vmatmul.msk.f32.vlgmr.msrb.gmra.mxu3 %vm162_vm0, %v524_v32 }
 0x571   :  { %v785_v53 = vpop.f32.mrf.mxu0 }
 0x572   :  { %841 = vrot.lane.b32.xlu2 %v785_v53, %s2366_s22 }
 0x592   :  { %v837_v35 = vpop.f32.mrf.mxu2 }
 0x593   :  { %849 = vrot.lane.b32.xlu2 %v837_v35, %s2380_s23 }
 0x59b   :  { %2056 = vrot.lane.b32.xlu2 %v2055_v34, %s2381_s15 }
 0x5a3   :  { %2061 = vrot.lane.b32.xlu2 %v2060_v42, %s2381_s15 }
 0x5cc   :  { %v842_v52 = vpop.permute.xlu2 %841 }
 0x5cf   :  { %v759_v36 = vpop.f32.mrf.mxu3  ;;  %v811_v37 = vpop.f32.mrf.mxu1 }
 0x5d0   :  { %845 = vrot.lane.b32.xlu1 %v811_v37, %s2370_s16  ;;  %v852_v61 = vsel %vm201_vm1, %v759_v36, %v842_v52 }
 0x5d7   :  { %v883_v43 = vpop.f32.mrf.mxu3 }
 0x5d8   :  { %v884_v44 = vadd.f32 %v883_v43, %v859_v41 }
 0x5da   :  { %v889_v45 = vadd.f32 %v884_v44, %v2507_v4  ;;  %v898_v4 = vmul.f32 32.0, %v2114_v56 }
 0x5dc   :  { %v891_v46 = vsel %vm162_vm0, %v889_v45, 0.0  ;;  %v899_v63 = vsub.f32 1.0, %v898_v4 }
 0x5dd   :  { %892 = vadd.xlane.f32.xlu0 %v891_v46 }
 0x5de   :  { %v900_v3 = vmul.f32 %v2114_v56, %v899_v63 }
 0x5e0   :  { %v901_v5 = vadd.f32 %v2114_v56, %v900_v3 }
 0x5e2   :  { %v2726_v7 = vsel %vm902_vm9, %v2114_v56, %v901_v5  ;;  %v2077_v5 = vld [vmem:[#allocation7] ss:$0 sm:$0xff] }
 0x5ed   :  { %v850_v47 = vpop.permute.xlu2 %849 }
 0x5f1   :  { %1001 = vrot.lane.b32.xlu0 %v2717_v50, %s2381_s15 }
 0x5f5   :  { %v2057_v51 = vpop.permute.xlu2 %2056 }
 0x5f6   :  { %v2059_v54 = vunpack.i.h.bf16 %v2057_v51  ;;  %v2058_v55 = vunpack.i.l.bf16 %v2057_v51 }
 0x5f8   :  { %1022 = vmatpush.msrb.mxu1 %v2058_v55 }
 0x5fa   :  { %1023 = vmatpush.msrb.mxu1 %v2059_v54 }
 0x5fd   :  { %v2062_v57 = vpop.permute.xlu2 %2061 }
 0x5fe   :  { %v2064_v58 = vunpack.i.h.bf16 %v2062_v57  ;;  %v2063_v59 = vunpack.i.l.bf16 %v2062_v57 }
 0x600   :  { %1024 = vmatpush.msrb.mxu1 %v2063_v59 }
 0x602   :  { %1025 = vmatpush.msrb.mxu1 %v2064_v58 }
 0x603   :  { %1997 = vmatmul.msk.f32.vlgmr.msrb.gmra.mxu1 %vm162_vm0, %v146_v1 }
 0x60b   :  { %1998 = vmatmul.msk.f32.gmra.mxu1 %vm162_vm0, %v147_v6 }
 0x642   :  { %v846_v62 = vpop.permute.xlu1 %845 }
 0x643   :  { %v853_v0 = vsel %vm521_vm7, %v852_v61, %v846_v62 }
 0x644   :  { %v854_v2 = vsel %vm523_vm8, %v853_v0, %v850_v47 }
 0x645   :  { %1994 = vmatmul.msk.f32.gmra.mxu3 %vm162_vm0, %v854_v2 }
 0x650   :  { %v893_v8 = vpop.xlane.xlu0 %892 }
 0x651   :  { %v904_v9 = vmul.f32 %v2726_v7, %v893_v8 }
 0x653   :  { %v906_v10 = vsub.f32 %v889_v45, %v904_v9 }
 0x655   :  { %v908_v11 = vmul.f32 %v906_v10, %v906_v10 }
 0x657   :  { %v910_v13 = vsel %vm162_vm0, %v908_v11, 0.0 }
 0x658   :  { %911 = vadd.xlane.f32.xlu1 %v910_v13 }
 0x663   :  { %v1002_v17 = vpop.permute.xlu0 %1001 }
 0x680   :  { %v1027_v15 = vpop.f32.mrf.mxu1 }
 0x681   :  { %v2731_v19 = vadd.f32 %v1027_v15, %v1002_v17 }
 0x683   :  { %1043 = vrot.lane.b32.xlu0 %v2731_v19, %s2381_s15  ;;  %1041 = vrot.lane.b32.xlu1 %v2731_v19, %s2379_s4 }
 0x684   :  { %1999 = vmatpush.xpose.msk.msrb.mxu2 %vm201_vm1, %v2731_v19 }
 0x688   :  { %v1030_v43 = vpop.f32.mrf.mxu1 }
 0x689   :  { %v2760_v44 = vadd.f32 %v1030_v43, %v1002_v17 }
 0x6c8   :  { %v886_v14 = vpop.f32.mrf.mxu3 }
 0x6c9   :  { %v887_v16 = vadd.f32 %v886_v14, %v859_v41 }
 0x6cb   :  { %v912_v21 = vpop.xlane.xlu1 %911  ;;  %v890_v31 = vadd.f32 %v887_v16, %v2536_v12 }
 0x6cc   :  { %v916_v22 = vmul.f32 %v912_v21, %v2726_v7 }
 0x6cd   :  { %v894_v23 = vsel %vm162_vm0, %v890_v31, 0.0 }
 0x6ce   :  { %v918_v18 = vadd.f32 1e-05, %v916_v22  ;;  %895 = vadd.xlane.f32.xlu2 %v894_v23 }
 0x6d0   :  { %2115 = vrsqrt.f32 %v918_v18  ;;  %vm926_vm11 = vweird.f32 %v918_v18 }
 0x6d6   :  { %v2116_v24 = vpop.eup %2115 }
 0x6d7   :  { %v921_v25 = vmul.f32 %v2116_v24, %v918_v18  ;;  %vm927_vm10 = vweird.f32 %v2116_v24 }
 0x6d8   :  { %vm928_vm12 = vmor %vm926_vm11, %vm927_vm10 }
 0x6d9   :  { %v922_v26 = vmul.f32 %v2116_v24, %v921_v25 }
 0x6db   :  { %v923_v12 = vmul.f32 0.5, %v922_v26 }
 0x6dd   :  { %v924_v27 = vsub.f32 1.5, %v923_v12 }
 0x6df   :  { %v925_v28 = vmul.f32 %v2116_v24, %v924_v27 }
 0x6e1   :  { %v929_v30 = vsel %vm928_vm12, %v2116_v24, %v925_v28 }
 0x6e2   :  { %v940_v33 = vmul.f32 %v929_v30, %v906_v10 }
 0x6e4   :  { %v943_v32 = vmul.f32 %v942_v29, %v940_v33 }
 0x6e6   :  { %v2744_v53 = vadd.f32 %v945_v48, %v943_v32 }
 0x6e8   :  { %1995 = vmatmul.msk.f32.vlgmr.msra.gmra.mxu0 %vm162_vm0, %v2744_v53 }
 0x6f5   :  { %v1044_v37 = vpop.permute.xlu0 %1043  ;;  %v1042_v39 = vpop.permute.xlu1 %1041 }
 0x6f6   :  { %2001 = vmatpush.xpose.msk.msra.mxu2 %vm201_vm1, %v1042_v39  ;;  %2003 = vmatpush.xpose.msk.msra.mxu3 %vm201_vm1, %v1044_v37  ;;  %v2065_v42 = vpack.i.bf16 %v1044_v37, %v1042_v39 }
 0x741   :  { %v896_v35 = vpop.xlane.xlu2 %895 }
 0x742   :  { %v905_v60 = vmul.f32 %v2726_v7, %v896_v35 }
 0x744   :  { %v907_v20 = vsub.f32 %v890_v31, %v905_v60 }
 0x746   :  { %v909_v34 = vmul.f32 %v907_v20, %v907_v20 }
 0x748   :  { %v913_v36 = vsel %vm162_vm0, %v909_v34, 0.0 }
 0x749   :  { %914 = vadd.xlane.f32.xlu1 %v913_v36 }
 0x765   :  { %v979_v40 = vpop.f32.mrf.mxu0 }
 0x766   :  { %v980_v41 = vadd.f32 %v2717_v50, %v979_v40 }
 0x768   :  { %1036 = vrot.lane.b32.xlu2 %v980_v41, %s2379_s4  ;;  %1034 = vrot.lane.b32.xlu0 %v980_v41, %s2374_s19 }
 0x769   :  { %1038 = vrot.lane.b32.xlu1 %v980_v41, %s2376_s2  ;;  %2000 = vmatmul.msk.f32.vlgmr.msrb.gmra.mxu2 %vm201_vm1, %v980_v41 }
 0x770   :  { %1045 = vrot.lane.b32.xlu0 %v2731_v19, %s2375_s3 }
 0x771   :  { %2066 = vrot.lane.b32.xlu1 %v2065_v42, %s2374_s19 }
 0x778   :  { %1378 = vrot.lane.b32.xlu0 %v2760_v44, %s2379_s4 }
 0x7bc   :  { %v915_v45 = vpop.xlane.xlu1 %914 }
 0x7bd   :  { %v917_v46 = vmul.f32 %v915_v45, %v2726_v7 }
 0x7bf   :  { %v919_v52 = vadd.f32 1e-05, %v917_v46 }
 0x7c1   :  { %2117 = vrsqrt.f32 %v919_v52  ;;  %vm936_vm14 = vweird.f32 %v919_v52 }
 0x7c2   :  { %v1037_v47 = vpop.permute.xlu2 %1036 }
 0x7c3   :  { %2004 = vmatmul.msk.f32.vlgmr.msra.gmra.mxu3 %vm201_vm1, %v1037_v47 }
 0x7c7   :  { %v2118_v49 = vpop.eup %2117 }
 0x7c8   :  { %v931_v51 = vmul.f32 %v2118_v49, %v919_v52  ;;  %vm937_vm13 = vweird.f32 %v2118_v49 }
 0x7c9   :  { %vm938_vm15 = vmor %vm936_vm14, %vm937_vm13 }
 0x7ca   :  { %v932_v54 = vmul.f32 %v2118_v49, %v931_v51 }
 0x7cc   :  { %v933_v55 = vmul.f32 0.5, %v932_v54 }
 0x7ce   :  { %v934_v56 = vsub.f32 1.5, %v933_v55 }
 0x7d0   :  { %v935_v4 = vmul.f32 %v2118_v49, %v934_v56 }
 0x7d2   :  { %v939_v57 = vsel %vm938_vm15, %v2118_v49, %v935_v4 }
 0x7d3   :  { %v941_v58 = vmul.f32 %v939_v57, %v907_v20 }
 0x7d5   :  { %v944_v59 = vmul.f32 %v942_v29, %v941_v58 }
 0x7d7   :  { %v2766_v61 = vadd.f32 %v945_v48, %v944_v59 }
 0x7d9   :  { %1996 = vmatmul.msk.f32.gmra.mxu0 %vm162_vm0, %v2766_v61 }
 0x7da   :  { %v1035_v62 = vpop.permute.xlu0 %1034 }
 0x7db   :  { %v1039_v63 = vpop.permute.xlu1 %1038  ;;  %2002 = vmatmul.msk.f32.vlgmr.msra.gmra.mxu2 %vm201_vm1, %v1035_v62 }
 0x7e2   :  { %v1046_v0 = vpop.permute.xlu0 %1045 }
 0x7e3   :  { %2005 = vmatpush.xpose.msk.msrb.mxu0 %vm201_vm1, %v1046_v0  ;;  %v2067_v1 = vpop.permute.xlu1 %2066 }
 0x7e4   :  { %v2069_v2 = vunpack.i.h.bf16 %v2067_v1  ;;  %v2068_v3 = vunpack.i.l.bf16 %v2067_v1 }
 0x7e6   :  { %2006 = vmatmul.msk.f32.vlgmr.msrb.gmra.mxu0 %vm201_vm1, %v1039_v63  ;;  %1294 = vmatpush.msrb.mxu2 %v2068_v3 }
 0x7e7   :  { %1320 = vmatpush.msrb.mxu3 %v2069_v2 }
 0x7ea   :  { %v2773_v6 = vpop.permute.xlu0 %1378 }
 0x7eb   :  { %2013 = vmatpush.xpose.msk.msra.mxu2 %vm201_vm1, %v2773_v6 }
 0x7ec   :  { %v1072_v8 = vpop.f32.mrf.mxu2 }
 0x7ed   :  { %v1073_v9 = vadd.f32 %v2077_v5, %v1072_v8 }
 0x7ef   :  { %v1147_v10 = vsel %vm201_vm1, %v1073_v9, -inf }
 0x7f0   :  { %1148 = vmax.xlane.f32.xlu0 %v1147_v10 }
 0x846   :  { %v1120_v11 = vpop.f32.mrf.mxu3 }
 0x847   :  { %v1121_v13 = vadd.f32 %v2077_v5, %v1120_v11 }
 0x849   :  { %v1153_v14 = vsel %vm201_vm1, %v1121_v13, -inf }
 0x84a   :  { %1154 = vmax.xlane.f32.xlu1 %v1153_v14 }
 0x856   :  { %v982_v15 = vpop.f32.mrf.mxu0 }
 0x857   :  { %v2780_v21 = vadd.f32 %v2717_v50, %v982_v15 }
 0x85e   :  { %v1096_v16 = vpop.f32.mrf.mxu2 }
 0x85f   :  { %v1097_v17 = vadd.f32 %v2077_v5, %v1096_v16 }
 0x861   :  { %v1150_v31 = vsel %vm201_vm1, %v1097_v17, -inf }
 0x862   :  { %1151 = vmax.xlane.f32.xlu0 %v1150_v31 }
 0x863   :  { %1373 = vrot.lane.b32.xlu1 %v2780_v21, %s2379_s4  ;;  %v1144_v22 = vpop.f32.mrf.mxu0  ;;  %v1149_v27 = vpop.xlane.xlu0 %1148 }
 0x864   :  { %v1145_v23 = vadd.f32 %v2077_v5, %v1144_v22  ;;  %v1159_v37 = vsub.f32 %v1073_v9, %v1149_v27 }
 0x866   :  { %v1156_v18 = vsel %vm201_vm1, %v1145_v23, -inf  ;;  %v1163_v39 = vmul.f32 1.442695, %v1159_v37 }
 0x867   :  { %1157 = vmax.xlane.f32.xlu2 %v1156_v18 }
 0x876   :  { %1371 = vrot.lane.b32.xlu0 %v2780_v21, %s2374_s19 }
 0x87f   :  { %1380 = vrot.lane.b32.xlu2 %v2760_v44, %s2381_s15 }
 0x8bd   :  { %v1155_v24 = vpop.xlane.xlu1 %1154 }
 0x8be   :  { %v1161_v50 = vsub.f32 %v1121_v13, %v1155_v24 }
 0x8c0   :  { %v1167_v25 = vmul.f32 1.442695, %v1161_v50 }
 0x8c2   :  { %2119 = vpow2.f32 %v1167_v25 }
 0x8c8   :  { %v2120_v26 = vpop.eup %2119 }
 0x8c9   :  { %v1177_v12 = vsel %vm201_vm1, %v2120_v26, 0.0 }
 0x8ca   :  { %1178 = vadd.xlane.f32.xlu0 %v1177_v12 }
 0x8d5   :  { %v1152_v28 = vpop.xlane.xlu0 %1151  ;;  %v1374_v55 = vpop.permute.xlu1 %1373 }
 0x8d6   :  { %v1160_v29 = vsub.f32 %v1097_v17, %v1152_v28 }
 0x8d8   :  { %v1165_v30 = vmul.f32 1.442695, %v1160_v29 }
 0x8da   :  { %2121 = vpow2.f32 %v1165_v30  ;;  %v1158_v33 = vpop.xlane.xlu2 %1157 }
 0x8db   :  { %v1162_v48 = vsub.f32 %v1145_v23, %v1158_v33 }
 0x8dd   :  { %v1169_v32 = vmul.f32 1.442695, %v1162_v48 }
 0x8de   :  { %1382 = vrot.lane.b32.xlu0 %v2760_v44, %s2375_s3 }
 0x8df   :  { %2123 = vpow2.f32 %v1169_v32 }
 0x8e0   :  { %v2793_v35 = vpop.eup %2121  ;;  %2125 = vpow2.f32 %v1163_v39 }
 0x8e1   :  { %v1174_v60 = vsel %vm201_vm1, %v2793_v35, 0.0 }
 0x8e2   :  { %v2797_v20 = vpop.permute.xlu2 %1380  ;;  %1175 = vadd.xlane.f32.xlu1 %v1174_v60 }
 0x8e3   :  { %2015 = vmatpush.xpose.msk.msra.mxu3 %vm201_vm1, %v2797_v20 }
 0x8e5   :  { %v2801_v34 = vpop.eup %2123 }
 0x8e6   :  { %1247 = vrot.lane.b32.xlu0 %v2731_v19, %s2374_s19  ;;  %v1180_v36 = vsel %vm201_vm1, %v2801_v34, 0.0  ;;  %v2810_v40 = vpop.eup %2125 }
 0x8e7   :  { %1181 = vadd.xlane.f32.xlu2 %v1180_v36  ;;  %v1171_v41 = vsel %vm201_vm1, %v2810_v40, 0.0 }
 0x8e8   :  { %v2814_v42 = vpop.permute.xlu0 %1371 }
 0x8fb   :  { %1375 = vrot.lane.b32.xlu1 %v2780_v21, %s2376_s2 }
 0x8ff   :  { %1325 = vrot.lane.b32.xlu2 %v1046_v0, %s2374_s19 }
 0x928   :  { %1172 = vadd.xlane.f32.xlu2 %v1171_v41 }
 0x93d   :  { %v1179_v19 = vpop.xlane.xlu0 %1178 }
 0x93e   :  { %2127 = vrcp.f32 %v1179_v19  ;;  %v1224_v52 = vand.u32 2147483648, %v1179_v19  ;;  %v1222_v49 = vand.u32 2147483647, %v1179_v19  ;;  %vm1218_vm3 = vweird.f32 %v1179_v19 }
 0x940   :  { %v1225_v54 = vor.u32 1.1754944e-38, %v1224_v52  ;;  %vm1223_vm5 = vcmp.eq.f32.partialorder %v1222_v49, 8.507059e+37 }
 0x944   :  { %v2128_v43 = vpop.eup %2127 }
 0x945   :  { %v1214_v45 = vmul.f32 %v2128_v43, %v1179_v19  ;;  %vm1219_vm2 = vweird.f32 %v2128_v43 }
 0x946   :  { %vm1220_vm4 = vmor %vm1218_vm3, %vm1219_vm2 }
 0x947   :  { %v1215_v46 = vsub.f32 1.0, %v1214_v45 }
 0x949   :  { %v1216_v47 = vmul.f32 %v2128_v43, %v1215_v46 }
 0x94b   :  { %v1217_v51 = vadd.f32 %v2128_v43, %v1216_v47 }
 0x94d   :  { %v1221_v56 = vsel %vm1220_vm4, %v2128_v43, %v1217_v51 }
 0x94e   :  { %v1226_v4 = vsel %vm1223_vm5, %v1225_v54, %v1221_v56 }
 0x94f   :  { %v1245_v57 = vmul.f32 %v2120_v26, %v1226_v4 }
 0x950   :  { %v2816_v58 = vpop.permute.xlu0 %1382 }
 0x951   :  { %2009 = vmatmul.msk.f32.vlgmr.msrb.gmra.mxu3 %vm201_vm1, %v1245_v57  ;;  %1353 = vst.msk [vmem:[#allocation14 + $0x10] sm:$0xff] %vm201_vm1, %v1245_v57 }
 0x955   :  { %v1176_v59 = vpop.xlane.xlu1 %1175 }
 0x956   :  { %2129 = vrcp.f32 %v1176_v59  ;;  %v1209_v3 = vand.u32 2147483648, %v1176_v59  ;;  %v1207_v9 = vand.u32 2147483647, %v1176_v59  ;;  %vm1203_vm9 = vweird.f32 %v1176_v59 }
 0x958   :  { %v1248_v62 = vpop.permute.xlu0 %1247  ;;  %v1210_v14 = vor.u32 1.1754944e-38, %v1209_v3  ;;  %vm1208_vm11 = vcmp.eq.f32.partialorder %v1207_v9, 8.507059e+37 }
 0x959   :  { %1268 = vmatpush.msra.mxu1 %v1248_v62  ;;  %2016 = vmatmul.msk.f32.vlgmr.msra.gmra.mxu3 %vm201_vm1, %v1374_v55 }
 0x95a   :  { %v1182_v63 = vpop.xlane.xlu2 %1181 }
 0x95b   :  { %2011 = vmatpush.xpose.msk.msrb.mxu1 %vm201_vm1, %v2760_v44  ;;  %2131 = vrcp.f32 %v1182_v63  ;;  %v1239_v17 = vand.u32 2147483648, %v1182_v63  ;;  %v1237_v23 = vand.u32 2147483647, %v1182_v63  ;;  %vm1233_vm13 = vweird.f32 %v1182_v63 }
 0x95c   :  { %v2130_v0 = vpop.eup %2129 }
 0x95d   :  { %v1199_v1 = vmul.f32 %v2130_v0, %v1176_v59  ;;  %vm1204_vm6 = vweird.f32 %v2130_v0  ;;  %v1240_v50 = vor.u32 1.1754944e-38, %v1239_v17  ;;  %vm1238_vm15 = vcmp.eq.f32.partialorder %v1237_v23, 8.507059e+37 }
 0x95e   :  { %vm1205_vm10 = vmor %vm1203_vm9, %vm1204_vm6 }
 0x95f   :  { %v1200_v2 = vsub.f32 1.0, %v1199_v1 }
 0x961   :  { %v2132_v5 = vpop.eup %2131  ;;  %v1201_v8 = vmul.f32 %v2130_v0, %v1200_v2 }
 0x962   :  { %v1229_v10 = vmul.f32 %v2132_v5, %v1182_v63  ;;  %v1326_v11 = vpop.permute.xlu2 %1325  ;;  %vm1234_vm12 = vweird.f32 %v2132_v5 }
 0x963   :  { %v1202_v13 = vadd.f32 %v2130_v0, %v1201_v8  ;;  %1346 = vmatpush.msra.mxu0 %v1326_v11  ;;  %vm1235_vm14 = vmor %vm1233_vm13, %vm1234_vm12 }
 0x964   :  { %v1230_v15 = vsub.f32 1.0, %v1229_v10 }
 0x965   :  { %2017 = vmatpush.xpose.msk.msrb.mxu0 %vm201_vm1, %v2816_v58  ;;  %v1206_v16 = vsel %vm1205_vm10, %v2130_v0, %v1202_v13 }
 0x966   :  { %v1211_v31 = vsel %vm1208_vm11, %v1210_v14, %v1206_v16  ;;  %v1231_v22 = vmul.f32 %v2132_v5, %v1230_v15  ;;  %v2070_v16 = vpack.i.bf16 %v2797_v20, %v2773_v6 }
 0x967   :  { %v1244_v18 = vmul.f32 %v2793_v35, %v1211_v31 }
 0x968   :  { %v1232_v24 = vadd.f32 %v2132_v5, %v1231_v22 }
 0x969   :  { %2008 = vmatmul.msk.f32.vlgmr.msrb.gmra.mxu2 %vm201_vm1, %v1244_v18  ;;  %1352 = vst.msk [vmem:[#allocation14 + $0x8] sm:$0xff] %vm201_vm1, %v1244_v18 }
 0x96a   :  { %v1236_v25 = vsel %vm1235_vm14, %v2132_v5, %v1232_v24 }
 0x96b   :  { %v1241_v26 = vsel %vm1238_vm15, %v1240_v50, %v1236_v25 }
 0x96c   :  { %v1246_v12 = vmul.f32 %v2801_v34, %v1241_v26 }
 0x96d   :  { %v1376_v27 = vpop.permute.xlu1 %1375 }
 0x96e   :  { %2010 = vmatmul.msk.f32.vlgmr.msra.gmra.mxu0 %vm201_vm1, %v1246_v12  ;;  %1354 = vst.msk [vmem:[#allocation14 + $0x18] sm:$0xff] %vm201_vm1, %v1246_v12 }
 0x971   :  { %2014 = vmatmul.msk.f32.vlgmr.msra.gmra.mxu2 %vm201_vm1, %v2814_v42  ;;  %v2078_v42 = vld [vmem:[#allocation7 + $0x1] ss:$0 sm:$0xff] }
 0x976   :  { %2018 = vmatmul.msk.f32.vlgmr.msrb.gmra.mxu0 %vm201_vm1, %v1376_v27 }
 0x99b   :  { %v1173_v28 = vpop.xlane.xlu2 %1172 }
 0x99c   :  { %2133 = vrcp.f32 %v1173_v28  ;;  %v1194_v48 = vand.u32 2147483648, %v1173_v28  ;;  %v1192_v35 = vand.u32 2147483647, %v1173_v28  ;;  %vm1188_vm3 = vweird.f32 %v1173_v28 }
 0x99e   :  { %v1195_v34 = vor.u32 1.1754944e-38, %v1194_v48  ;;  %vm1193_vm5 = vcmp.eq.f32.partialorder %v1192_v35, 8.507059e+37 }
 0x9a2   :  { %v2134_v29 = vpop.eup %2133 }
 0x9a3   :  { %v1184_v30 = vmul.f32 %v2134_v29, %v1173_v28  ;;  %vm1189_vm2 = vweird.f32 %v2134_v29 }
 0x9a4   :  { %vm1190_vm4 = vmor %vm1188_vm3, %vm1189_vm2 }
 0x9a5   :  { %v1185_v33 = vsub.f32 1.0, %v1184_v30 }
 0x9a7   :  { %v1186_v32 = vmul.f32 %v2134_v29, %v1185_v33 }
 0x9a9   :  { %v1187_v60 = vadd.f32 %v2134_v29, %v1186_v32 }
 0x9ab   :  { %v1191_v36 = vsel %vm1190_vm4, %v2134_v29, %v1187_v60 }
 0x9ac   :  { %v1196_v37 = vsel %vm1193_vm5, %v1195_v34, %v1191_v36 }
 0x9ad   :  { %v1243_v39 = vmul.f32 %v2810_v40, %v1196_v37 }
 0x9af   :  { %2007 = vmatmul.msk.f32.vlgmr.msra.gmra.mxu1 %vm201_vm1, %v1243_v39  ;;  %1351 = vst.msk [vmem:[#allocation14] sm:$0xff] %vm201_vm1, %v1243_v39 }
 0x9b7   :  { %2012 = vmatmul.msk.f32.vlgmr.msrb.gmra.mxu1 %vm201_vm1, %v2780_v21 }
 0x9d4   :  { %v1322_v41 = vpop.f32.mrf.mxu3 }
 0x9dc   :  { %v1458_v19 = vpop.f32.mrf.mxu3 }
 0x9dd   :  { %v1459_v43 = vadd.f32 %v2078_v42, %v1458_v19 }
 0x9df   :  { %v1491_v45 = vsel %vm201_vm1, %v1459_v43, -inf }
 0x9e0   :  { %1492 = vmax.xlane.f32.xlu0 %v1491_v45 }
 0x9eb   :  { %v1348_v46 = vpop.f32.mrf.mxu0 }
 0x9ec   :  { %v1296_v52 = vpop.f32.mrf.mxu2 }
 0x9f3   :  { %v1482_v47 = vpop.f32.mrf.mxu0 }
 0x9f4   :  { %v1483_v49 = vadd.f32 %v2078_v42, %v1482_v47  ;;  %v1434_v51 = vpop.f32.mrf.mxu2 }
 0x9f5   :  { %v1435_v40 = vadd.f32 %v2078_v42, %v1434_v51 }
 0x9f6   :  { %v1494_v54 = vsel %vm201_vm1, %v1483_v49, -inf }
 0x9f7   :  { %1495 = vmax.xlane.f32.xlu2 %v1494_v54  ;;  %v1488_v55 = vsel %vm201_vm1, %v1435_v40, -inf }
 0x9f8   :  { %1489 = vmax.xlane.f32.xlu1 %v1488_v55 }
 0xa2c   :  { %v2842_v21 = vpop.f32.mrf.mxu1 }
 0xa34   :  { %v1410_v56 = vpop.f32.mrf.mxu1 }
 0xa35   :  { %v1411_v4 = vadd.f32 %v2078_v42, %v1410_v56 }
 0xa37   :  { %v1485_v57 = vsel %vm201_vm1, %v1411_v4, -inf }
 0xa38   :  { %1486 = vmax.xlane.f32.xlu1 %v1485_v57 }
 0xa53   :  { %v1493_v59 = vpop.xlane.xlu0 %1492 }
 0xa54   :  { %v1499_v62 = vsub.f32 %v1459_v43, %v1493_v59 }
 0xa56   :  { %v1505_v63 = vmul.f32 1.442695, %v1499_v62 }
 0xa58   :  { %2135 = vpow2.f32 %v1505_v63 }
 0xa5e   :  { %v2136_v0 = vpop.eup %2135 }
 0xa5f   :  { %v1515_v1 = vsel %vm201_vm1, %v2136_v0, 0.0 }
 0xa60   :  { %1516 = vadd.xlane.f32.xlu0 %v1515_v1 }
 0xa6a   :  { %v1496_v2 = vpop.xlane.xlu2 %1495 }
 0xa6b   :  { %v1500_v3 = vsub.f32 %v1483_v49, %v1496_v2  ;;  %v1490_v5 = vpop.xlane.xlu1 %1489 }
 0xa6c   :  { %v1498_v8 = vsub.f32 %v1435_v40, %v1490_v5 }
 0xa6d   :  { %v1507_v9 = vmul.f32 1.442695, %v1500_v3 }
 0xa6e   :  { %v1503_v10 = vmul.f32 1.442695, %v1498_v8 }
 0xa6f   :  { %2137 = vpow2.f32 %v1507_v9 }
 0xa70   :  { %2139 = vpow2.f32 %v1503_v10 }
 0xa74   :  { %1663 = vrot.lane.b32.xlu0 %v2816_v58, %s2374_s19 }
 0xa75   :  { %v2848_v11 = vpop.eup %2137 }
 0xa76   :  { %v2850_v13 = vpop.eup %2139  ;;  %v1518_v14 = vsel %vm201_vm1, %v2848_v11, 0.0 }
 0xa77   :  { %1519 = vadd.xlane.f32.xlu1 %v1518_v14  ;;  %v1512_v15 = vsel %vm201_vm1, %v2850_v13, 0.0 }
 0xa78   :  { %1513 = vadd.xlane.f32.xlu2 %v1512_v15 }
 0xa7c   :  { %1356 = vrot.lane.b32.xlu0 %v1296_v52, %s2366_s22 }
 0xa84   :  { %1364 = vrot.lane.b32.xlu0 %v1348_v46, %s2380_s23 }
 0xa90   :  { %2071 = vrot.lane.b32.xlu2 %v2070_v16, %s2374_s19 }
 0xa98   :  { %1360 = vrot.lane.b32.xlu2 %v1322_v41, %s2370_s16 }
 0xaab   :  { %v1487_v58 = vpop.xlane.xlu1 %1486 }
 0xaac   :  { %v1497_v17 = vsub.f32 %v1411_v4, %v1487_v58  ;;  %v1712_v58 = vld [vmem:[#allocation8 + $0x18] sm:$0xff] }
 0xaae   :  { %v1501_v31 = vmul.f32 1.442695, %v1497_v17  ;;  %v1711_v17 = vld [vmem:[#allocation8 + $0x10] sm:$0xff] }
 0xab0   :  { %2141 = vpow2.f32 %v1501_v31 }
 0xab6   :  { %v2862_v22 = vpop.eup %2141 }
 0xab7   :  { %v1509_v23 = vsel %vm201_vm1, %v2862_v22, 0.0 }
 0xab8   :  { %1510 = vadd.xlane.f32.xlu1 %v1509_v23  ;;  %v1710_v23 = vld [vmem:[#allocation8 + $0x8] sm:$0xff] }
 0xad1   :  { %1585 = vrot.lane.b32.xlu1 %v2760_v44, %s2374_s19 }
 0xad3   :  { %v1517_v18 = vpop.xlane.xlu0 %1516 }
 0xad4   :  { %2143 = vrcp.f32 %v1517_v18  ;;  %v1562_v50 = vand.u32 2147483648, %v1517_v18  ;;  %v1560_v26 = vand.u32 2147483647, %v1517_v18  ;;  %vm1556_vm9 = vweird.f32 %v1517_v18 }
 0xad6   :  { %v1563_v27 = vor.u32 1.1754944e-38, %v1562_v50  ;;  %vm1561_vm11 = vcmp.eq.f32.partialorder %v1560_v26, 8.507059e+37 }
 0xada   :  { %v2144_v6 = vpop.eup %2143 }
 0xadb   :  { %v1552_v20 = vmul.f32 %v2144_v6, %v1517_v18  ;;  %vm1557_vm6 = vweird.f32 %v2144_v6 }
 0xadc   :  { %vm1558_vm10 = vmor %vm1556_vm9, %vm1557_vm6 }
 0xadd   :  { %v1553_v24 = vsub.f32 1.0, %v1552_v20  ;;  %v1709_v20 = vld [vmem:[#allocation8] sm:$0xff] }
 0xadf   :  { %v1554_v25 = vmul.f32 %v2144_v6, %v1553_v24 }
 0xae1   :  { %v1555_v12 = vadd.f32 %v2144_v6, %v1554_v25 }
 0xae3   :  { %v1559_v28 = vsel %vm1558_vm10, %v2144_v6, %v1555_v12  ;;  %v1713_v12 = vperm.slane %v2702_v38, 3 }
 0xae4   :  { %v1564_v29 = vsel %vm1561_vm11, %v1563_v27, %v1559_v28 }
 0xae5   :  { %v1583_v30 = vmul.f32 %v2136_v0, %v1564_v29 }
 0xae6   :  { %v1664_v33 = vpop.permute.xlu0 %1663 }
 0xae7   :  { %1684 = vmatpush.msra.mxu0 %v1664_v33  ;;  %1692 = vst.msk [vmem:[#allocation14 + $0x30] sm:$0xff] %vm201_vm1, %v1583_v30 }
 0xaea   :  { %v1520_v44 = vpop.xlane.xlu1 %1519 }
 0xaeb   :  { %2145 = vrcp.f32 %v1520_v44  ;;  %v1514_v48 = vpop.xlane.xlu2 %1513  ;;  %v1577_v42 = vand.u32 2147483648, %v1520_v44  ;;  %v1575_v45 = vand.u32 2147483647, %v1520_v44  ;;  %vm1571_vm14 = vweird.f32 %v1520_v44 }
 0xaec   :  { %2147 = vrcp.f32 %v1514_v48  ;;  %v1547_v46 = vand.u32 2147483648, %v1514_v48  ;;  %v1545_v47 = vand.u32 2147483647, %v1514_v48  ;;  %vm1541_vm2 = vweird.f32 %v1514_v48 }
 0xaed   :  { %v1578_v51 = vor.u32 1.1754944e-38, %v1577_v42  ;;  %vm1576_vm3 = vcmp.eq.f32.partialorder %v1575_v45, 8.507059e+37  ;;  %v1798_v45 = vld [vmem:[#allocation10 + $0x18] sm:$0xff] }
 0xaee   :  { %v1548_v55 = vor.u32 1.1754944e-38, %v1547_v46  ;;  %vm1546_vm5 = vcmp.eq.f32.partialorder %v1545_v47, 8.507059e+37  ;;  %v1357_v15 = vpop.permute.xlu0 %1356  ;;  %v1797_v46 = vld [vmem:[#allocation10 + $0x10] sm:$0xff]  ;;  %v1795_v47 = vld [vmem:[#allocation10] sm:$0xff] }
 0xaef   :  { %v1367_v18 = vsel %vm201_vm1, %v2842_v21, %v1357_v15 }
 0xaf1   :  { %v2146_v32 = vpop.eup %2145 }
 0xaf2   :  { %v2148_v35 = vpop.eup %2147  ;;  %v1567_v60 = vmul.f32 %v2146_v32, %v1520_v44  ;;  %vm1572_vm12 = vweird.f32 %v2146_v32 }
 0xaf3   :  { %v1537_v34 = vmul.f32 %v2148_v35, %v1514_v48  ;;  %v2072_v36 = vpop.permute.xlu2 %2071  ;;  %vm1542_vm13 = vweird.f32 %v2148_v35  ;;  %vm1573_vm15 = vmor %vm1571_vm14, %vm1572_vm12  ;;  %vm1843_vm12 = vcmask 523264  }
 0xaf4   :  { %v1568_v37 = vsub.f32 1.0, %v1567_v60  ;;  %v2074_v39 = vunpack.i.h.bf16 %v2072_v36  ;;  %v2073_v41 = vunpack.i.l.bf16 %v2072_v36  ;;  %vm1543_vm4 = vmor %vm1541_vm2, %vm1542_vm13 }
 0xaf5   :  { %v1538_v19 = vsub.f32 1.0, %v1537_v34 }
 0xaf6   :  { %v1569_v43 = vmul.f32 %v2146_v32, %v1568_v37  ;;  %1632 = vmatpush.msrb.mxu2 %v2073_v41  ;;  %1658 = vmatpush.msrb.mxu3 %v2074_v39 }
 0xaf7   :  { %v1539_v52 = vmul.f32 %v2148_v35, %v1538_v19  ;;  %2021 = vmatmul.msk.f32.vlgmr.msrb.gmra.mxu3 %vm201_vm1, %v1583_v30 }
 0xaf8   :  { %v1570_v49 = vadd.f32 %v2146_v32, %v1569_v43  ;;  %1821 = vmatpush.msra.mxu2 %v1798_v45 }
 0xaf9   :  { %v1540_v40 = vadd.f32 %v2148_v35, %v1539_v52  ;;  %v1796_v52 = vld [vmem:[#allocation10 + $0x8] sm:$0xff] }
 0xafa   :  { %v1574_v54 = vsel %vm1573_vm15, %v2146_v32, %v1570_v49  ;;  %1822 = vmatpush.msra.mxu2 %v1797_v46 }
 0xafb   :  { %v1579_v56 = vsel %vm1576_vm3, %v1578_v51, %v1574_v54  ;;  %v1544_v4 = vsel %vm1543_vm4, %v2148_v35, %v1540_v40  ;;  %v1361_v31 = vpop.permute.xlu2 %1360 }
 0xafc   :  { %v1549_v57 = vsel %vm1546_vm5, %v1548_v55, %v1544_v4  ;;  %v1584_v59 = vmul.f32 %v2848_v11, %v1579_v56  ;;  %v1368_v6 = vsel %vm521_vm7, %v1367_v18, %v1361_v31  ;;  %1823 = vmatpush.msra.mxu2 %v1796_v52  ;;  %v1841_v4 = vld [vmem:[%s2972_s11 + $0x38] sm:$0xff]  ;;  %v2079_v31 = vld [vmem:[%s2971_s10] ss:$0 sm:$0xff]  ;;  %s2383_s10 = smov [#allocation14]  }
 0xafd   :  { %v1582_v62 = vmul.f32 %v2850_v13, %v1549_v57  ;;  %v1840_v57 = vld [vmem:[%s2972_s11 + $0x30] sm:$0xff]  ;;  %1858 = vmatpush.msra.mxu3 %v1841_v4 }
 0xafe   :  { %2022 = vmatmul.msk.f32.vlgmr.msra.gmra.mxu0 %vm201_vm1, %v1584_v59  ;;  %1693 = vst.msk [vmem:[#allocation14 + $0x38] sm:$0xff] %vm201_vm1, %v1584_v59  ;;  %1824 = vmatpush.msra.mxu2 %v1795_v47 }
 0xaff   :  { %2020 = vmatmul.msk.f32.vlgmr.msrb.gmra.mxu2 %vm201_vm1, %v1582_v62  ;;  %1691 = vst.msk [vmem:[#allocation14 + $0x28] sm:$0xff] %vm201_vm1, %v1582_v62  ;;  %v1839_v62 = vld [vmem:[%s2972_s11 + $0x28] sm:$0xff]  ;;  %1859 = vmatpush.msra.mxu3 %v1840_v57 }
 0xb01   :  { %1860 = vmatpush.msra.mxu3 %v1839_v62 }
 0xb2b   :  { %v1511_v63 = vpop.xlane.xlu1 %1510 }
 0xb2c   :  { %2149 = vrcp.f32 %v1511_v63  ;;  %v1532_v3 = vand.u32 2147483648, %v1511_v63  ;;  %v1530_v8 = vand.u32 2147483647, %v1511_v63  ;;  %vm1526_vm9 = vweird.f32 %v1511_v63 }
 0xb2e   :  { %v1533_v10 = vor.u32 1.1754944e-38, %v1532_v3  ;;  %vm1531_vm11 = vcmp.eq.f32.partialorder %v1530_v8, 8.507059e+37  ;;  %v1837_v3 = vld [vmem:[%s2972_s11 + $0x18] sm:$0xff]  ;;  %v1792_v8 = vperm.slane %v2702_v38, 5 }
 0xb32   :  { %v2150_v0 = vpop.eup %2149 }
 0xb33   :  { %v1522_v1 = vmul.f32 %v2150_v0, %v1511_v63  ;;  %vm1527_vm6 = vweird.f32 %v2150_v0 }
 0xb34   :  { %vm1528_vm10 = vmor %vm1526_vm9, %vm1527_vm6 }
 0xb35   :  { %v1523_v2 = vsub.f32 1.0, %v1522_v1  ;;  %v1789_v1 = vperm.slane %v2702_v38, 4  ;;  %v1835_v38 = vld [vmem:[%s2972_s11 + $0x8] sm:$0xff] }
 0xb37   :  { %v1524_v5 = vmul.f32 %v2150_v0, %v1523_v2 }
 0xb39   :  { %v1525_v9 = vadd.f32 %v2150_v0, %v1524_v5 }
 0xb3b   :  { %v1529_v11 = vsel %vm1528_vm10, %v2150_v0, %v1525_v9  ;;  %v1838_v0 = vld [vmem:[%s2972_s11 + $0x20] sm:$0xff] }
 0xb3c   :  { %v1534_v13 = vsel %vm1531_vm11, %v1533_v10, %v1529_v11  ;;  %1861 = vmatpush.msra.mxu3 %v1838_v0  ;;  %v2080_v0 = vld [vmem:[#allocation11 + $0x8] ss:$0 sm:$0xff] }
 0xb3d   :  { %v1581_v14 = vmul.f32 %v2862_v22, %v1534_v13  ;;  %v1365_v22 = vpop.permute.xlu0 %1364 }
 0xb3e   :  { %v1369_v24 = vsel %vm523_vm8, %v1368_v6, %v1365_v22  ;;  %1862 = vmatpush.msra.mxu3 %v1837_v3 }
 0xb3f   :  { %1690 = vst.msk [vmem:[#allocation14 + $0x20] sm:$0xff] %vm201_vm1, %v1581_v14 }
 0xb43   :  { %v1586_v16 = vpop.permute.xlu1 %1585 }
 0xb44   :  { %1606 = vmatpush.msra.mxu1 %v1586_v16 }
 0xb45   :  { %2019 = vmatmul.msk.f32.vlgmr.msra.gmra.mxu1 %vm201_vm1, %v1581_v14 }
 0xb46   :  { %1732 = vmatpush.msrb.mxu1 %v1712_v58  ;;  %v1836_v58 = vld [vmem:[%s2972_s11 + $0x10] sm:$0xff] }
 0xb47   :  { %1863 = vmatpush.msra.mxu3 %v1836_v58 }
 0xb48   :  { %1733 = vmatpush.msrb.mxu1 %v1711_v17  ;;  %v1834_v17 = vld [vmem:[%s2972_s11] sm:$0xff]  ;;  %s1944_s11 = sshll.u32 %s2383_s10, 4  ;;  %s1945_s11 = int_to_ptr.vmem [resolvable:$true] %s1944_s11 }
 0xb49   :  { %1864 = vmatpush.msra.mxu3 %v1835_v38  ;;  %1952 = dma.vmem_to_hbm [thread:$0]  %s1945_s11, 1024, %s1947_s17, [#allocation15], %s2365_s21, %s2365_s21, %s2366_s22  }
 0xb4a   :  { %1734 = vmatpush.msrb.mxu1 %v1710_v23 }
 0xb4b   :  { %1865 = vmatpush.msra.mxu3 %v1834_v17 }
 0xb4c   :  { %1735 = vmatpush.msrb.mxu1 %v1709_v20 }
 0xb4d   :  { %2023 = vmatmul.msk.f32.vlgmr.msrb.gmra.mxu1 %vm162_vm0, %v1369_v24 }
 0xb7a   :  { %v1660_v50 = vpop.f32.mrf.mxu3 }
 0xb7b   :  { %1699 = vrot.lane.b32.xlu0 %v1660_v50, %s2370_s16  ;;  %v1686_v26 = vpop.f32.mrf.mxu0 }
 0xb82   :  { %v1634_v25 = vpop.f32.mrf.mxu2 }
 0xb83   :  { %1695 = vrot.lane.b32.xlu2 %v1634_v25, %s2366_s22 }
 0xb8b   :  { %1703 = vrot.lane.b32.xlu2 %v1686_v26, %s2380_s23 }
 0xbc2   :  { %v1608_v21 = vpop.f32.mrf.mxu1 }
 0xbca   :  { %v1737_v27 = vpop.f32.mrf.mxu1 }
 0xbcb   :  { %v1738_v28 = vadd.f32 %v1737_v27, %v1713_v12 }
 0xbcd   :  { %v1743_v29 = vadd.f32 %v1738_v28, %v2744_v53 }
 0xbcf   :  { %v1745_v30 = vsel %vm162_vm0, %v1743_v29, 0.0 }
 0xbd0   :  { %1746 = vadd.xlane.f32.xlu1 %v1745_v30 }
 0xbdd   :  { %v1696_v33 = vpop.permute.xlu2 %1695 }
 0xbde   :  { %v1706_v44 = vsel %vm201_vm1, %v1608_v21, %v1696_v33 }
 0xbe5   :  { %v1704_v32 = vpop.permute.xlu2 %1703 }
 0xbed   :  { %v1700_v48 = vpop.permute.xlu0 %1699 }
 0xbee   :  { %v1707_v35 = vsel %vm521_vm7, %v1706_v44, %v1700_v48  ;;  %v2934_v44 = vld [vmem:[#allocation11] sm:$0xff] }
 0xbef   :  { %v1708_v60 = vsel %vm523_vm8, %v1707_v35, %v1704_v32  ;;  %v1842_v48 = vperm.slane %v2934_v44, 6 }
 0xbf0   :  { %2024 = vmatmul.msk.f32.gmra.mxu1 %vm162_vm0, %v1708_v60 }
 0xc43   :  { %v1747_v34 = vpop.xlane.xlu1 %1746 }
 0xc44   :  { %v1751_v36 = vmul.f32 %v1747_v34, %v2726_v7 }
 0xc46   :  { %v1753_v37 = vsub.f32 %v1743_v29, %v1751_v36 }
 0xc48   :  { %v1755_v39 = vmul.f32 %v1753_v37, %v1753_v37 }
 0xc4a   :  { %v1757_v53 = vsel %vm162_vm0, %v1755_v39, 0.0 }
 0xc4b   :  { %1758 = vadd.xlane.f32.xlu2 %v1757_v53 }
 0xc6d   :  { %v1740_v41 = vpop.f32.mrf.mxu1 }
 0xc6e   :  { %v1741_v42 = vadd.f32 %v1740_v41, %v1713_v12 }
 0xc70   :  { %v1744_v19 = vadd.f32 %v1741_v42, %v2766_v61 }
 0xc72   :  { %v1748_v43 = vsel %vm162_vm0, %v1744_v19, 0.0 }
 0xc73   :  { %1749 = vadd.xlane.f32.xlu0 %v1748_v43 }
 0xcbe   :  { %v1759_v49 = vpop.xlane.xlu2 %1758 }
 0xcbf   :  { %v1763_v51 = vmul.f32 %v1759_v49, %v2726_v7 }
 0xcc1   :  { %v1765_v40 = vadd.f32 1e-05, %v1763_v51 }
 0xcc3   :  { %2151 = vrsqrt.f32 %v1765_v40  ;;  %vm1773_vm7 = vweird.f32 %v1765_v40 }
 0xcc9   :  { %v2152_v54 = vpop.eup %2151 }
 0xcca   :  { %v1768_v55 = vmul.f32 %v2152_v54, %v1765_v40  ;;  %vm1774_vm1 = vweird.f32 %v2152_v54 }
 0xccb   :  { %vm1775_vm8 = vmor %vm1773_vm7, %vm1774_vm1 }
 0xccc   :  { %v1769_v56 = vmul.f32 %v2152_v54, %v1768_v55 }
 0xcce   :  { %v1770_v61 = vmul.f32 0.5, %v1769_v56 }
 0xcd0   :  { %v1771_v59 = vsub.f32 1.5, %v1770_v61 }
 0xcd2   :  { %v1772_v63 = vmul.f32 %v2152_v54, %v1771_v59  ;;  %v1919_v59 = vperm.slane %v2934_v44, 7 }
 0xcd4   :  { %v1776_v2 = vsel %vm1775_vm8, %v2152_v54, %v1772_v63 }
 0xcd5   :  { %v1787_v5 = vmul.f32 %v1776_v2, %v1753_v37 }
 0xcd7   :  { %v1790_v9 = vmul.f32 %v1789_v1, %v1787_v5 }
 0xcd9   :  { %v1793_v10 = vadd.f32 %v1792_v8, %v1790_v9 }
 0xcdb   :  { %2025 = vmatmul.msk.f32.vlgmr.msra.gmra.mxu2 %vm162_vm0, %v1793_v10 }
 0xce6   :  { %v1750_v11 = vpop.xlane.xlu0 %1749 }
 0xce7   :  { %v1752_v13 = vmul.f32 %v1750_v11, %v2726_v7 }
 0xce9   :  { %v1754_v14 = vsub.f32 %v1744_v19, %v1752_v13 }
 0xceb   :  { %v1756_v15 = vmul.f32 %v1754_v14, %v1754_v14 }
 0xced   :  { %v1760_v16 = vsel %vm162_vm0, %v1756_v15, 0.0 }
 0xcee   :  { %1761 = vadd.xlane.f32.xlu1 %v1760_v16 }
 0xd5e   :  { %v1826_v23 = vpop.f32.mrf.mxu2 }
 0xd5f   :  { %v1827_v18 = vadd.f32 %v2079_v31, %v1826_v23 }
 0xd61   :  { %v1832_v6 = vmax.f32 %v1827_v18, 0.0  ;;  %v1762_v20 = vpop.xlane.xlu1 %1761 }
 0xd62   :  { %v1764_v22 = vmul.f32 %v1762_v20, %v2726_v7 }
 0xd63   :  { %2027 = vmatmul.msk.f32.vlgmr.msra.gmra.mxu3 %vm1843_vm12, %v1832_v6 }
 0xd64   :  { %v1766_v24 = vadd.f32 1e-05, %v1764_v22 }
 0xd66   :  { %2153 = vrsqrt.f32 %v1766_v24  ;;  %vm1783_vm14 = vweird.f32 %v1766_v24 }
 0xd6c   :  { %v2154_v50 = vpop.eup %2153 }
 0xd6d   :  { %v1778_v25 = vmul.f32 %v2154_v50, %v1766_v24  ;;  %vm1784_vm13 = vweird.f32 %v2154_v50 }
 0xd6e   :  { %vm1785_vm15 = vmor %vm1783_vm14, %vm1784_vm13 }
 0xd6f   :  { %v1779_v26 = vmul.f32 %v2154_v50, %v1778_v25 }
 0xd71   :  { %v1780_v21 = vmul.f32 0.5, %v1779_v26 }
 0xd73   :  { %v1781_v12 = vsub.f32 1.5, %v1780_v21 }
 0xd75   :  { %v1782_v27 = vmul.f32 %v2154_v50, %v1781_v12 }
 0xd77   :  { %v1786_v28 = vsel %vm1785_vm15, %v2154_v50, %v1782_v27 }
 0xd78   :  { %v1788_v29 = vmul.f32 %v1786_v28, %v1754_v14 }
 0xd7a   :  { %v1791_v30 = vmul.f32 %v1789_v1, %v1788_v29 }
 0xd7c   :  { %v1794_v33 = vadd.f32 %v1792_v8, %v1791_v30 }
 0xd7e   :  { %2026 = vmatmul.msk.f32.gmra.mxu2 %vm162_vm0, %v1794_v33 }
 0xde6   :  { %v1867_v32 = vpop.f32.mrf.mxu3 }
 0xde7   :  { %v1868_v35 = vadd.f32 %v1867_v32, %v1842_v48 }
 0xde9   :  { %v1873_v60 = vadd.f32 %v1868_v35, %v1793_v10 }
 0xdeb   :  { %v1875_v34 = vsel %vm162_vm0, %v1873_v60, 0.0 }
 0xdec   :  { %1876 = vadd.xlane.f32.xlu2 %v1875_v34 }
 0xe01   :  { %v1829_v36 = vpop.f32.mrf.mxu2 }
 0xe02   :  { %v1830_v37 = vadd.f32 %v2079_v31, %v1829_v36 }
 0xe04   :  { %v1833_v39 = vmax.f32 %v1830_v37, 0.0 }
 0xe06   :  { %2028 = vmatmul.msk.f32.gmra.mxu3 %vm1843_vm12, %v1833_v39 }
 0xe5f   :  { %v1877_v53 = vpop.xlane.xlu2 %1876 }
 0xe60   :  { %v1881_v41 = vmul.f32 %v1877_v53, %v2726_v7 }
 0xe62   :  { %v1883_v42 = vsub.f32 %v1873_v60, %v1881_v41 }
 0xe64   :  { %v1885_v19 = vmul.f32 %v1883_v42, %v1883_v42 }
 0xe66   :  { %v1887_v43 = vsel %vm162_vm0, %v1885_v19, 0.0 }
 0xe67   :  { %1888 = vadd.xlane.f32.xlu1 %v1887_v43 }
 0xe89   :  { %v1870_v45 = vpop.f32.mrf.mxu3 }
 0xe8a   :  { %v1871_v46 = vadd.f32 %v1870_v45, %v1842_v48 }
 0xe8c   :  { %v1874_v52 = vadd.f32 %v1871_v46, %v1794_v33 }
 0xe8e   :  { %v1878_v47 = vsel %vm162_vm0, %v1874_v52, 0.0 }
 0xe8f   :  { %1879 = vadd.xlane.f32.xlu0 %v1878_v47 }
 0xeda   :  { %v1889_v49 = vpop.xlane.xlu1 %1888 }
 0xedb   :  { %v1893_v51 = vmul.f32 %v1889_v49, %v2726_v7 }
 0xedd   :  { %v1895_v40 = vadd.f32 1e-05, %v1893_v51 }
 0xedf   :  { %2155 = vrsqrt.f32 %v1895_v40  ;;  %vm1903_vm3 = vweird.f32 %v1895_v40 }
 0xee5   :  { %v2156_v54 = vpop.eup %2155 }
 0xee6   :  { %v1898_v55 = vmul.f32 %v2156_v54, %v1895_v40  ;;  %vm1904_vm2 = vweird.f32 %v2156_v54 }
 0xee7   :  { %vm1905_vm4 = vmor %vm1903_vm3, %vm1904_vm2 }
 0xee8   :  { %v1899_v56 = vmul.f32 %v2156_v54, %v1898_v55 }
 0xeea   :  { %v1900_v61 = vmul.f32 0.5, %v1899_v56 }
 0xeec   :  { %v1901_v4 = vsub.f32 1.5, %v1900_v61 }
 0xeee   :  { %v1902_v57 = vmul.f32 %v2156_v54, %v1901_v4 }
 0xef0   :  { %v1906_v62 = vsel %vm1905_vm4, %v2156_v54, %v1902_v57 }
 0xef1   :  { %v1917_v63 = vmul.f32 %v1906_v62, %v1883_v42 }
 0xef3   :  { %v1920_v1 = vmul.f32 %v1919_v59, %v1917_v63 }
 0xef5   :  { %v1923_v2 = vadd.f32 %v2080_v0, %v1920_v1 }
 0xef7   :  { %1925 = vst.msk [vmem:[#allocation13] sm:$0xff] %vm162_vm0, %v1923_v2 }
 0xf02   :  { %v1880_v3 = vpop.xlane.xlu0 %1879 }
 0xf03   :  { %v1882_v5 = vmul.f32 %v1880_v3, %v2726_v7 }
 0xf05   :  { %v1884_v8 = vsub.f32 %v1874_v52, %v1882_v5 }
 0xf07   :  { %v1886_v9 = vmul.f32 %v1884_v8, %v1884_v8 }
 0xf09   :  { %v1890_v10 = vsel %vm162_vm0, %v1886_v9, 0.0 }
 0xf0a   :  { %1891 = vadd.xlane.f32.xlu2 %v1890_v10 }
 0xf7d   :  { %v1892_v11 = vpop.xlane.xlu2 %1891 }
 0xf7e   :  { %v1894_v13 = vmul.f32 %v1892_v11, %v2726_v7 }
 0xf80   :  { %v1896_v14 = vadd.f32 1e-05, %v1894_v13 }
 0xf82   :  { %2157 = vrsqrt.f32 %v1896_v14  ;;  %vm1913_vm6 = vweird.f32 %v1896_v14 }
 0xf88   :  { %v2158_v15 = vpop.eup %2157 }
 0xf89   :  { %v1908_v16 = vmul.f32 %v2158_v15, %v1896_v14  ;;  %vm1914_vm5 = vweird.f32 %v2158_v15 }
 0xf8a   :  { %vm1915_vm9 = vmor %vm1913_vm6, %vm1914_vm5 }
 0xf8b   :  { %v1909_v58 = vmul.f32 %v2158_v15, %v1908_v16 }
 0xf8d   :  { %v1910_v38 = vmul.f32 0.5, %v1909_v58 }
 0xf8f   :  { %v1911_v17 = vsub.f32 1.5, %v1910_v38 }
 0xf91   :  { %v1912_v31 = vmul.f32 %v2158_v15, %v1911_v17 }
 0xf93   :  { %v1916_v23 = vsel %vm1915_vm9, %v2158_v15, %v1912_v31 }
 0xf94   :  { %v1918_v18 = vmul.f32 %v1916_v23, %v1884_v8 }
 0xf96   :  { %v1921_v7 = vmul.f32 %v1919_v59, %v1918_v18 }
 0xf98   :  { %v1924_v6 = vadd.f32 %v2080_v0, %v1921_v7 }
 0xf9a   :  { %1926 = vst.msk [vmem:[#allocation13 + $0x8] sm:$0xff] %vm162_vm0, %v1924_v6 }
 0xf9b   :  { %1939 = dma.vmem_to_hbm [thread:$0]  %s1932_s18, 256, %s1934_s24, [#allocation4], %s2365_s21, %s2365_s21, %s2366_s22  }
 0xf9c   :  { %2360 = dma.done.wait [#allocation4], 256  }
 0xf9d   :  { %2361 = vsyncadd [#allocation4], 4294967040 }
 0xf9e   :  { %2362 = dma.done.wait [#allocation15], 1024  }
 0xf9f   :  { %2363 = vsyncadd [#allocation15], 4294966272 }
 0xfa0   :  { %1961 = vsyncpa [#allocation3], 1 }
 0xfa1   :  { %1962 = vsyncpa [#allocation6], 1 }
 0xfa2   :  { %1963 = vsyncpa [#allocation9], 1 }
 0xfa3   :  { %1964 = vsyncpa [#allocation12], 1 }
 0xfa4   :  { %1965 = vsyncpa [#allocation4], 1 }
 0xfa5   :  { %1966 = vsyncpa [#allocation15], 1 }

// kernel: tpu_custom_call.1
= control target key start
LH: loop header
LB: loop body
LE: loop exit
PB: predicated region body
PF: predicated region fallthrough
CT: control target
= control target key end

     0   :  { %20 = vsyncpa [#allocation3], 0  ;;  %s2961_s0 = inlined_call_operand.hbm [shape: f32[2,8,32], index: 0, kind: input, shape index: {}]   ;;  %s2962_s1 = inlined_call_operand.hbm [shape: f32[2,8,32], index: 1, kind: input, shape index: {}]   ;;  %s2963_s2 = inlined_call_operand.hbm [shape: f32[2,1,8], index: 2, kind: input, shape index: {}]   ;;  %s2964_s3 = inlined_call_operand.vmem [shape: f32[32,96], index: 3, kind: input, shape index: {}]   ;;  %s2965_s4 = inlined_call_operand.vmem [shape: f32[1,96], index: 4, kind: input, shape index: {}]   ;;  %s2966_s5 = inlined_call_operand.vmem [shape: f32[32,32], index: 5, kind: input, shape index: {}]   ;;  %s2967_s6 = inlined_call_operand.vmem [shape: f32[32,96], index: 6, kind: input, shape index: {}]   ;;  %s2968_s7 = inlined_call_operand.vmem [shape: f32[1,96], index: 7, kind: input, shape index: {}]   ;;  %s2969_s8 = inlined_call_operand.hbm [shape: f32[32,32], index: 8, kind: input, shape index: {}]   ;;  %s2970_s9 = inlined_call_operand.hbm [shape: f32[32,64], index: 9, kind: input, shape index: {}]   ;;  %s2971_s10 = inlined_call_operand.vmem [shape: f32[1,64], index: 10, kind: input, shape index: {}]   ;;  %s2972_s11 = inlined_call_operand.vmem [shape: f32[64,32], index: 11, kind: input, shape index: {}]   ;;  %s2973_s12 = inlined_call_operand.hbm [shape: f32[9,32], index: 12, kind: input, shape index: {}]   ;;  %s2974_s13 = inlined_call_operand.hbm [shape: f32[2,8,32], index: 13, kind: output, shape index: {0}]   ;;  %s2975_s14 = inlined_call_operand.hbm [shape: f32[2,4,8,8], index: 14, kind: output, shape index: {1}]  }
   0x1   :  { %21 = vsyncpa [#allocation6], 0 }
   0x2   :  { %22 = vsyncpa [#allocation9], 0 }
   0x3   :  { %23 = vsyncpa [#allocation12], 0 }
   0x4   :  { %24 = vsyncpa [#allocation4], 0 }
   0x5   :  { %25 = vsyncpa [#allocation15], 0  ;;  %s43_s15 = sshll.u32 %s2962_s1, 4  ;;  %s2364_s16 = smov [#allocation5]   ;;  %s44_s15 = int_to_ptr.hbm [resolvable:$true] %s43_s15 }
   0x6   :  { %s45_s17 = sshll.u32 %s2364_s16, 4  ;;  %s79_s20 = sshll.u32 %s2969_s8, 4  ;;  %s46_s17 = int_to_ptr.vmem [resolvable:$true] %s45_s17  ;;  %s80_s20 = int_to_ptr.hbm [resolvable:$true] %s79_s20 }
   0x7   :  { %s2365_s21 = smov 128   ;;  %s2366_s22 = smov 8  }
   0x8   :  { %51 = dma.hbm_to_vmem [thread:$0]  %s44_s15, 256, %s46_s17, [#allocation6], %s2365_s21, %s2365_s21, %s2366_s22  }
   0x9   :  { %s2367_s23 = smov [#allocation8]   ;;  %s30_s1 = sshll.u32 %s2961_s0, 4  ;;  %s31_s1 = int_to_ptr.hbm [resolvable:$true] %s30_s1 }
   0xa   :  { %s81_s24 = sshll.u32 %s2367_s23, 4  ;;  %s56_s28 = sshll.u32 %s2963_s2, 4  ;;  %s82_s24 = int_to_ptr.vmem [resolvable:$true] %s81_s24  ;;  %s57_s28 = int_to_ptr.hbm [resolvable:$true] %s56_s28 }
   0xb   :  { %87 = dma.hbm_to_vmem [thread:$0]  %s80_s20, 512, %s82_s24, [#allocation9], %s2365_s21, %s2365_s21, %s2366_s22  }
   0xc   :  { %s2368_s29 = smov [#allocation2]   ;;  %s2369_s15 = smov [#allocation7]  }
   0xd   :  { %s32_s30 = sshll.u32 %s2368_s29, 4  ;;  %s58_s0 = sshll.u32 %s2369_s15, 4  ;;  %s33_s30 = int_to_ptr.vmem [resolvable:$true] %s32_s30  ;;  %s59_s0 = int_to_ptr.vmem [resolvable:$true] %s58_s0 }
   0xe   :  { %38 = dma.hbm_to_vmem [thread:$0]  %s31_s1, 256, %s33_s30, [#allocation3], %s2365_s21, %s2365_s21, %s2366_s22  }
   0xf   :  { %s2370_s16 = smov 16   ;;  %s2371_s17 = smov 1  }
  0x10   :  { %64 = dma.hbm_to_vmem [thread:$0]  %s57_s28, 32, %s59_s0, [#allocation6], %s2370_s16, %s2370_s16, %s2371_s17  }
  0x11   :  { %s92_s2 = sshll.u32 %s2970_s9, 4  ;;  %s2372_s20 = smov [#allocation10]   ;;  %s93_s2 = int_to_ptr.hbm [resolvable:$true] %s92_s2 }
  0x12   :  { %s94_s23 = sshll.u32 %s2372_s20, 4  ;;  %s109_s26 = sshll.u32 %s2973_s12, 4  ;;  %s95_s23 = int_to_ptr.vmem [resolvable:$true] %s94_s23  ;;  %s110_s26 = int_to_ptr.hbm [resolvable:$true] %s109_s26 }
  0x13   :  { %100 = dma.hbm_to_vmem [thread:$0]  %s93_s2, 512, %s95_s23, [#allocation9], %s2365_s21, %s2365_s21, %s2366_s22  }
  0x14   :  { %s2373_s1 = smov [#allocation11]  }
  0x15   :  { %s111_s8 = sshll.u32 %s2373_s1, 4  ;;  %s112_s8 = int_to_ptr.vmem [resolvable:$true] %s111_s8 }
  0x16   :  { %117 = dma.hbm_to_vmem [thread:$0]  %s110_s26, 256, %s112_s8, [#allocation12], %s2365_s21, %s2365_s21, %s2366_s22  }
  0x17   :  { %2352 = dma.done.wait [#allocation3], 256  }
  0x18   :  { %2353 = vsyncadd [#allocation3], 4294967040 }
  0x19   :  { %2354 = dma.done.wait [#allocation6], 288  }
  0x1a   :  { %2355 = vsyncadd [#allocation6], 4294967008 }
  0x1b   :  { %2356 = dma.done.wait [#allocation9], 1024  }
  0x1c   :  { %2357 = vsyncadd [#allocation9], 4294966272 }
  0x1d   :  { %2358 = dma.done.wait [#allocation12], 256  }
  0x1e   :  { %2359 = vsyncadd [#allocation12], 4294967040  ;;  %v157_v0 = vld [vmem:[%s2964_s3 + $0x18] sm:$0xff]  ;;  %v156_v1 = vld [vmem:[%s2964_s3 + $0x10] sm:$0xff]  ;;  %vm162_vm0 = vcmask 261120   ;;  %s2374_s19 = smov 120   ;;  %v148_v13 = vlaneseq }
  0x1f   :  { %181 = vmatpush.msra.mxu0 %v157_v0  ;;  %v155_v2 = vld [vmem:[%s2964_s3 + $0x8] sm:$0xff]  ;;  %v154_v3 = vld [vmem:[%s2964_s3] sm:$0xff]  ;;  %s2375_s3 = smov 80   ;;  %s2376_s2 = smov 104   ;;  %vm201_vm1 = vcmask 64512  }
  0x20   :  { %v2507_v4 = vld [vmem:[#allocation2] sm:$0xff]  ;;  %s2377_s20 = smov 56   ;;  %v2536_v12 = vld [vmem:[#allocation2 + $0x8] sm:$0xff]  ;;  %v149_v14 = vshrl.u32 %v148_v13, 7  ;;  %v151_v15 = vand.u32 127, %v148_v13  ;;  %s2380_s23 = smov 24  }
  0x21   :  { %182 = vmatpush.msra.mxu0 %v156_v1  ;;  %v2075_v5 = vld [vmem:[%s2965_s4] ss:$0 sm:$0xff]  ;;  %v2378_v17 = vmov -1e+10   ;;  %s2379_s4 = smov 112   ;;  %s2381_s15 = smov 96  }
  0x22   :  { %vm152_vm2 = vcmp.ge.s32.totalorder %v149_v14, %v151_v15  ;;  %s1946_s17 = sshll.u32 %s2975_s14, 4  ;;  %s2384_s14 = smov [#allocation13]   ;;  %s1947_s17 = int_to_ptr.hbm [resolvable:$true] %s1946_s17 }
  0x23   :  { %183 = vmatpush.msra.mxu0 %v155_v2  ;;  %v2541_v18 = vsel %vm152_vm2, 0.0, %v2378_v17  ;;  %s1931_s18 = sshll.u32 %s2384_s14, 4  ;;  %s1933_s24 = sshll.u32 %s2974_s13, 4  ;;  %s1932_s18 = int_to_ptr.vmem [resolvable:$true] %s1931_s18  ;;  %s1934_s24 = int_to_ptr.hbm [resolvable:$true] %s1933_s24 }
  0x25   :  { %184 = vmatpush.msra.mxu0 %v154_v3 }
  0x26   :  { %1967 = vmatmul.msk.f32.vlgmr.msra.gmra.mxu0 %vm162_vm0, %v2507_v4 }
  0x2e   :  { %1968 = vmatmul.msk.f32.gmra.mxu0 %vm162_vm0, %v2536_v12 }
  0xa3   :  { %v186_v6 = vpop.f32.mrf.mxu0 }
  0xa4   :  { %v2514_v7 = vadd.f32 %v2075_v5, %v186_v6 }
  0xa6   :  { %199 = vrot.lane.b32.xlu2 %v2514_v7, %s2374_s19  ;;  %195 = vrot.lane.b32.xlu1 %v2514_v7, %s2375_s3 }
  0xa7   :  { %193 = vrot.lane.b32.xlu0 %v2514_v7, %s2376_s2 }
  0xab   :  { %v189_v27 = vpop.f32.mrf.mxu0 }
  0xac   :  { %v2559_v31 = vadd.f32 %v2075_v5, %v189_v27 }
  0xaf   :  { %197 = vrot.lane.b32.xlu0 %v2514_v7, %s2377_s20 }
 0x100   :  { %v200_v8 = vpop.permute.xlu2 %199 }
 0x101   :  { %1969 = vmatpush.xpose.msk.msra.mxu1 %vm201_vm1, %v200_v8 }
 0x104   :  { %1970 = vmatmul.msk.f32.vlgmr.msra.gmra.mxu1 %vm201_vm1, %v2514_v7 }
 0x118   :  { %v2527_v9 = vpop.permute.xlu1 %195 }
 0x119   :  { %v2529_v10 = vpop.permute.xlu0 %193  ;;  %252 = vrot.lane.b32.xlu0 %v2527_v9, %s2374_s19 }
 0x11a   :  { %226 = vrot.lane.b32.xlu1 %v2529_v10, %s2374_s19 }
 0x121   :  { %v198_v11 = vpop.permute.xlu0 %197 }
 0x122   :  { %278 = vrot.lane.b32.xlu2 %v198_v11, %s2374_s19 }
 0x17c   :  { %v279_v16 = vpop.permute.xlu2 %278 }
 0x17d   :  { %1975 = vmatpush.xpose.msk.msrb.mxu1 %vm201_vm1, %v279_v16 }
 0x180   :  { %1976 = vmatmul.msk.f32.vlgmr.msrb.gmra.mxu1 %vm201_vm1, %v198_v11 }
 0x181   :  { %v223_v19 = vpop.f32.mrf.mxu1 }
 0x182   :  { %v224_v20 = vadd.f32 %v223_v19, %v2541_v18 }
 0x184   :  { %v304_v21 = vsel %vm201_vm1, %v224_v20, -inf }
 0x185   :  { %305 = vmax.xlane.f32.xlu2 %v304_v21 }
 0x18b   :  { %v253_v22 = vpop.permute.xlu0 %252 }
 0x18c   :  { %v227_v23 = vpop.permute.xlu1 %226  ;;  %1973 = vmatpush.xpose.msk.msrb.mxu0 %vm201_vm1, %v253_v22 }
 0x18d   :  { %1971 = vmatpush.xpose.msk.msra.mxu2 %vm201_vm1, %v227_v23 }
 0x18f   :  { %1974 = vmatmul.msk.f32.vlgmr.msrb.gmra.mxu0 %vm201_vm1, %v2527_v9 }
 0x190   :  { %1972 = vmatmul.msk.f32.vlgmr.msra.gmra.mxu2 %vm201_vm1, %v2529_v10 }
 0x1f8   :  { %v306_v35 = vpop.xlane.xlu2 %305 }
 0x1f9   :  { %v316_v36 = vsub.f32 %v224_v20, %v306_v35 }
 0x1fb   :  { %v320_v37 = vmul.f32 1.442695, %v316_v36 }
 0x1fd   :  { %v301_v24 = vpop.f32.mrf.mxu1  ;;  %2081 = vpow2.f32 %v320_v37 }
 0x1fe   :  { %v302_v25 = vadd.f32 %v301_v24, %v2541_v18 }
 0x200   :  { %v313_v26 = vsel %vm201_vm1, %v302_v25, -inf }
 0x201   :  { %314 = vmax.xlane.f32.xlu0 %v313_v26 }
 0x203   :  { %v2082_v38 = vpop.eup %2081 }
 0x204   :  { %v328_v39 = vsel %vm201_vm1, %v2082_v38, 0.0 }
 0x20c   :  { %v275_v28 = vpop.f32.mrf.mxu0 }
 0x20d   :  { %v2555_v29 = vadd.f32 %v275_v28, %v2541_v18 }
 0x20f   :  { %v310_v30 = vsel %vm201_vm1, %v2555_v29, -inf }
 0x210   :  { %311 = vmax.xlane.f32.xlu2 %v310_v30 }
 0x213   :  { %v249_v32 = vpop.f32.mrf.mxu2 }
 0x214   :  { %v250_v33 = vadd.f32 %v249_v32, %v2541_v18 }
 0x215   :  { %528 = vrot.lane.b32.xlu0 %v2559_v31, %s2375_s3 }
 0x216   :  { %v307_v34 = vsel %vm201_vm1, %v250_v33, -inf }
 0x217   :  { %308 = vmax.xlane.f32.xlu1 %v307_v34 }
 0x228   :  { %530 = vrot.lane.b32.xlu2 %v2559_v31, %s2377_s20 }
 0x230   :  { %526 = vrot.lane.b32.xlu1 %v2559_v31, %s2376_s2 }
 0x23f   :  { %329 = vadd.xlane.f32.xlu0 %v328_v39 }
 0x253   :  { %532 = vrot.lane.b32.xlu0 %v2559_v31, %s2374_s19 }
 0x25b   :  { %404 = vrot.lane.b32.xlu0 %v2514_v7, %s2379_s4 }
 0x263   :  { %482 = vrot.lane.b32.xlu0 %v198_v11, %s2379_s4 }
 0x274   :  { %v315_v40 = vpop.xlane.xlu0 %314 }
 0x275   :  { %v319_v41 = vsub.f32 %v302_v25, %v315_v40 }
 0x277   :  { %v326_v42 = vmul.f32 1.442695, %v319_v41 }
 0x279   :  { %2083 = vpow2.f32 %v326_v42 }
 0x27f   :  { %v2575_v43 = vpop.eup %2083 }
 0x280   :  { %v337_v44 = vsel %vm201_vm1, %v2575_v43, 0.0 }
 0x281   :  { %338 = vadd.xlane.f32.xlu2 %v337_v44 }
 0x283   :  { %v312_v45 = vpop.xlane.xlu2 %311 }
 0x284   :  { %v318_v0 = vsub.f32 %v2555_v29, %v312_v45 }
 0x286   :  { %v324_v3 = vmul.f32 1.442695, %v318_v0 }
 0x287   :  { %v2589_v52 = vpop.permute.xlu0 %528 }
 0x28a   :  { %v309_v46 = vpop.xlane.xlu1 %308 }
 0x28b   :  { %v317_v47 = vsub.f32 %v250_v33, %v309_v46  ;;  %v2579_v48 = vpop.permute.xlu2 %530 }
 0x28c   :  { %610 = vrot.lane.b32.xlu0 %v2579_v48, %s2374_s19 }
 0x28d   :  { %v322_v49 = vmul.f32 1.442695, %v317_v47 }
 0x28f   :  { %2085 = vpow2.f32 %v322_v49 }
 0x294   :  { %456 = vrot.lane.b32.xlu0 %v2527_v9, %s2379_s4 }
 0x295   :  { %v2585_v50 = vpop.eup %2085 }
 0x296   :  { %v331_v51 = vsel %vm201_vm1, %v2585_v50, 0.0 }
 0x297   :  { %332 = vadd.xlane.f32.xlu1 %v331_v51 }
 0x29c   :  { %584 = vrot.lane.b32.xlu0 %v2589_v52, %s2374_s19 }
 0x2a2   :  { %v2593_v53 = vpop.permute.xlu1 %526 }
 0x2a3   :  { %558 = vrot.lane.b32.xlu2 %v2593_v53, %s2374_s19 }
 0x2b0   :  { %430 = vrot.lane.b32.xlu1 %v2529_v10, %s2379_s4 }
 0x2b2   :  { %v330_v54 = vpop.xlane.xlu0 %329 }
 0x2b3   :  { %2087 = vrcp.f32 %v330_v54  ;;  %v351_v60 = vand.u32 2147483648, %v330_v54  ;;  %vm345_vm4 = vweird.f32 %v330_v54  ;;  %v349_v61 = vand.u32 2147483647, %v330_v54 }
 0x2b4   :  { %2089 = vpow2.f32 %v324_v3 }
 0x2b5   :  { %v352_v1 = vor.u32 1.1754944e-38, %v351_v60  ;;  %vm350_vm6 = vcmp.eq.f32.partialorder %v349_v61, 8.507059e+37 }
 0x2b9   :  { %v2088_v55 = vpop.eup %2087 }
 0x2ba   :  { %v341_v56 = vmul.f32 %v2088_v55, %v330_v54  ;;  %vm346_vm3 = vweird.f32 %v2088_v55  ;;  %v2603_v8 = vpop.eup %2089 }
 0x2bb   :  { %vm347_vm5 = vmor %vm345_vm4, %vm346_vm3  ;;  %v334_v9 = vsel %vm201_vm1, %v2603_v8, 0.0 }
 0x2bc   :  { %v342_v57 = vsub.f32 1.0, %v341_v56 }
 0x2be   :  { %v343_v58 = vmul.f32 %v2088_v55, %v342_v57 }
 0x2c0   :  { %v344_v59 = vadd.f32 %v2088_v55, %v343_v58 }
 0x2c2   :  { %v348_v63 = vsel %vm347_vm5, %v2088_v55, %v344_v59 }
 0x2c3   :  { %v353_v2 = vsel %vm350_vm6, %v352_v1, %v348_v63 }
 0x2c4   :  { %v400_v6 = vmul.f32 %v2082_v38, %v353_v2 }
 0x2c5   :  { %v2599_v62 = vpop.permute.xlu0 %532 }
 0x2cd   :  { %v405_v5 = vpop.permute.xlu0 %404 }
 0x2ce   :  { %425 = vmatpush.msrb.mxu2 %v405_v5 }
 0x2cf   :  { %1977 = vmatmul.msk.f32.vlgmr.msrb.gmra.mxu2 %vm201_vm1, %v400_v6 }
 0x2d5   :  { %v483_v7 = vpop.permute.xlu0 %482 }
 0x2d6   :  { %503 = vmatpush.msra.mxu2 %v483_v7 }
 0x2da   :  { %335 = vadd.xlane.f32.xlu1 %v334_v9 }
 0x2f4   :  { %v339_v10 = vpop.xlane.xlu2 %338 }
 0x2f5   :  { %2091 = vrcp.f32 %v339_v10  ;;  %v396_v17 = vand.u32 2147483648, %v339_v10  ;;  %v394_v20 = vand.u32 2147483647, %v339_v10  ;;  %vm390_vm8 = vweird.f32 %v339_v10 }
 0x2f7   :  { %v397_v22 = vor.u32 1.1754944e-38, %v396_v17  ;;  %vm395_vm10 = vcmp.eq.f32.partialorder %v394_v20, 8.507059e+37 }
 0x2fb   :  { %v2092_v11 = vpop.eup %2091 }
 0x2fc   :  { %v386_v13 = vmul.f32 %v2092_v11, %v339_v10  ;;  %vm391_vm7 = vweird.f32 %v2092_v11 }
 0x2fd   :  { %v559_v14 = vpop.permute.xlu2 %558  ;;  %vm392_vm9 = vmor %vm390_vm8, %vm391_vm7 }
 0x2fe   :  { %v387_v15 = vsub.f32 1.0, %v386_v13  ;;  %1983 = vmatpush.xpose.msk.msra.mxu0 %vm201_vm1, %v559_v14  ;;  %v611_v16 = vpop.permute.xlu0 %610 }
 0x2ff   :  { %1987 = vmatpush.xpose.msk.msrb.mxu2 %vm201_vm1, %v611_v16 }
 0x300   :  { %v388_v19 = vmul.f32 %v2092_v11, %v387_v15 }
 0x301   :  { %1984 = vmatmul.msk.f32.vlgmr.msra.gmra.mxu0 %vm201_vm1, %v2593_v53 }
 0x302   :  { %v389_v21 = vadd.f32 %v2092_v11, %v388_v19 }
 0x304   :  { %v393_v23 = vsel %vm392_vm9, %v2092_v11, %v389_v21 }
 0x305   :  { %v398_v24 = vsel %vm395_vm10, %v397_v22, %v393_v23 }
 0x306   :  { %v457_v25 = vpop.permute.xlu0 %456  ;;  %v403_v26 = vmul.f32 %v2575_v43, %v398_v24 }
 0x307   :  { %477 = vmatpush.msra.mxu1 %v457_v25 }
 0x308   :  { %1980 = vmatmul.msk.f32.vlgmr.msra.gmra.mxu2 %vm201_vm1, %v403_v26 }
 0x30a   :  { %v333_v27 = vpop.xlane.xlu1 %332 }
 0x30b   :  { %2093 = vrcp.f32 %v333_v27  ;;  %v366_v35 = vand.u32 2147483648, %v333_v27  ;;  %vm360_vm12 = vweird.f32 %v333_v27  ;;  %v364_v36 = vand.u32 2147483647, %v333_v27 }
 0x30d   :  { %v367_v38 = vor.u32 1.1754944e-38, %v366_v35  ;;  %vm365_vm14 = vcmp.eq.f32.partialorder %v364_v36, 8.507059e+37 }
 0x30e   :  { %v585_v28 = vpop.permute.xlu0 %584 }
 0x30f   :  { %1985 = vmatpush.xpose.msk.msrb.mxu1 %vm201_vm1, %v585_v28 }
 0x310   :  { %1988 = vmatmul.msk.f32.vlgmr.msrb.gmra.mxu2 %vm201_vm1, %v2579_v48 }
 0x311   :  { %v2094_v29 = vpop.eup %2093 }
 0x312   :  { %v356_v30 = vmul.f32 %v2094_v29, %v333_v27  ;;  %vm361_vm11 = vweird.f32 %v2094_v29 }
 0x313   :  { %vm362_vm13 = vmor %vm360_vm12, %vm361_vm11 }
 0x314   :  { %v357_v32 = vsub.f32 1.0, %v356_v30 }
 0x316   :  { %v358_v33 = vmul.f32 %v2094_v29, %v357_v32 }
 0x318   :  { %v359_v34 = vadd.f32 %v2094_v29, %v358_v33 }
 0x31a   :  { %v363_v37 = vsel %vm362_vm13, %v2094_v29, %v359_v34 }
 0x31b   :  { %v368_v39 = vsel %vm365_vm14, %v367_v38, %v363_v37 }
 0x31c   :  { %v401_v41 = vmul.f32 %v2585_v50, %v368_v39 }
 0x322   :  { %v431_v40 = vpop.permute.xlu1 %430 }
 0x323   :  { %451 = vmatpush.msra.mxu3 %v431_v40 }
 0x324   :  { %1978 = vmatmul.msk.f32.vlgmr.msra.gmra.mxu3 %vm201_vm1, %v401_v41 }
 0x325   :  { %1981 = vmatpush.xpose.msk.msrb.mxu3 %vm201_vm1, %v2599_v62 }
 0x32c   :  { %1982 = vmatmul.msk.f32.vlgmr.msrb.gmra.mxu3 %vm201_vm1, %v2559_v31 }
 0x34d   :  { %v336_v42 = vpop.xlane.xlu1 %335 }
 0x34e   :  { %2095 = vrcp.f32 %v336_v42  ;;  %v381_v46 = vand.u32 2147483648, %v336_v42  ;;  %v379_v49 = vand.u32 2147483647, %v336_v42  ;;  %vm375_vm2 = vweird.f32 %v336_v42 }
 0x350   :  { %v382_v50 = vor.u32 1.1754944e-38, %v381_v46  ;;  %vm380_vm4 = vcmp.eq.f32.partialorder %v379_v49, 8.507059e+37 }
 0x352   :  { %v2628_v60 = vpop.f32.mrf.mxu2 }
 0x354   :  { %v2096_v43 = vpop.eup %2095 }
 0x355   :  { %v371_v44 = vmul.f32 %v2096_v43, %v336_v42  ;;  %vm376_vm15 = vweird.f32 %v2096_v43 }
 0x356   :  { %vm377_vm3 = vmor %vm375_vm2, %vm376_vm15 }
 0x357   :  { %v372_v45 = vsub.f32 1.0, %v371_v44 }
 0x359   :  { %v373_v47 = vmul.f32 %v2096_v43, %v372_v45 }
 0x35b   :  { %v374_v51 = vadd.f32 %v2096_v43, %v373_v47 }
 0x35d   :  { %v378_v54 = vsel %vm377_vm3, %v2096_v43, %v374_v51 }
 0x35e   :  { %v383_v55 = vsel %vm380_vm4, %v382_v50, %v378_v54 }
 0x35f   :  { %v402_v56 = vmul.f32 %v2603_v8, %v383_v55 }
 0x361   :  { %1979 = vmatmul.msk.f32.vlgmr.msra.gmra.mxu1 %vm201_vm1, %v402_v56 }
 0x369   :  { %1986 = vmatmul.msk.f32.vlgmr.msrb.gmra.mxu1 %vm201_vm1, %v2589_v52 }
 0x37e   :  { %v581_v57 = vpop.f32.mrf.mxu0 }
 0x37f   :  { %v582_v58 = vadd.f32 %v581_v57, %v2541_v18 }
 0x381   :  { %v639_v59 = vsel %vm201_vm1, %v582_v58, -inf }
 0x382   :  { %640 = vmax.xlane.f32.xlu1 %v639_v59 }
 0x38b   :  { %v505_v61 = vpop.f32.mrf.mxu2 }
 0x393   :  { %v633_v62 = vpop.f32.mrf.mxu2 }
 0x394   :  { %v634_v63 = vadd.f32 %v633_v62, %v2541_v18 }
 0x396   :  { %v645_v0 = vsel %vm201_vm1, %v634_v63, -inf }
 0x397   :  { %646 = vmax.xlane.f32.xlu0 %v645_v0  ;;  %v858_v0 = vld [vmem:[%s2966_s5 + $0x18] sm:$0xff] }
 0x3a7   :  { %v453_v1 = vpop.f32.mrf.mxu3 }
 0x3ab   :  { %509 = vrot.lane.b32.xlu0 %v453_v1, %s2366_s22  ;;  %v857_v1 = vld [vmem:[%s2966_s5 + $0x10] sm:$0xff] }
 0x3af   :  { %v555_v13 = vpop.f32.mrf.mxu3 }
 0x3b0   :  { %v556_v14 = vadd.f32 %v555_v13, %v2541_v18 }
 0x3b2   :  { %v636_v15 = vsel %vm201_vm1, %v556_v14, -inf }
 0x3de   :  { %v479_v2 = vpop.f32.mrf.mxu1 }
 0x3e6   :  { %v607_v3 = vpop.f32.mrf.mxu1 }
 0x3e7   :  { %v608_v5 = vadd.f32 %v607_v3, %v2541_v18  ;;  %v2050_v18 = vpack.i.bf16 %v2593_v53, %v2579_v48  ;;  %v855_v3 = vld [vmem:[%s2966_s5] sm:$0xff] }
 0x3e9   :  { %v642_v6 = vsel %vm201_vm1, %v608_v5, -inf }
 0x3ea   :  { %643 = vmax.xlane.f32.xlu2 %v642_v6 }
 0x3f5   :  { %v641_v7 = vpop.xlane.xlu1 %640 }
 0x3f6   :  { %v649_v8 = vsub.f32 %v582_v58, %v641_v7 }
 0x3f8   :  { %v654_v9 = vmul.f32 1.442695, %v649_v8 }
 0x3fa   :  { %2097 = vpow2.f32 %v654_v9 }
 0x400   :  { %v2098_v10 = vpop.eup %2097 }
 0x401   :  { %v663_v11 = vsel %vm201_vm1, %v2098_v10, 0.0 }
 0x402   :  { %513 = vrot.lane.b32.xlu2 %v479_v2, %s2370_s16  ;;  %664 = vadd.xlane.f32.xlu1 %v663_v11  ;;  %v856_v2 = vld [vmem:[%s2966_s5 + $0x8] sm:$0xff] }
 0x41b   :  { %736 = vrot.lane.b32.xlu1 %v2559_v31, %s2379_s4  ;;  %v647_v31 = vpop.xlane.xlu0 %646 }
 0x41c   :  { %v651_v22 = vsub.f32 %v634_v63, %v647_v31 }
 0x41e   :  { %v658_v23 = vmul.f32 1.442695, %v651_v22 }
 0x423   :  { %v2656_v34 = vpop.permute.xlu0 %509 }
 0x445   :  { %637 = vmax.xlane.f32.xlu1 %v636_v15 }
 0x45d   :  { %v644_v16 = vpop.xlane.xlu2 %643 }
 0x45e   :  { %v650_v17 = vsub.f32 %v608_v5, %v644_v16  ;;  %517 = vrot.lane.b32.xlu1 %v505_v61, %s2380_s23 }
 0x460   :  { %v656_v19 = vmul.f32 1.442695, %v650_v17 }
 0x462   :  { %2099 = vpow2.f32 %v656_v19 }
 0x463   :  { %2101 = vpow2.f32 %v658_v23 }
 0x468   :  { %v2642_v20 = vpop.eup %2099 }
 0x469   :  { %v666_v21 = vsel %vm201_vm1, %v2642_v20, 0.0  ;;  %v2102_v24 = vpop.eup %2101 }
 0x46a   :  { %667 = vadd.xlane.f32.xlu0 %v666_v21  ;;  %v669_v26 = vsel %vm201_vm1, %v2102_v24, 0.0 }
 0x475   :  { %v665_v25 = vpop.xlane.xlu1 %664 }
 0x476   :  { %v698_v39 = vand.u32 2147483648, %v665_v25  ;;  %vm692_vm6 = vweird.f32 %v665_v25  ;;  %v696_v40 = vand.u32 2147483647, %v665_v25 }
 0x478   :  { %v699_v42 = vor.u32 1.1754944e-38, %v698_v39  ;;  %vm697_vm8 = vcmp.eq.f32.partialorder %v696_v40, 8.507059e+37  ;;  %v948_v39 = vld [vmem:[%s2967_s6] sm:$0xff]  ;;  %v949_v40 = vld [vmem:[%s2967_s6 + $0x8] sm:$0xff] }
 0x47e   :  { %2051 = vrot.lane.b32.xlu0 %v2050_v18, %s2379_s4 }
 0x488   :  { %670 = vadd.xlane.f32.xlu1 %v669_v26 }
 0x48d   :  { %v737_v27 = vpop.permute.xlu1 %736 }
 0x48e   :  { %757 = vmatpush.msra.mxu3 %v737_v27 }
 0x490   :  { %878 = vmatpush.msrb.mxu3 %v858_v0 }
 0x492   :  { %879 = vmatpush.msrb.mxu3 %v857_v1  ;;  %v146_v1 = vld [vmem:[#allocation5] sm:$0xff] }
 0x494   :  { %880 = vmatpush.msrb.mxu3 %v856_v2 }
 0x496   :  { %881 = vmatpush.msrb.mxu3 %v855_v3 }
 0x4b8   :  { %v638_v28 = vpop.xlane.xlu1 %637 }
 0x4b9   :  { %v648_v29 = vsub.f32 %v556_v14, %v638_v28  ;;  %v514_v28 = vpop.permute.xlu2 %513 }
 0x4bb   :  { %v652_v30 = vmul.f32 1.442695, %v648_v29 }
 0x4bd   :  { %2103 = vpow2.f32 %v652_v30 }
 0x4be   :  { %2105 = vrcp.f32 %v665_v25 }
 0x4c3   :  { %v2650_v32 = vpop.eup %2103 }
 0x4c4   :  { %v660_v33 = vsel %vm201_vm1, %v2650_v32, 0.0  ;;  %v2106_v48 = vpop.eup %2105 }
 0x4c5   :  { %661 = vadd.xlane.f32.xlu1 %v660_v33  ;;  %v688_v53 = vmul.f32 %v2106_v48, %v665_v25  ;;  %vm693_vm5 = vweird.f32 %v2106_v48  ;;  %v520_v33 = vsel %vm201_vm1, %v2628_v60, %v2656_v34  ;;  %v950_v60 = vld [vmem:[%s2967_s6 + $0x10] sm:$0xff] }
 0x4c6   :  { %vm694_vm7 = vmor %vm692_vm6, %vm693_vm5 }
 0x4c7   :  { %v689_v35 = vsub.f32 1.0, %v688_v53 }
 0x4c9   :  { %v690_v36 = vmul.f32 %v2106_v48, %v689_v35 }
 0x4cb   :  { %v691_v37 = vadd.f32 %v2106_v48, %v690_v36 }
 0x4cd   :  { %v695_v41 = vsel %vm694_vm7, %v2106_v48, %v691_v37  ;;  %vm521_vm7 = vcmask 130048  }
 0x4ce   :  { %v700_v43 = vsel %vm697_vm8, %v699_v42, %v695_v41  ;;  %vm523_vm8 = vcmask 195584   ;;  %v522_v48 = vsel %vm521_vm7, %v520_v33, %v514_v28  ;;  %v2060_v42 = vpack.i.bf16 %v948_v39, %v949_v40 }
 0x4d0   :  { %v2660_v47 = vpop.permute.xlu1 %517 }
 0x4dd   :  { %v2658_v38 = vpop.xlane.xlu0 %667 }
 0x4de   :  { %788 = vrot.lane.b32.xlu1 %v2589_v52, %s2379_s4  ;;  %v733_v52 = vmul.f32 %v2098_v10, %v700_v43  ;;  %v713_v21 = vand.u32 2147483648, %v2658_v38  ;;  %vm707_vm3 = vweird.f32 %v2658_v38  ;;  %v711_v22 = vand.u32 2147483647, %v2658_v38 }
 0x4e0   :  { %v714_v26 = vor.u32 1.1754944e-38, %v713_v21  ;;  %vm712_vm6 = vcmp.eq.f32.partialorder %v711_v22, 8.507059e+37 }
 0x4f0   :  { %v2052_v44 = vpop.permute.xlu0 %2051 }
 0x4f1   :  { %v2054_v45 = vunpack.i.h.bf16 %v2052_v44  ;;  %v2053_v46 = vunpack.i.l.bf16 %v2052_v44 }
 0x4f3   :  { %783 = vmatpush.msrb.mxu0 %v2054_v45  ;;  %835 = vmatpush.msra.mxu2 %v2053_v46 }
 0x4f4   :  { %1990 = vmatmul.msk.f32.vlgmr.msrb.gmra.mxu0 %vm201_vm1, %v733_v52 }
 0x4fb   :  { %v671_v49 = vpop.xlane.xlu1 %670 }
 0x4fc   :  { %2107 = vrcp.f32 %v671_v49  ;;  %v728_v55 = vand.u32 2147483648, %v671_v49  ;;  %v726_v57 = vand.u32 2147483647, %v671_v49  ;;  %vm722_vm10 = vweird.f32 %v671_v49 }
 0x4fd   :  { %2109 = vrcp.f32 %v2658_v38 }
 0x4fe   :  { %v729_v59 = vor.u32 1.1754944e-38, %v728_v55  ;;  %vm727_vm12 = vcmp.eq.f32.partialorder %v726_v57, 8.507059e+37 }
 0x502   :  { %v2108_v51 = vpop.eup %2107 }
 0x503   :  { %v718_v50 = vmul.f32 %v2108_v51, %v671_v49  ;;  %vm723_vm9 = vweird.f32 %v2108_v51  ;;  %v2110_v5 = vpop.eup %2109  ;;  %v2382_v49 = vmov 32.0  }
 0x504   :  { %vm724_vm11 = vmor %vm722_vm10, %vm723_vm9  ;;  %v703_v7 = vmul.f32 %v2110_v5, %v2658_v38  ;;  %vm708_vm14 = vweird.f32 %v2110_v5  ;;  %v2702_v38 = vld [vmem:[#allocation11] sm:$0xff] }
 0x505   :  { %v719_v54 = vsub.f32 1.0, %v718_v50  ;;  %vm709_vm5 = vmor %vm707_vm3, %vm708_vm14  ;;  %v859_v41 = vperm.slane %v2702_v38, 0  ;;  %v2717_v50 = vld [vmem:[%s2968_s7] ss:$0 sm:$0xff] }
 0x506   :  { %v704_v8 = vsub.f32 1.0, %v703_v7 }
 0x507   :  { %v720_v56 = vmul.f32 %v2108_v51, %v719_v54 }
 0x508   :  { %v705_v11 = vmul.f32 %v2110_v5, %v704_v8 }
 0x509   :  { %v721_v58 = vadd.f32 %v2108_v51, %v720_v56 }
 0x50a   :  { %v706_v17 = vadd.f32 %v2110_v5, %v705_v11 }
 0x50b   :  { %v725_v61 = vsel %vm724_vm11, %v2108_v51, %v721_v58 }
 0x50c   :  { %v730_v62 = vsel %vm727_vm12, %v729_v59, %v725_v61 }
 0x50d   :  { %v735_v63 = vmul.f32 %v2102_v24, %v730_v62  ;;  %v710_v24 = vsel %vm709_vm5, %v2110_v5, %v706_v17 }
 0x50e   :  { %v715_v27 = vsel %vm712_vm6, %v714_v26, %v710_v24 }
 0x50f   :  { %1992 = vmatmul.msk.f32.vlgmr.msra.gmra.mxu2 %vm201_vm1, %v735_v63  ;;  %v734_v30 = vmul.f32 %v2642_v20, %v715_v27  ;;  %v951_v20 = vld [vmem:[%s2967_s6 + $0x18] sm:$0xff] }
 0x510   :  { %v2055_v34 = vpack.i.bf16 %v950_v60, %v951_v20  ;;  %974 = vmatpush.msra.mxu0 %v951_v20 }
 0x512   :  { %975 = vmatpush.msra.mxu0 %v950_v60 }
 0x514   :  { %976 = vmatpush.msra.mxu0 %v949_v40 }
 0x516   :  { %977 = vmatpush.msra.mxu0 %v948_v39 }
 0x538   :  { %v662_v6 = vpop.xlane.xlu1 %661 }
 0x539   :  { %2111 = vrcp.f32 %v662_v6  ;;  %v683_v14 = vand.u32 2147483648, %v662_v6  ;;  %v681_v16 = vand.u32 2147483647, %v662_v6  ;;  %vm677_vm15 = vweird.f32 %v662_v6 }
 0x53a   :  { %2113 = vrcp.f32 %v2382_v49 }
 0x53b   :  { %v684_v31 = vor.u32 1.1754944e-38, %v683_v14  ;;  %vm682_vm4 = vcmp.eq.f32.partialorder %v681_v16, 8.507059e+37 }
 0x53f   :  { %v2112_v9 = vpop.eup %2111 }
 0x540   :  { %v673_v10 = vmul.f32 %v2112_v9, %v662_v6  ;;  %vm678_vm13 = vweird.f32 %v2112_v9  ;;  %v2114_v56 = vpop.eup %2113  ;;  %v147_v6 = vld [vmem:[#allocation5 + $0x8] sm:$0xff] }
 0x541   :  { %vm679_vm2 = vmor %vm677_vm15, %vm678_vm13  ;;  %vm902_vm9 = vweird.f32 %v2114_v56 }
 0x542   :  { %v674_v13 = vsub.f32 1.0, %v673_v10 }
 0x544   :  { %v675_v15 = vmul.f32 %v2112_v9, %v674_v13 }
 0x546   :  { %v676_v19 = vadd.f32 %v2112_v9, %v675_v15 }
 0x548   :  { %v680_v23 = vsel %vm679_vm2, %v2112_v9, %v676_v19 }
 0x549   :  { %v685_v18 = vsel %vm682_vm4, %v684_v31, %v680_v23 }
 0x54a   :  { %v732_v25 = vmul.f32 %v2650_v32, %v685_v18  ;;  %v524_v32 = vsel %vm523_vm8, %v522_v48, %v2660_v47  ;;  %v945_v48 = vperm.slane %v2702_v38, 2 }
 0x54c   :  { %1989 = vmatmul.msk.f32.vlgmr.msra.gmra.mxu3 %vm201_vm1, %v732_v25 }
 0x550   :  { %v789_v29 = vpop.permute.xlu1 %788 }
 0x551   :  { %809 = vmatpush.msra.mxu1 %v789_v29  ;;  %v942_v29 = vperm.slane %v2702_v38, 1 }
 0x552   :  { %1991 = vmatmul.msk.f32.vlgmr.msra.gmra.mxu1 %vm201_vm1, %v734_v30 }
 0x554   :  { %1993 = vmatmul.msk.f32.vlgmr.msrb.gmra.mxu3 %vm162_vm0, %v524_v32 }
 0x571   :  { %v785_v53 = vpop.f32.mrf.mxu0 }
 0x572   :  { %841 = vrot.lane.b32.xlu2 %v785_v53, %s2366_s22 }
 0x592   :  { %v837_v35 = vpop.f32.mrf.mxu2 }
 0x593   :  { %849 = vrot.lane.b32.xlu2 %v837_v35, %s2380_s23 }
 0x59b   :  { %2056 = vrot.lane.b32.xlu2 %v2055_v34, %s2381_s15 }
 0x5a3   :  { %2061 = vrot.lane.b32.xlu2 %v2060_v42, %s2381_s15 }
 0x5cc   :  { %v842_v52 = vpop.permute.xlu2 %841 }
 0x5cf   :  { %v759_v36 = vpop.f32.mrf.mxu3  ;;  %v811_v37 = vpop.f32.mrf.mxu1 }
 0x5d0   :  { %845 = vrot.lane.b32.xlu1 %v811_v37, %s2370_s16  ;;  %v852_v61 = vsel %vm201_vm1, %v759_v36, %v842_v52 }
 0x5d7   :  { %v883_v43 = vpop.f32.mrf.mxu3 }
 0x5d8   :  { %v884_v44 = vadd.f32 %v883_v43, %v859_v41 }
 0x5da   :  { %v889_v45 = vadd.f32 %v884_v44, %v2507_v4  ;;  %v898_v4 = vmul.f32 32.0, %v2114_v56 }
 0x5dc   :  { %v891_v46 = vsel %vm162_vm0, %v889_v45, 0.0  ;;  %v899_v63 = vsub.f32 1.0, %v898_v4 }
 0x5dd   :  { %892 = vadd.xlane.f32.xlu0 %v891_v46 }
 0x5de   :  { %v900_v3 = vmul.f32 %v2114_v56, %v899_v63 }
 0x5e0   :  { %v901_v5 = vadd.f32 %v2114_v56, %v900_v3 }
 0x5e2   :  { %v2726_v7 = vsel %vm902_vm9, %v2114_v56, %v901_v5  ;;  %v2077_v5 = vld [vmem:[#allocation7] ss:$0 sm:$0xff] }
 0x5ed   :  { %v850_v47 = vpop.permute.xlu2 %849 }
 0x5f1   :  { %1001 = vrot.lane.b32.xlu0 %v2717_v50, %s2381_s15 }
 0x5f5   :  { %v2057_v51 = vpop.permute.xlu2 %2056 }
 0x5f6   :  { %v2059_v54 = vunpack.i.h.bf16 %v2057_v51  ;;  %v2058_v55 = vunpack.i.l.bf16 %v2057_v51 }
 0x5f8   :  { %1022 = vmatpush.msrb.mxu1 %v2058_v55 }
 0x5fa   :  { %1023 = vmatpush.msrb.mxu1 %v2059_v54 }
 0x5fd   :  { %v2062_v57 = vpop.permute.xlu2 %2061 }
 0x5fe   :  { %v2064_v58 = vunpack.i.h.bf16 %v2062_v57  ;;  %v2063_v59 = vunpack.i.l.bf16 %v2062_v57 }
 0x600   :  { %1024 = vmatpush.msrb.mxu1 %v2063_v59 }
 0x602   :  { %1025 = vmatpush.msrb.mxu1 %v2064_v58 }
 0x603   :  { %1997 = vmatmul.msk.f32.vlgmr.msrb.gmra.mxu1 %vm162_vm0, %v146_v1 }
 0x60b   :  { %1998 = vmatmul.msk.f32.gmra.mxu1 %vm162_vm0, %v147_v6 }
 0x642   :  { %v846_v62 = vpop.permute.xlu1 %845 }
 0x643   :  { %v853_v0 = vsel %vm521_vm7, %v852_v61, %v846_v62 }
 0x644   :  { %v854_v2 = vsel %vm523_vm8, %v853_v0, %v850_v47 }
 0x645   :  { %1994 = vmatmul.msk.f32.gmra.mxu3 %vm162_vm0, %v854_v2 }
 0x650   :  { %v893_v8 = vpop.xlane.xlu0 %892 }
 0x651   :  { %v904_v9 = vmul.f32 %v2726_v7, %v893_v8 }
 0x653   :  { %v906_v10 = vsub.f32 %v889_v45, %v904_v9 }
 0x655   :  { %v908_v11 = vmul.f32 %v906_v10, %v906_v10 }
 0x657   :  { %v910_v13 = vsel %vm162_vm0, %v908_v11, 0.0 }
 0x658   :  { %911 = vadd.xlane.f32.xlu1 %v910_v13 }
 0x663   :  { %v1002_v17 = vpop.permute.xlu0 %1001 }
 0x680   :  { %v1027_v15 = vpop.f32.mrf.mxu1 }
 0x681   :  { %v2731_v19 = vadd.f32 %v1027_v15, %v1002_v17 }
 0x683   :  { %1043 = vrot.lane.b32.xlu0 %v2731_v19, %s2381_s15  ;;  %1041 = vrot.lane.b32.xlu1 %v2731_v19, %s2379_s4 }
 0x684   :  { %1999 = vmatpush.xpose.msk.msrb.mxu2 %vm201_vm1, %v2731_v19 }
 0x688   :  { %v1030_v43 = vpop.f32.mrf.mxu1 }
 0x689   :  { %v2760_v44 = vadd.f32 %v1030_v43, %v1002_v17 }
 0x6c8   :  { %v886_v14 = vpop.f32.mrf.mxu3 }
 0x6c9   :  { %v887_v16 = vadd.f32 %v886_v14, %v859_v41 }
 0x6cb   :  { %v912_v21 = vpop.xlane.xlu1 %911  ;;  %v890_v31 = vadd.f32 %v887_v16, %v2536_v12 }
 0x6cc   :  { %v916_v22 = vmul.f32 %v912_v21, %v2726_v7 }
 0x6cd   :  { %v894_v23 = vsel %vm162_vm0, %v890_v31, 0.0 }
 0x6ce   :  { %v918_v18 = vadd.f32 1e-05, %v916_v22  ;;  %895 = vadd.xlane.f32.xlu2 %v894_v23 }
 0x6d0   :  { %2115 = vrsqrt.f32 %v918_v18  ;;  %vm926_vm11 = vweird.f32 %v918_v18 }
 0x6d6   :  { %v2116_v24 = vpop.eup %2115 }
 0x6d7   :  { %v921_v25 = vmul.f32 %v2116_v24, %v918_v18  ;;  %vm927_vm10 = vweird.f32 %v2116_v24 }
 0x6d8   :  { %vm928_vm12 = vmor %vm926_vm11, %vm927_vm10 }
 0x6d9   :  { %v922_v26 = vmul.f32 %v2116_v24, %v921_v25 }
 0x6db   :  { %v923_v12 = vmul.f32 0.5, %v922_v26 }
 0x6dd   :  { %v924_v27 = vsub.f32 1.5, %v923_v12 }
 0x6df   :  { %v925_v28 = vmul.f32 %v2116_v24, %v924_v27 }
 0x6e1   :  { %v929_v30 = vsel %vm928_vm12, %v2116_v24, %v925_v28 }
 0x6e2   :  { %v940_v33 = vmul.f32 %v929_v30, %v906_v10 }
 0x6e4   :  { %v943_v32 = vmul.f32 %v942_v29, %v940_v33 }
 0x6e6   :  { %v2744_v53 = vadd.f32 %v945_v48, %v943_v32 }
 0x6e8   :  { %1995 = vmatmul.msk.f32.vlgmr.msra.gmra.mxu0 %vm162_vm0, %v2744_v53 }
 0x6f5   :  { %v1044_v37 = vpop.permute.xlu0 %1043  ;;  %v1042_v39 = vpop.permute.xlu1 %1041 }
 0x6f6   :  { %2001 = vmatpush.xpose.msk.msra.mxu2 %vm201_vm1, %v1042_v39  ;;  %2003 = vmatpush.xpose.msk.msra.mxu3 %vm201_vm1, %v1044_v37  ;;  %v2065_v42 = vpack.i.bf16 %v1044_v37, %v1042_v39 }
 0x741   :  { %v896_v35 = vpop.xlane.xlu2 %895 }
 0x742   :  { %v905_v60 = vmul.f32 %v2726_v7, %v896_v35 }
 0x744   :  { %v907_v20 = vsub.f32 %v890_v31, %v905_v60 }
 0x746   :  { %v909_v34 = vmul.f32 %v907_v20, %v907_v20 }
 0x748   :  { %v913_v36 = vsel %vm162_vm0, %v909_v34, 0.0 }
 0x749   :  { %914 = vadd.xlane.f32.xlu1 %v913_v36 }
 0x765   :  { %v979_v40 = vpop.f32.mrf.mxu0 }
 0x766   :  { %v980_v41 = vadd.f32 %v2717_v50, %v979_v40 }
 0x768   :  { %1036 = vrot.lane.b32.xlu2 %v980_v41, %s2379_s4  ;;  %1034 = vrot.lane.b32.xlu0 %v980_v41, %s2374_s19 }
 0x769   :  { %1038 = vrot.lane.b32.xlu1 %v980_v41, %s2376_s2  ;;  %2000 = vmatmul.msk.f32.vlgmr.msrb.gmra.mxu2 %vm201_vm1, %v980_v41 }
 0x770   :  { %1045 = vrot.lane.b32.xlu0 %v2731_v19, %s2375_s3 }
 0x771   :  { %2066 = vrot.lane.b32.xlu1 %v2065_v42, %s2374_s19 }
 0x778   :  { %1378 = vrot.lane.b32.xlu0 %v2760_v44, %s2379_s4 }
 0x7bc   :  { %v915_v45 = vpop.xlane.xlu1 %914 }
 0x7bd   :  { %v917_v46 = vmul.f32 %v915_v45, %v2726_v7 }
 0x7bf   :  { %v919_v52 = vadd.f32 1e-05, %v917_v46 }
 0x7c1   :  { %2117 = vrsqrt.f32 %v919_v52  ;;  %vm936_vm14 = vweird.f32 %v919_v52 }
 0x7c2   :  { %v1037_v47 = vpop.permute.xlu2 %1036 }
 0x7c3   :  { %2004 = vmatmul.msk.f32.vlgmr.msra.gmra.mxu3 %vm201_vm1, %v1037_v47 }
 0x7c7   :  { %v2118_v49 = vpop.eup %2117 }
 0x7c8   :  { %v931_v51 = vmul.f32 %v2118_v49, %v919_v52  ;;  %vm937_vm13 = vweird.f32 %v2118_v49 }
 0x7c9   :  { %vm938_vm15 = vmor %vm936_vm14, %vm937_vm13 }
 0x7ca   :  { %v932_v54 = vmul.f32 %v2118_v49, %v931_v51 }
 0x7cc   :  { %v933_v55 = vmul.f32 0.5, %v932_v54 }
 0x7ce   :  { %v934_v56 = vsub.f32 1.5, %v933_v55 }
 0x7d0   :  { %v935_v4 = vmul.f32 %v2118_v49, %v934_v56 }
 0x7d2   :  { %v939_v57 = vsel %vm938_vm15, %v2118_v49, %v935_v4 }
 0x7d3   :  { %v941_v58 = vmul.f32 %v939_v57, %v907_v20 }
 0x7d5   :  { %v944_v59 = vmul.f32 %v942_v29, %v941_v58 }
 0x7d7   :  { %v2766_v61 = vadd.f32 %v945_v48, %v944_v59 }
 0x7d9   :  { %1996 = vmatmul.msk.f32.gmra.mxu0 %vm162_vm0, %v2766_v61 }
 0x7da   :  { %v1035_v62 = vpop.permute.xlu0 %1034 }
 0x7db   :  { %v1039_v63 = vpop.permute.xlu1 %1038  ;;  %2002 = vmatmul.msk.f32.vlgmr.msra.gmra.mxu2 %vm201_vm1, %v1035_v62 }
 0x7e2   :  { %v1046_v0 = vpop.permute.xlu0 %1045 }
 0x7e3   :  { %2005 = vmatpush.xpose.msk.msrb.mxu0 %vm201_vm1, %v1046_v0  ;;  %v2067_v1 = vpop.permute.xlu1 %2066 }
 0x7e4   :  { %v2069_v2 = vunpack.i.h.bf16 %v2067_v1  ;;  %v2068_v3 = vunpack.i.l.bf16 %v2067_v1 }
 0x7e6   :  { %2006 = vmatmul.msk.f32.vlgmr.msrb.gmra.mxu0 %vm201_vm1, %v1039_v63  ;;  %1294 = vmatpush.msrb.mxu2 %v2068_v3 }
 0x7e7   :  { %1320 = vmatpush.msrb.mxu3 %v2069_v2 }
 0x7ea   :  { %v2773_v6 = vpop.permute.xlu0 %1378 }
 0x7eb   :  { %2013 = vmatpush.xpose.msk.msra.mxu2 %vm201_vm1, %v2773_v6 }
 0x7ec   :  { %v1072_v8 = vpop.f32.mrf.mxu2 }
 0x7ed   :  { %v1073_v9 = vadd.f32 %v2077_v5, %v1072_v8 }
 0x7ef   :  { %v1147_v10 = vsel %vm201_vm1, %v1073_v9, -inf }
 0x7f0   :  { %1148 = vmax.xlane.f32.xlu0 %v1147_v10 }
 0x846   :  { %v1120_v11 = vpop.f32.mrf.mxu3 }
 0x847   :  { %v1121_v13 = vadd.f32 %v2077_v5, %v1120_v11 }
 0x849   :  { %v1153_v14 = vsel %vm201_vm1, %v1121_v13, -inf }
 0x84a   :  { %1154 = vmax.xlane.f32.xlu1 %v1153_v14 }
 0x856   :  { %v982_v15 = vpop.f32.mrf.mxu0 }
 0x857   :  { %v2780_v21 = vadd.f32 %v2717_v50, %v982_v15 }
 0x85e   :  { %v1096_v16 = vpop.f32.mrf.mxu2 }
 0x85f   :  { %v1097_v17 = vadd.f32 %v2077_v5, %v1096_v16 }
 0x861   :  { %v1150_v31 = vsel %vm201_vm1, %v1097_v17, -inf }
 0x862   :  { %1151 = vmax.xlane.f32.xlu0 %v1150_v31 }
 0x863   :  { %1373 = vrot.lane.b32.xlu1 %v2780_v21, %s2379_s4  ;;  %v1144_v22 = vpop.f32.mrf.mxu0  ;;  %v1149_v27 = vpop.xlane.xlu0 %1148 }
 0x864   :  { %v1145_v23 = vadd.f32 %v2077_v5, %v1144_v22  ;;  %v1159_v37 = vsub.f32 %v1073_v9, %v1149_v27 }
 0x866   :  { %v1156_v18 = vsel %vm201_vm1, %v1145_v23, -inf  ;;  %v1163_v39 = vmul.f32 1.442695, %v1159_v37 }
 0x867   :  { %1157 = vmax.xlane.f32.xlu2 %v1156_v18 }
 0x876   :  { %1371 = vrot.lane.b32.xlu0 %v2780_v21, %s2374_s19 }
 0x87f   :  { %1380 = vrot.lane.b32.xlu2 %v2760_v44, %s2381_s15 }
 0x8bd   :  { %v1155_v24 = vpop.xlane.xlu1 %1154 }
 0x8be   :  { %v1161_v50 = vsub.f32 %v1121_v13, %v1155_v24 }
 0x8c0   :  { %v1167_v25 = vmul.f32 1.442695, %v1161_v50 }
 0x8c2   :  { %2119 = vpow2.f32 %v1167_v25 }
 0x8c8   :  { %v2120_v26 = vpop.eup %2119 }
 0x8c9   :  { %v1177_v12 = vsel %vm201_vm1, %v2120_v26, 0.0 }
 0x8ca   :  { %1178 = vadd.xlane.f32.xlu0 %v1177_v12 }
 0x8d5   :  { %v1152_v28 = vpop.xlane.xlu0 %1151  ;;  %v1374_v55 = vpop.permute.xlu1 %1373 }
 0x8d6   :  { %v1160_v29 = vsub.f32 %v1097_v17, %v1152_v28 }
 0x8d8   :  { %v1165_v30 = vmul.f32 1.442695, %v1160_v29 }
 0x8da   :  { %2121 = vpow2.f32 %v1165_v30  ;;  %v1158_v33 = vpop.xlane.xlu2 %1157 }
 0x8db   :  { %v1162_v48 = vsub.f32 %v1145_v23, %v1158_v33 }
 0x8dd   :  { %v1169_v32 = vmul.f32 1.442695, %v1162_v48 }
 0x8de   :  { %1382 = vrot.lane.b32.xlu0 %v2760_v44, %s2375_s3 }
 0x8df   :  { %2123 = vpow2.f32 %v1169_v32 }
 0x8e0   :  { %v2793_v35 = vpop.eup %2121  ;;  %2125 = vpow2.f32 %v1163_v39 }
 0x8e1   :  { %v1174_v60 = vsel %vm201_vm1, %v2793_v35, 0.0 }
 0x8e2   :  { %v2797_v20 = vpop.permute.xlu2 %1380  ;;  %1175 = vadd.xlane.f32.xlu1 %v1174_v60 }
 0x8e3   :  { %2015 = vmatpush.xpose.msk.msra.mxu3 %vm201_vm1, %v2797_v20 }
 0x8e5   :  { %v2801_v34 = vpop.eup %2123 }
 0x8e6   :  { %1247 = vrot.lane.b32.xlu0 %v2731_v19, %s2374_s19  ;;  %v1180_v36 = vsel %vm201_vm1, %v2801_v34, 0.0  ;;  %v2810_v40 = vpop.eup %2125 }
 0x8e7   :  { %1181 = vadd.xlane.f32.xlu2 %v1180_v36  ;;  %v1171_v41 = vsel %vm201_vm1, %v2810_v40, 0.0 }
 0x8e8   :  { %v2814_v42 = vpop.permute.xlu0 %1371 }
 0x8fb   :  { %1375 = vrot.lane.b32.xlu1 %v2780_v21, %s2376_s2 }
 0x8ff   :  { %1325 = vrot.lane.b32.xlu2 %v1046_v0, %s2374_s19 }
 0x928   :  { %1172 = vadd.xlane.f32.xlu2 %v1171_v41 }
 0x93d   :  { %v1179_v19 = vpop.xlane.xlu0 %1178 }
 0x93e   :  { %2127 = vrcp.f32 %v1179_v19  ;;  %v1224_v52 = vand.u32 2147483648, %v1179_v19  ;;  %v1222_v49 = vand.u32 2147483647, %v1179_v19  ;;  %vm1218_vm3 = vweird.f32 %v1179_v19 }
 0x940   :  { %v1225_v54 = vor.u32 1.1754944e-38, %v1224_v52  ;;  %vm1223_vm5 = vcmp.eq.f32.partialorder %v1222_v49, 8.507059e+37 }
 0x944   :  { %v2128_v43 = vpop.eup %2127 }
 0x945   :  { %v1214_v45 = vmul.f32 %v2128_v43, %v1179_v19  ;;  %vm1219_vm2 = vweird.f32 %v2128_v43 }
 0x946   :  { %vm1220_vm4 = vmor %vm1218_vm3, %vm1219_vm2 }
 0x947   :  { %v1215_v46 = vsub.f32 1.0, %v1214_v45 }
 0x949   :  { %v1216_v47 = vmul.f32 %v2128_v43, %v1215_v46 }
 0x94b   :  { %v1217_v51 = vadd.f32 %v2128_v43, %v1216_v47 }
 0x94d   :  { %v1221_v56 = vsel %vm1220_vm4, %v2128_v43, %v1217_v51 }
 0x94e   :  { %v1226_v4 = vsel %vm1223_vm5, %v1225_v54, %v1221_v56 }
 0x94f   :  { %v1245_v57 = vmul.f32 %v2120_v26, %v1226_v4 }
 0x950   :  { %v2816_v58 = vpop.permute.xlu0 %1382 }
 0x951   :  { %2009 = vmatmul.msk.f32.vlgmr.msrb.gmra.mxu3 %vm201_vm1, %v1245_v57  ;;  %1353 = vst.msk [vmem:[#allocation14 + $0x10] sm:$0xff] %vm201_vm1, %v1245_v57 }
 0x955   :  { %v1176_v59 = vpop.xlane.xlu1 %1175 }
 0x956   :  { %2129 = vrcp.f32 %v1176_v59  ;;  %v1209_v3 = vand.u32 2147483648, %v1176_v59  ;;  %v1207_v9 = vand.u32 2147483647, %v1176_v59  ;;  %vm1203_vm9 = vweird.f32 %v1176_v59 }
 0x958   :  { %v1248_v62 = vpop.permute.xlu0 %1247  ;;  %v1210_v14 = vor.u32 1.1754944e-38, %v1209_v3  ;;  %vm1208_vm11 = vcmp.eq.f32.partialorder %v1207_v9, 8.507059e+37 }
 0x959   :  { %1268 = vmatpush.msra.mxu1 %v1248_v62  ;;  %2016 = vmatmul.msk.f32.vlgmr.msra.gmra.mxu3 %vm201_vm1, %v1374_v55 }
 0x95a   :  { %v1182_v63 = vpop.xlane.xlu2 %1181 }
 0x95b   :  { %2011 = vmatpush.xpose.msk.msrb.mxu1 %vm201_vm1, %v2760_v44  ;;  %2131 = vrcp.f32 %v1182_v63  ;;  %v1239_v17 = vand.u32 2147483648, %v1182_v63  ;;  %v1237_v23 = vand.u32 2147483647, %v1182_v63  ;;  %vm1233_vm13 = vweird.f32 %v1182_v63 }
 0x95c   :  { %v2130_v0 = vpop.eup %2129 }
 0x95d   :  { %v1199_v1 = vmul.f32 %v2130_v0, %v1176_v59  ;;  %vm1204_vm6 = vweird.f32 %v2130_v0  ;;  %v1240_v50 = vor.u32 1.1754944e-38, %v1239_v17  ;;  %vm1238_vm15 = vcmp.eq.f32.partialorder %v1237_v23, 8.507059e+37 }
 0x95e   :  { %vm1205_vm10 = vmor %vm1203_vm9, %vm1204_vm6 }
 0x95f   :  { %v1200_v2 = vsub.f32 1.0, %v1199_v1 }
 0x961   :  { %v2132_v5 = vpop.eup %2131  ;;  %v1201_v8 = vmul.f32 %v2130_v0, %v1200_v2 }
 0x962   :  { %v1229_v10 = vmul.f32 %v2132_v5, %v1182_v63  ;;  %v1326_v11 = vpop.permute.xlu2 %1325  ;;  %vm1234_vm12 = vweird.f32 %v2132_v5 }
 0x963   :  { %v1202_v13 = vadd.f32 %v2130_v0, %v1201_v8  ;;  %1346 = vmatpush.msra.mxu0 %v1326_v11  ;;  %vm1235_vm14 = vmor %vm1233_vm13, %vm1234_vm12 }
 0x964   :  { %v1230_v15 = vsub.f32 1.0, %v1229_v10 }
 0x965   :  { %2017 = vmatpush.xpose.msk.msrb.mxu0 %vm201_vm1, %v2816_v58  ;;  %v1206_v16 = vsel %vm1205_vm10, %v2130_v0, %v1202_v13 }
 0x966   :  { %v1211_v31 = vsel %vm1208_vm11, %v1210_v14, %v1206_v16  ;;  %v1231_v22 = vmul.f32 %v2132_v5, %v1230_v15  ;;  %v2070_v16 = vpack.i.bf16 %v2797_v20, %v2773_v6 }
 0x967   :  { %v1244_v18 = vmul.f32 %v2793_v35, %v1211_v31 }
 0x968   :  { %v1232_v24 = vadd.f32 %v2132_v5, %v1231_v22 }
 0x969   :  { %2008 = vmatmul.msk.f32.vlgmr.msrb.gmra.mxu2 %vm201_vm1, %v1244_v18  ;;  %1352 = vst.msk [vmem:[#allocation14 + $0x8] sm:$0xff] %vm201_vm1, %v1244_v18 }
 0x96a   :  { %v1236_v25 = vsel %vm1235_vm14, %v2132_v5, %v1232_v24 }
 0x96b   :  { %v1241_v26 = vsel %vm1238_vm15, %v1240_v50, %v1236_v25 }
 0x96c   :  { %v1246_v12 = vmul.f32 %v2801_v34, %v1241_v26 }
 0x96d   :  { %v1376_v27 = vpop.permute.xlu1 %1375 }
 0x96e   :  { %2010 = vmatmul.msk.f32.vlgmr.msra.gmra.mxu0 %vm201_vm1, %v1246_v12  ;;  %1354 = vst.msk [vmem:[#allocation14 + $0x18] sm:$0xff] %vm201_vm1, %v1246_v12 }
 0x971   :  { %2014 = vmatmul.msk.f32.vlgmr.msra.gmra.mxu2 %vm201_vm1, %v2814_v42  ;;  %v2078_v42 = vld [vmem:[#allocation7 + $0x1] ss:$0 sm:$0xff] }
 0x976   :  { %2018 = vmatmul.msk.f32.vlgmr.msrb.gmra.mxu0 %vm201_vm1, %v1376_v27 }
 0x99b   :  { %v1173_v28 = vpop.xlane.xlu2 %1172 }
 0x99c   :  { %2133 = vrcp.f32 %v1173_v28  ;;  %v1194_v48 = vand.u32 2147483648, %v1173_v28  ;;  %v1192_v35 = vand.u32 2147483647, %v1173_v28  ;;  %vm1188_vm3 = vweird.f32 %v1173_v28 }
 0x99e   :  { %v1195_v34 = vor.u32 1.1754944e-38, %v1194_v48  ;;  %vm1193_vm5 = vcmp.eq.f32.partialorder %v1192_v35, 8.507059e+37 }
 0x9a2   :  { %v2134_v29 = vpop.eup %2133 }
 0x9a3   :  { %v1184_v30 = vmul.f32 %v2134_v29, %v1173_v28  ;;  %vm1189_vm2 = vweird.f32 %v2134_v29 }
 0x9a4   :  { %vm1190_vm4 = vmor %vm1188_vm3, %vm1189_vm2 }
 0x9a5   :  { %v1185_v33 = vsub.f32 1.0, %v1184_v30 }
 0x9a7   :  { %v1186_v32 = vmul.f32 %v2134_v29, %v1185_v33 }
 0x9a9   :  { %v1187_v60 = vadd.f32 %v2134_v29, %v1186_v32 }
 0x9ab   :  { %v1191_v36 = vsel %vm1190_vm4, %v2134_v29, %v1187_v60 }
 0x9ac   :  { %v1196_v37 = vsel %vm1193_vm5, %v1195_v34, %v1191_v36 }
 0x9ad   :  { %v1243_v39 = vmul.f32 %v2810_v40, %v1196_v37 }
 0x9af   :  { %2007 = vmatmul.msk.f32.vlgmr.msra.gmra.mxu1 %vm201_vm1, %v1243_v39  ;;  %1351 = vst.msk [vmem:[#allocation14] sm:$0xff] %vm201_vm1, %v1243_v39 }
 0x9b7   :  { %2012 = vmatmul.msk.f32.vlgmr.msrb.gmra.mxu1 %vm201_vm1, %v2780_v21 }
 0x9d4   :  { %v1322_v41 = vpop.f32.mrf.mxu3 }
 0x9dc   :  { %v1458_v19 = vpop.f32.mrf.mxu3 }
 0x9dd   :  { %v1459_v43 = vadd.f32 %v2078_v42, %v1458_v19 }
 0x9df   :  { %v1491_v45 = vsel %vm201_vm1, %v1459_v43, -inf }
 0x9e0   :  { %1492 = vmax.xlane.f32.xlu0 %v1491_v45 }
 0x9eb   :  { %v1348_v46 = vpop.f32.mrf.mxu0 }
 0x9ec   :  { %v1296_v52 = vpop.f32.mrf.mxu2 }
 0x9f3   :  { %v1482_v47 = vpop.f32.mrf.mxu0 }
 0x9f4   :  { %v1483_v49 = vadd.f32 %v2078_v42, %v1482_v47  ;;  %v1434_v51 = vpop.f32.mrf.mxu2 }
 0x9f5   :  { %v1435_v40 = vadd.f32 %v2078_v42, %v1434_v51 }
 0x9f6   :  { %v1494_v54 = vsel %vm201_vm1, %v1483_v49, -inf }
 0x9f7   :  { %1495 = vmax.xlane.f32.xlu2 %v1494_v54  ;;  %v1488_v55 = vsel %vm201_vm1, %v1435_v40, -inf }
 0x9f8   :  { %1489 = vmax.xlane.f32.xlu1 %v1488_v55 }
 0xa2c   :  { %v2842_v21 = vpop.f32.mrf.mxu1 }
 0xa34   :  { %v1410_v56 = vpop.f32.mrf.mxu1 }
 0xa35   :  { %v1411_v4 = vadd.f32 %v2078_v42, %v1410_v56 }
 0xa37   :  { %v1485_v57 = vsel %vm201_vm1, %v1411_v4, -inf }
 0xa38   :  { %1486 = vmax.xlane.f32.xlu1 %v1485_v57 }
 0xa53   :  { %v1493_v59 = vpop.xlane.xlu0 %1492 }
 0xa54   :  { %v1499_v62 = vsub.f32 %v1459_v43, %v1493_v59 }
 0xa56   :  { %v1505_v63 = vmul.f32 1.442695, %v1499_v62 }
 0xa58   :  { %2135 = vpow2.f32 %v1505_v63 }
 0xa5e   :  { %v2136_v0 = vpop.eup %2135 }
 0xa5f   :  { %v1515_v1 = vsel %vm201_vm1, %v2136_v0, 0.0 }
 0xa60   :  { %1516 = vadd.xlane.f32.xlu0 %v1515_v1 }
 0xa6a   :  { %v1496_v2 = vpop.xlane.xlu2 %1495 }
 0xa6b   :  { %v1500_v3 = vsub.f32 %v1483_v49, %v1496_v2  ;;  %v1490_v5 = vpop.xlane.xlu1 %1489 }
 0xa6c   :  { %v1498_v8 = vsub.f32 %v1435_v40, %v1490_v5 }
 0xa6d   :  { %v1507_v9 = vmul.f32 1.442695, %v1500_v3 }
 0xa6e   :  { %v1503_v10 = vmul.f32 1.442695, %v1498_v8 }
 0xa6f   :  { %2137 = vpow2.f32 %v1507_v9 }
 0xa70   :  { %2139 = vpow2.f32 %v1503_v10 }
 0xa74   :  { %1663 = vrot.lane.b32.xlu0 %v2816_v58, %s2374_s19 }
 0xa75   :  { %v2848_v11 = vpop.eup %2137 }
 0xa76   :  { %v2850_v13 = vpop.eup %2139  ;;  %v1518_v14 = vsel %vm201_vm1, %v2848_v11, 0.0 }
 0xa77   :  { %1519 = vadd.xlane.f32.xlu1 %v1518_v14  ;;  %v1512_v15 = vsel %vm201_vm1, %v2850_v13, 0.0 }
 0xa78   :  { %1513 = vadd.xlane.f32.xlu2 %v1512_v15 }
 0xa7c   :  { %1356 = vrot.lane.b32.xlu0 %v1296_v52, %s2366_s22 }
 0xa84   :  { %1364 = vrot.lane.b32.xlu0 %v1348_v46, %s2380_s23 }
 0xa90   :  { %2071 = vrot.lane.b32.xlu2 %v2070_v16, %s2374_s19 }
 0xa98   :  { %1360 = vrot.lane.b32.xlu2 %v1322_v41, %s2370_s16 }
 0xaab   :  { %v1487_v58 = vpop.xlane.xlu1 %1486 }
 0xaac   :  { %v1497_v17 = vsub.f32 %v1411_v4, %v1487_v58  ;;  %v1712_v58 = vld [vmem:[#allocation8 + $0x18] sm:$0xff] }
 0xaae   :  { %v1501_v31 = vmul.f32 1.442695, %v1497_v17  ;;  %v1711_v17 = vld [vmem:[#allocation8 + $0x10] sm:$0xff] }
 0xab0   :  { %2141 = vpow2.f32 %v1501_v31 }
 0xab6   :  { %v2862_v22 = vpop.eup %2141 }
 0xab7   :  { %v1509_v23 = vsel %vm201_vm1, %v2862_v22, 0.0 }
 0xab8   :  { %1510 = vadd.xlane.f32.xlu1 %v1509_v23  ;;  %v1710_v23 = vld [vmem:[#allocation8 + $0x8] sm:$0xff] }
 0xad1   :  { %1585 = vrot.lane.b32.xlu1 %v2760_v44, %s2374_s19 }
 0xad3   :  { %v1517_v18 = vpop.xlane.xlu0 %1516 }
 0xad4   :  { %2143 = vrcp.f32 %v1517_v18  ;;  %v1562_v50 = vand.u32 2147483648, %v1517_v18  ;;  %v1560_v26 = vand.u32 2147483647, %v1517_v18  ;;  %vm1556_vm9 = vweird.f32 %v1517_v18 }
 0xad6   :  { %v1563_v27 = vor.u32 1.1754944e-38, %v1562_v50  ;;  %vm1561_vm11 = vcmp.eq.f32.partialorder %v1560_v26, 8.507059e+37 }
 0xada   :  { %v2144_v6 = vpop.eup %2143 }
 0xadb   :  { %v1552_v20 = vmul.f32 %v2144_v6, %v1517_v18  ;;  %vm1557_vm6 = vweird.f32 %v2144_v6 }
 0xadc   :  { %vm1558_vm10 = vmor %vm1556_vm9, %vm1557_vm6 }
 0xadd   :  { %v1553_v24 = vsub.f32 1.0, %v1552_v20  ;;  %v1709_v20 = vld [vmem:[#allocation8] sm:$0xff] }
 0xadf   :  { %v1554_v25 = vmul.f32 %v2144_v6, %v1553_v24 }
 0xae1   :  { %v1555_v12 = vadd.f32 %v2144_v6, %v1554_v25 }
 0xae3   :  { %v1559_v28 = vsel %vm1558_vm10, %v2144_v6, %v1555_v12  ;;  %v1713_v12 = vperm.slane %v2702_v38, 3 }
 0xae4   :  { %v1564_v29 = vsel %vm1561_vm11, %v1563_v27, %v1559_v28 }
 0xae5   :  { %v1583_v30 = vmul.f32 %v2136_v0, %v1564_v29 }
 0xae6   :  { %v1664_v33 = vpop.permute.xlu0 %1663 }
 0xae7   :  { %1684 = vmatpush.msra.mxu0 %v1664_v33  ;;  %1692 = vst.msk [vmem:[#allocation14 + $0x30] sm:$0xff] %vm201_vm1, %v1583_v30 }
 0xaea   :  { %v1520_v44 = vpop.xlane.xlu1 %1519 }
 0xaeb   :  { %2145 = vrcp.f32 %v1520_v44  ;;  %v1514_v48 = vpop.xlane.xlu2 %1513  ;;  %v1577_v42 = vand.u32 2147483648, %v1520_v44  ;;  %v1575_v45 = vand.u32 2147483647, %v1520_v44  ;;  %vm1571_vm14 = vweird.f32 %v1520_v44 }
 0xaec   :  { %2147 = vrcp.f32 %v1514_v48  ;;  %v1547_v46 = vand.u32 2147483648, %v1514_v48  ;;  %v1545_v47 = vand.u32 2147483647, %v1514_v48  ;;  %vm1541_vm2 = vweird.f32 %v1514_v48 }
 0xaed   :  { %v1578_v51 = vor.u32 1.1754944e-38, %v1577_v42  ;;  %vm1576_vm3 = vcmp.eq.f32.partialorder %v1575_v45, 8.507059e+37  ;;  %v1798_v45 = vld [vmem:[#allocation10 + $0x18] sm:$0xff] }
 0xaee   :  { %v1548_v55 = vor.u32 1.1754944e-38, %v1547_v46  ;;  %vm1546_vm5 = vcmp.eq.f32.partialorder %v1545_v47, 8.507059e+37  ;;  %v1357_v15 = vpop.permute.xlu0 %1356  ;;  %v1797_v46 = vld [vmem:[#allocation10 + $0x10] sm:$0xff]  ;;  %v1795_v47 = vld [vmem:[#allocation10] sm:$0xff] }
 0xaef   :  { %v1367_v18 = vsel %vm201_vm1, %v2842_v21, %v1357_v15 }
 0xaf1   :  { %v2146_v32 = vpop.eup %2145 }
 0xaf2   :  { %v2148_v35 = vpop.eup %2147  ;;  %v1567_v60 = vmul.f32 %v2146_v32, %v1520_v44  ;;  %vm1572_vm12 = vweird.f32 %v2146_v32 }
 0xaf3   :  { %v1537_v34 = vmul.f32 %v2148_v35, %v1514_v48  ;;  %v2072_v36 = vpop.permute.xlu2 %2071  ;;  %vm1542_vm13 = vweird.f32 %v2148_v35  ;;  %vm1573_vm15 = vmor %vm1571_vm14, %vm1572_vm12  ;;  %vm1843_vm12 = vcmask 523264  }
 0xaf4   :  { %v1568_v37 = vsub.f32 1.0, %v1567_v60  ;;  %v2074_v39 = vunpack.i.h.bf16 %v2072_v36  ;;  %v2073_v41 = vunpack.i.l.bf16 %v2072_v36  ;;  %vm1543_vm4 = vmor %vm1541_vm2, %vm1542_vm13 }
 0xaf5   :  { %v1538_v19 = vsub.f32 1.0, %v1537_v34 }
 0xaf6   :  { %v1569_v43 = vmul.f32 %v2146_v32, %v1568_v37  ;;  %1632 = vmatpush.msrb.mxu2 %v2073_v41  ;;  %1658 = vmatpush.msrb.mxu3 %v2074_v39 }
 0xaf7   :  { %v1539_v52 = vmul.f32 %v2148_v35, %v1538_v19  ;;  %2021 = vmatmul.msk.f32.vlgmr.msrb.gmra.mxu3 %vm201_vm1, %v1583_v30 }
 0xaf8   :  { %v1570_v49 = vadd.f32 %v2146_v32, %v1569_v43  ;;  %1821 = vmatpush.msra.mxu2 %v1798_v45 }
 0xaf9   :  { %v1540_v40 = vadd.f32 %v2148_v35, %v1539_v52  ;;  %v1796_v52 = vld [vmem:[#allocation10 + $0x8] sm:$0xff] }
 0xafa   :  { %v1574_v54 = vsel %vm1573_vm15, %v2146_v32, %v1570_v49  ;;  %1822 = vmatpush.msra.mxu2 %v1797_v46 }
 0xafb   :  { %v1579_v56 = vsel %vm1576_vm3, %v1578_v51, %v1574_v54  ;;  %v1544_v4 = vsel %vm1543_vm4, %v2148_v35, %v1540_v40  ;;  %v1361_v31 = vpop.permute.xlu2 %1360 }
 0xafc   :  { %v1549_v57 = vsel %vm1546_vm5, %v1548_v55, %v1544_v4  ;;  %v1584_v59 = vmul.f32 %v2848_v11, %v1579_v56  ;;  %v1368_v6 = vsel %vm521_vm7, %v1367_v18, %v1361_v31  ;;  %1823 = vmatpush.msra.mxu2 %v1796_v52  ;;  %v1841_v4 = vld [vmem:[%s2972_s11 + $0x38] sm:$0xff]  ;;  %v2079_v31 = vld [vmem:[%s2971_s10] ss:$0 sm:$0xff]  ;;  %s2383_s10 = smov [#allocation14]  }
 0xafd   :  { %v1582_v62 = vmul.f32 %v2850_v13, %v1549_v57  ;;  %v1840_v57 = vld [vmem:[%s2972_s11 + $0x30] sm:$0xff]  ;;  %1858 = vmatpush.msra.mxu3 %v1841_v4 }
 0xafe   :  { %2022 = vmatmul.msk.f32.vlgmr.msra.gmra.mxu0 %vm201_vm1, %v1584_v59  ;;  %1693 = vst.msk [vmem:[#allocation14 + $0x38] sm:$0xff] %vm201_vm1, %v1584_v59  ;;  %1824 = vmatpush.msra.mxu2 %v1795_v47 }
 0xaff   :  { %2020 = vmatmul.msk.f32.vlgmr.msrb.gmra.mxu2 %vm201_vm1, %v1582_v62  ;;  %1691 = vst.msk [vmem:[#allocation14 + $0x28] sm:$0xff] %vm201_vm1, %v1582_v62  ;;  %v1839_v62 = vld [vmem:[%s2972_s11 + $0x28] sm:$0xff]  ;;  %1859 = vmatpush.msra.mxu3 %v1840_v57 }
 0xb01   :  { %1860 = vmatpush.msra.mxu3 %v1839_v62 }
 0xb2b   :  { %v1511_v63 = vpop.xlane.xlu1 %1510 }
 0xb2c   :  { %2149 = vrcp.f32 %v1511_v63  ;;  %v1532_v3 = vand.u32 2147483648, %v1511_v63  ;;  %v1530_v8 = vand.u32 2147483647, %v1511_v63  ;;  %vm1526_vm9 = vweird.f32 %v1511_v63 }
 0xb2e   :  { %v1533_v10 = vor.u32 1.1754944e-38, %v1532_v3  ;;  %vm1531_vm11 = vcmp.eq.f32.partialorder %v1530_v8, 8.507059e+37  ;;  %v1837_v3 = vld [vmem:[%s2972_s11 + $0x18] sm:$0xff]  ;;  %v1792_v8 = vperm.slane %v2702_v38, 5 }
 0xb32   :  { %v2150_v0 = vpop.eup %2149 }
 0xb33   :  { %v1522_v1 = vmul.f32 %v2150_v0, %v1511_v63  ;;  %vm1527_vm6 = vweird.f32 %v2150_v0 }
 0xb34   :  { %vm1528_vm10 = vmor %vm1526_vm9, %vm1527_vm6 }
 0xb35   :  { %v1523_v2 = vsub.f32 1.0, %v1522_v1  ;;  %v1789_v1 = vperm.slane %v2702_v38, 4  ;;  %v1835_v38 = vld [vmem:[%s2972_s11 + $0x8] sm:$0xff] }
 0xb37   :  { %v1524_v5 = vmul.f32 %v2150_v0, %v1523_v2 }
 0xb39   :  { %v1525_v9 = vadd.f32 %v2150_v0, %v1524_v5 }
 0xb3b   :  { %v1529_v11 = vsel %vm1528_vm10, %v2150_v0, %v1525_v9  ;;  %v1838_v0 = vld [vmem:[%s2972_s11 + $0x20] sm:$0xff] }
 0xb3c   :  { %v1534_v13 = vsel %vm1531_vm11, %v1533_v10, %v1529_v11  ;;  %1861 = vmatpush.msra.mxu3 %v1838_v0  ;;  %v2080_v0 = vld [vmem:[#allocation11 + $0x8] ss:$0 sm:$0xff] }
 0xb3d   :  { %v1581_v14 = vmul.f32 %v2862_v22, %v1534_v13  ;;  %v1365_v22 = vpop.permute.xlu0 %1364 }
 0xb3e   :  { %v1369_v24 = vsel %vm523_vm8, %v1368_v6, %v1365_v22  ;;  %1862 = vmatpush.msra.mxu3 %v1837_v3 }
 0xb3f   :  { %1690 = vst.msk [vmem:[#allocation14 + $0x20] sm:$0xff] %vm201_vm1, %v1581_v14 }
 0xb43   :  { %v1586_v16 = vpop.permute.xlu1 %1585 }
 0xb44   :  { %1606 = vmatpush.msra.mxu1 %v1586_v16 }
 0xb45   :  { %2019 = vmatmul.msk.f32.vlgmr.msra.gmra.mxu1 %vm201_vm1, %v1581_v14 }
 0xb46   :  { %1732 = vmatpush.msrb.mxu1 %v1712_v58  ;;  %v1836_v58 = vld [vmem:[%s2972_s11 + $0x10] sm:$0xff] }
 0xb47   :  { %1863 = vmatpush.msra.mxu3 %v1836_v58 }
 0xb48   :  { %1733 = vmatpush.msrb.mxu1 %v1711_v17  ;;  %v1834_v17 = vld [vmem:[%s2972_s11] sm:$0xff]  ;;  %s1944_s11 = sshll.u32 %s2383_s10, 4  ;;  %s1945_s11 = int_to_ptr.vmem [resolvable:$true] %s1944_s11 }
 0xb49   :  { %1864 = vmatpush.msra.mxu3 %v1835_v38  ;;  %1952 = dma.vmem_to_hbm [thread:$0]  %s1945_s11, 1024, %s1947_s17, [#allocation15], %s2365_s21, %s2365_s21, %s2366_s22  }
 0xb4a   :  { %1734 = vmatpush.msrb.mxu1 %v1710_v23 }
 0xb4b   :  { %1865 = vmatpush.msra.mxu3 %v1834_v17 }
 0xb4c   :  { %1735 = vmatpush.msrb.mxu1 %v1709_v20 }
 0xb4d   :  { %2023 = vmatmul.msk.f32.vlgmr.msrb.gmra.mxu1 %vm162_vm0, %v1369_v24 }
 0xb7a   :  { %v1660_v50 = vpop.f32.mrf.mxu3 }
 0xb7b   :  { %1699 = vrot.lane.b32.xlu0 %v1660_v50, %s2370_s16  ;;  %v1686_v26 = vpop.f32.mrf.mxu0 }
 0xb82   :  { %v1634_v25 = vpop.f32.mrf.mxu2 }
 0xb83   :  { %1695 = vrot.lane.b32.xlu2 %v1634_v25, %s2366_s22 }
 0xb8b   :  { %1703 = vrot.lane.b32.xlu2 %v1686_v26, %s2380_s23 }
 0xbc2   :  { %v1608_v21 = vpop.f32.mrf.mxu1 }
 0xbca   :  { %v1737_v27 = vpop.f32.mrf.mxu1 }
 0xbcb   :  { %v1738_v28 = vadd.f32 %v1737_v27, %v1713_v12 }
 0xbcd   :  { %v1743_v29 = vadd.f32 %v1738_v28, %v2744_v53 }
 0xbcf   :  { %v1745_v30 = vsel %vm162_vm0, %v1743_v29, 0.0 }
 0xbd0   :  { %1746 = vadd.xlane.f32.xlu1 %v1745_v30 }
 0xbdd   :  { %v1696_v33 = vpop.permute.xlu2 %1695 }
 0xbde   :  { %v1706_v44 = vsel %vm201_vm1, %v1608_v21, %v1696_v33 }
 0xbe5   :  { %v1704_v32 = vpop.permute.xlu2 %1703 }
 0xbed   :  { %v1700_v48 = vpop.permute.xlu0 %1699 }
 0xbee   :  { %v1707_v35 = vsel %vm521_vm7, %v1706_v44, %v1700_v48  ;;  %v2934_v44 = vld [vmem:[#allocation11] sm:$0xff] }
 0xbef   :  { %v1708_v60 = vsel %vm523_vm8, %v1707_v35, %v1704_v32  ;;  %v1842_v48 = vperm.slane %v2934_v44, 6 }
 0xbf0   :  { %2024 = vmatmul.msk.f32.gmra.mxu1 %vm162_vm0, %v1708_v60 }
 0xc43   :  { %v1747_v34 = vpop.xlane.xlu1 %1746 }
 0xc44   :  { %v1751_v36 = vmul.f32 %v1747_v34, %v2726_v7 }
 0xc46   :  { %v1753_v37 = vsub.f32 %v1743_v29, %v1751_v36 }
 0xc48   :  { %v1755_v39 = vmul.f32 %v1753_v37, %v1753_v37 }
 0xc4a   :  { %v1757_v53 = vsel %vm162_vm0, %v1755_v39, 0.0 }
 0xc4b   :  { %1758 = vadd.xlane.f32.xlu2 %v1757_v53 }
 0xc6d   :  { %v1740_v41 = vpop.f32.mrf.mxu1 }
 0xc6e   :  { %v1741_v42 = vadd.f32 %v1740_v41, %v1713_v12 }
 0xc70   :  { %v1744_v19 = vadd.f32 %v1741_v42, %v2766_v61 }
 0xc72   :  { %v1748_v43 = vsel %vm162_vm0, %v1744_v19, 0.0 }
 0xc73   :  { %1749 = vadd.xlane.f32.xlu0 %v1748_v43 }
 0xcbe   :  { %v1759_v49 = vpop.xlane.xlu2 %1758 }
 0xcbf   :  { %v1763_v51 = vmul.f32 %v1759_v49, %v2726_v7 }
 0xcc1   :  { %v1765_v40 = vadd.f32 1e-05, %v1763_v51 }
 0xcc3   :  { %2151 = vrsqrt.f32 %v1765_v40  ;;  %vm1773_vm7 = vweird.f32 %v1765_v40 }
 0xcc9   :  { %v2152_v54 = vpop.eup %2151 }
 0xcca   :  { %v1768_v55 = vmul.f32 %v2152_v54, %v1765_v40  ;;  %vm1774_vm1 = vweird.f32 %v2152_v54 }
 0xccb   :  { %vm1775_vm8 = vmor %vm1773_vm7, %vm1774_vm1 }
 0xccc   :  { %v1769_v56 = vmul.f32 %v2152_v54, %v1768_v55 }
 0xcce   :  { %v1770_v61 = vmul.f32 0.5, %v1769_v56 }
 0xcd0   :  { %v1771_v59 = vsub.f32 1.5, %v1770_v61 }
 0xcd2   :  { %v1772_v63 = vmul.f32 %v2152_v54, %v1771_v59  ;;  %v1919_v59 = vperm.slane %v2934_v44, 7 }
 0xcd4   :  { %v1776_v2 = vsel %vm1775_vm8, %v2152_v54, %v1772_v63 }
 0xcd5   :  { %v1787_v5 = vmul.f32 %v1776_v2, %v1753_v37 }
 0xcd7   :  { %v1790_v9 = vmul.f32 %v1789_v1, %v1787_v5 }
 0xcd9   :  { %v1793_v10 = vadd.f32 %v1792_v8, %v1790_v9 }
 0xcdb   :  { %2025 = vmatmul.msk.f32.vlgmr.msra.gmra.mxu2 %vm162_vm0, %v1793_v10 }
 0xce6   :  { %v1750_v11 = vpop.xlane.xlu0 %1749 }
 0xce7   :  { %v1752_v13 = vmul.f32 %v1750_v11, %v2726_v7 }
 0xce9   :  { %v1754_v14 = vsub.f32 %v1744_v19, %v1752_v13 }
 0xceb   :  { %v1756_v15 = vmul.f32 %v1754_v14, %v1754_v14 }
 0xced   :  { %v1760_v16 = vsel %vm162_vm0, %v1756_v15, 0.0 }
 0xcee   :  { %1761 = vadd.xlane.f32.xlu1 %v1760_v16 }
 0xd5e   :  { %v1826_v23 = vpop.f32.mrf.mxu2 }
 0xd5f   :  { %v1827_v18 = vadd.f32 %v2079_v31, %v1826_v23 }
 0xd61   :  { %v1832_v6 = vmax.f32 %v1827_v18, 0.0  ;;  %v1762_v20 = vpop.xlane.xlu1 %1761 }
 0xd62   :  { %v1764_v22 = vmul.f32 %v1762_v20, %v2726_v7 }
 0xd63   :  { %2027 = vmatmul.msk.f32.vlgmr.msra.gmra.mxu3 %vm1843_vm12, %v1832_v6 }
 0xd64   :  { %v1766_v24 = vadd.f32 1e-05, %v1764_v22 }
 0xd66   :  { %2153 = vrsqrt.f32 %v1766_v24  ;;  %vm1783_vm14 = vweird.f32 %v1766_v24 }
 0xd6c   :  { %v2154_v50 = vpop.eup %2153 }
 0xd6d   :  { %v1778_v25 = vmul.f32 %v2154_v50, %v1766_v24  ;;  %vm1784_vm13 = vweird.f32 %v2154_v50 }
 0xd6e   :  { %vm1785_vm15 = vmor %vm1783_vm14, %vm1784_vm13 }
 0xd6f   :  { %v1779_v26 = vmul.f32 %v2154_v50, %v1778_v25 }
 0xd71   :  { %v1780_v21 = vmul.f32 0.5, %v1779_v26 }
 0xd73   :  { %v1781_v12 = vsub.f32 1.5, %v1780_v21 }
 0xd75   :  { %v1782_v27 = vmul.f32 %v2154_v50, %v1781_v12 }
 0xd77   :  { %v1786_v28 = vsel %vm1785_vm15, %v2154_v50, %v1782_v27 }
 0xd78   :  { %v1788_v29 = vmul.f32 %v1786_v28, %v1754_v14 }
 0xd7a   :  { %v1791_v30 = vmul.f32 %v1789_v1, %v1788_v29 }
 0xd7c   :  { %v1794_v33 = vadd.f32 %v1792_v8, %v1791_v30 }
 0xd7e   :  { %2026 = vmatmul.msk.f32.gmra.mxu2 %vm162_vm0, %v1794_v33 }
 0xde6   :  { %v1867_v32 = vpop.f32.mrf.mxu3 }
 0xde7   :  { %v1868_v35 = vadd.f32 %v1867_v32, %v1842_v48 }
 0xde9   :  { %v1873_v60 = vadd.f32 %v1868_v35, %v1793_v10 }
 0xdeb   :  { %v1875_v34 = vsel %vm162_vm0, %v1873_v60, 0.0 }
 0xdec   :  { %1876 = vadd.xlane.f32.xlu2 %v1875_v34 }
 0xe01   :  { %v1829_v36 = vpop.f32.mrf.mxu2 }
 0xe02   :  { %v1830_v37 = vadd.f32 %v2079_v31, %v1829_v36 }
 0xe04   :  { %v1833_v39 = vmax.f32 %v1830_v37, 0.0 }
 0xe06   :  { %2028 = vmatmul.msk.f32.gmra.mxu3 %vm1843_vm12, %v1833_v39 }
 0xe5f   :  { %v1877_v53 = vpop.xlane.xlu2 %1876 }
 0xe60   :  { %v1881_v41 = vmul.f32 %v1877_v53, %v2726_v7 }
 0xe62   :  { %v1883_v42 = vsub.f32 %v1873_v60, %v1881_v41 }
 0xe64   :  { %v1885_v19 = vmul.f32 %v1883_v42, %v1883_v42 }
 0xe66   :  { %v1887_v43 = vsel %vm162_vm0, %v1885_v19, 0.0 }
 0xe67   :  { %1888 = vadd.xlane.f32.xlu1 %v1887_v43 }
 0xe89   :  { %v1870_v45 = vpop.f32.mrf.mxu3 }
 0xe8a   :  { %v1871_v46 = vadd.f32 %v1870_v45, %v1842_v48 }
 0xe8c   :  { %v1874_v52 = vadd.f32 %v1871_v46, %v1794_v33 }
 0xe8e   :  { %v1878_v47 = vsel %vm162_vm0, %v1874_v52, 0.0 }
 0xe8f   :  { %1879 = vadd.xlane.f32.xlu0 %v1878_v47 }
 0xeda   :  { %v1889_v49 = vpop.xlane.xlu1 %1888 }
 0xedb   :  { %v1893_v51 = vmul.f32 %v1889_v49, %v2726_v7 }
 0xedd   :  { %v1895_v40 = vadd.f32 1e-05, %v1893_v51 }
 0xedf   :  { %2155 = vrsqrt.f32 %v1895_v40  ;;  %vm1903_vm3 = vweird.f32 %v1895_v40 }
 0xee5   :  { %v2156_v54 = vpop.eup %2155 }
 0xee6   :  { %v1898_v55 = vmul.f32 %v2156_v54, %v1895_v40  ;;  %vm1904_vm2 = vweird.f32 %v2156_v54 }
 0xee7   :  { %vm1905_vm4 = vmor %vm1903_vm3, %vm1904_vm2 }
 0xee8   :  { %v1899_v56 = vmul.f32 %v2156_v54, %v1898_v55 }
 0xeea   :  { %v1900_v61 = vmul.f32 0.5, %v1899_v56 }
 0xeec   :  { %v1901_v4 = vsub.f32 1.5, %v1900_v61 }
 0xeee   :  { %v1902_v57 = vmul.f32 %v2156_v54, %v1901_v4 }
 0xef0   :  { %v1906_v62 = vsel %vm1905_vm4, %v2156_v54, %v1902_v57 }
 0xef1   :  { %v1917_v63 = vmul.f32 %v1906_v62, %v1883_v42 }
 0xef3   :  { %v1920_v1 = vmul.f32 %v1919_v59, %v1917_v63 }
 0xef5   :  { %v1923_v2 = vadd.f32 %v2080_v0, %v1920_v1 }
 0xef7   :  { %1925 = vst.msk [vmem:[#allocation13] sm:$0xff] %vm162_vm0, %v1923_v2 }
 0xf02   :  { %v1880_v3 = vpop.xlane.xlu0 %1879 }
 0xf03   :  { %v1882_v5 = vmul.f32 %v1880_v3, %v2726_v7 }
 0xf05   :  { %v1884_v8 = vsub.f32 %v1874_v52, %v1882_v5 }
 0xf07   :  { %v1886_v9 = vmul.f32 %v1884_v8, %v1884_v8 }
 0xf09   :  { %v1890_v10 = vsel %vm162_vm0, %v1886_v9, 0.0 }
 0xf0a   :  { %1891 = vadd.xlane.f32.xlu2 %v1890_v10 }
 0xf7d   :  { %v1892_v11 = vpop.xlane.xlu2 %1891 }
 0xf7e   :  { %v1894_v13 = vmul.f32 %v1892_v11, %v2726_v7 }
 0xf80   :  { %v1896_v14 = vadd.f32 1e-05, %v1894_v13 }
 0xf82   :  { %2157 = vrsqrt.f32 %v1896_v14  ;;  %vm1913_vm6 = vweird.f32 %v1896_v14 }
 0xf88   :  { %v2158_v15 = vpop.eup %2157 }
 0xf89   :  { %v1908_v16 = vmul.f32 %v2158_v15, %v1896_v14  ;;  %vm1914_vm5 = vweird.f32 %v2158_v15 }
 0xf8a   :  { %vm1915_vm9 = vmor %vm1913_vm6, %vm1914_vm5 }
 0xf8b   :  { %v1909_v58 = vmul.f32 %v2158_v15, %v1908_v16 }
 0xf8d   :  { %v1910_v38 = vmul.f32 0.5, %v1909_v58 }
 0xf8f   :  { %v1911_v17 = vsub.f32 1.5, %v1910_v38 }
 0xf91   :  { %v1912_v31 = vmul.f32 %v2158_v15, %v1911_v17 }
 0xf93   :  { %v1916_v23 = vsel %vm1915_vm9, %v2158_v15, %v1912_v31 }
 0xf94   :  { %v1918_v18 = vmul.f32 %v1916_v23, %v1884_v8 }
 0xf96   :  { %v1921_v7 = vmul.f32 %v1919_v59, %v1918_v18 }
 0xf98   :  { %v1924_v6 = vadd.f32 %v2080_v0, %v1921_v7 }
 0xf9a   :  { %1926 = vst.msk [vmem:[#allocation13 + $0x8] sm:$0xff] %vm162_vm0, %v1924_v6 }
 0xf9b   :  { %1939 = dma.vmem_to_hbm [thread:$0]  %s1932_s18, 256, %s1934_s24, [#allocation4], %s2365_s21, %s2365_s21, %s2366_s22  }
 0xf9c   :  { %2360 = dma.done.wait [#allocation4], 256  }
 0xf9d   :  { %2361 = vsyncadd [#allocation4], 4294967040 }
 0xf9e   :  { %2362 = dma.done.wait [#allocation15], 1024  }
 0xf9f   :  { %2363 = vsyncadd [#allocation15], 4294966272 }
 0xfa0   :  { %1961 = vsyncpa [#allocation3], 1 }
 0xfa1   :  { %1962 = vsyncpa [#allocation6], 1 }
 0xfa2   :  { %1963 = vsyncpa [#allocation9], 1 }
 0xfa3   :  { %1964 = vsyncpa [#allocation12], 1 }
 0xfa4   :  { %1965 = vsyncpa [#allocation4], 1 }
 0xfa5   :  { %1966 = vsyncpa [#allocation15], 1 }

</bundles_post_ra>
